<compile_context>
chip_gen: v6e
topology: v6e:2x2x1
jax: 0.10.0
libtpu: 0.0.40
codegen_flags: <defaults>
</compile_context>

<pallas_src>
import functools

import jax
import jax.numpy as jnp
from jax import lax
from jax.experimental import pallas as pl
from jax.experimental.pallas import tpu as pltpu

_ONES_ROWS = 8  # extra all-ones V rows: softmax denominator produced on the MXU


def pam_kernel(gamma_ref, wq_ref, bq_ref, wk_ref, bk_ref, wv_ref, bv_ref,
               x_full_ref, x_tile_ref, o_ref, k_scratch, v_scratch,
               *, c, n_valid):
    qi = pl.program_id(1)
    n_pad = k_scratch.shape[1]

    # K / V projections: once per batch element, reused by every query tile.
    # The projection matmuls are O(N*C^2) (minor next to the O(N^2*C)
    # attention matmuls) and stay f32; results are stored bf16 for the MXU.
    @pl.when(qi == 0)
    def _():
        x_full = x_full_ref[0]                                        # (C, Np) f32
        k = jnp.dot(wk_ref[...], x_full,
                    preferred_element_type=jnp.float32) + bk_ref[...]
        v = jnp.dot(wv_ref[...], x_full,
                    preferred_element_type=jnp.float32) + bv_ref[...]
        k_scratch[...] = k.astype(jnp.bfloat16)                       # (C8, Np)
        v_scratch[0:c, :] = v.astype(jnp.bfloat16)                    # (C,  Np)
        # Ones rows: row c of the AV matmul result is then sum_m p[n, m],
        # i.e. the softmax denominator, computed on the (already busy) MXU
        # instead of an XLU lane-reduce over the (TQ, Np) tile.
        v_scratch[c:, :] = jnp.ones((_ONES_ROWS, n_pad), jnp.bfloat16)

    x_t = x_tile_ref[0]                                               # (C, TQ) f32

    # Query projection for this tile (f32, small).
    q_t = jnp.dot(wq_ref[...], x_t,
                  preferred_element_type=jnp.float32) + bq_ref[...]   # (C8, TQ)

    # energy[n, m] = sum_c q[c, n] k[c, m]; bf16 operands, f32 accumulation,
    # no materialized transpose of K.
    energy = lax.dot_general(q_t.astype(jnp.bfloat16), k_scratch[...],
                             (((0,), (0,)), ((), ())),
                             preferred_element_type=jnp.float32)      # (TQ, Np)

    if n_pad != n_valid:  # static condition: mask zero-padded key columns
        col = lax.broadcasted_iota(jnp.int32, energy.shape, 1)
        energy = jnp.where(col < n_valid, energy, jnp.float32(-1e30))

    # Unnormalized softmax weights (f32, numerically shifted); normalisation
    # is applied to the (C, TQ) output below, not to the (TQ, Np) weights.
    p = jnp.exp(energy - jnp.max(energy, axis=-1, keepdims=True))
    p16 = p.astype(jnp.bfloat16)

    # out_aug[:C] = V @ p^T  (C, TQ);  out_aug[C] = sum_m p[:, m]  (denominator)
    out_aug = lax.dot_general(v_scratch[...], p16,
                              (((1,), (1,)), ((), ())),
                              preferred_element_type=jnp.float32)     # (C+8, TQ)

    inv = pl.reciprocal(out_aug[c:c + 1, :], approx=True)             # (1, TQ)
    out_t = out_aug[0:c, :] * inv                                     # (C, TQ) f32

    gamma = gamma_ref[0]
    o_ref[0] = (gamma * out_t + x_t).astype(o_ref.dtype)


def pam_module_forward(x, wq, bq, wk, bk, wv, bv, gamma, *, tq=256):
    """x: (B, C, H, W, 1) f32; wq/wk: (C//8, C); wv: (C, C); gamma: (1,)."""
    B, C, H, W, _ = x.shape
    N = H * W
    C8 = wq.shape[0]
    x_flat = x.reshape(B, C, N)

    # Lane-dense query tiles (multiple of 128); clamp for small feature maps.
    # TODO(synk): on v5e, tq=128 may pipeline better than 256.
    tq = min(tq, 128 * pl.cdiv(N, 128))
    n_pad = tq * pl.cdiv(N, tq)
    if n_pad != N:
        # Masked final query tile: zero-pad the spatial axis; padded key
        # columns are masked in-kernel, padded query rows are sliced off below.
        x_flat = jnp.pad(x_flat, ((0, 0), (0, 0), (0, n_pad - N)))
    nq = n_pad // tq

    bq2 = bq.reshape(C8, 1)
    bk2 = bk.reshape(C8, 1)
    bv2 = bv.reshape(C, 1)

    kernel = functools.partial(pam_kernel, c=C, n_valid=N)

    # VMEM budget: bf16 K/V scratch + double-buffered x / out / weight blocks +
    # (TQ, Npad) softmax temporaries, with headroom; clamped to v7x's 64 MiB.
    # TODO(synk): at very large C*N, shrink tq instead of exceeding 64 MiB.
    cv = C + _ONES_ROWS
    vmem_bytes = (
        2 * C8 * n_pad + 2 * cv * n_pad               # bf16 K / V scratch
        + 2 * 4 * C * n_pad                           # per-batch x slab (x2 buf)
        + 2 * 4 * C * tq                              # x query tile (x2 buf)
        + 2 * 4 * C * tq                              # output tile (x2 buf)
        + 2 * 4 * (2 * C8 * C + C * C + 2 * C8 + C)   # weights + biases (x2 buf)
        + 4 * 4 * tq * n_pad                          # energy / exp / bf16 temps
        + 6 * 4 * cv * tq)                            # q / out_aug / residual temps
    vmem_limit = int(min(max(vmem_bytes + (8 << 20), 32 << 20), 64 << 20))

    out_flat = pl.pallas_call(
        kernel,
        out_shape=jax.ShapeDtypeStruct((B, C, n_pad), x.dtype),
        grid_spec=pltpu.PrefetchScalarGridSpec(
            num_scalar_prefetch=0,
            grid=(B, nq),
            in_specs=[
                pl.BlockSpec(memory_space=pltpu.SMEM),                 # gamma
                pl.BlockSpec((C8, C), lambda b, q: (0, 0)),            # Wq
                pl.BlockSpec((C8, 1), lambda b, q: (0, 0)),            # bq
                pl.BlockSpec((C8, C), lambda b, q: (0, 0)),            # Wk
                pl.BlockSpec((C8, 1), lambda b, q: (0, 0)),            # bk
                pl.BlockSpec((C, C), lambda b, q: (0, 0)),             # Wv
                pl.BlockSpec((C, 1), lambda b, q: (0, 0)),             # bv
                # Per-batch x slab for the K/V projections.
                pl.BlockSpec((1, C, n_pad), lambda b, q: (b, 0, 0)),
                # Per-tile x slice for the Q projection + residual add.
                # TODO(synk): fold into the slab above (dedup x HBM reads) once
                # a dynamic lane-dim slice (x_full_ref[0, :, pl.ds(qi*tq, tq)])
                # is safe to rely on in Mosaic; until then x is streamed twice
                # per batch, which the pipeline hides at compute-bound sizes.
                pl.BlockSpec((1, C, tq), lambda b, q: (b, 0, q)),
            ],
            out_specs=pl.BlockSpec((1, C, tq), lambda b, q: (b, 0, q)),
            scratch_shapes=[
                pltpu.VMEM((C8, n_pad), jnp.bfloat16),                 # K
                pltpu.VMEM((cv, n_pad), jnp.bfloat16),                 # V + ones rows
            ],
        ),
        compiler_params=pltpu.CompilerParams(
            # TODO(synk): on v7x verify the batch axis shards across both
            # TensorCores; otherwise switch to CORE_PARALLEL / core_map.
            dimension_semantics=("parallel", "arbitrary"),
            vmem_limit_bytes=vmem_limit),
    )(gamma, wq, bq2, wk, bk2, wv, bv2, x_flat, x_flat)

    if n_pad != N:
        out_flat = out_flat[:, :, :N]
    return out_flat.reshape(B, C, H, W, 1)


def pam_module_reference(x, wq, bq, wk, bk, wv, bv, gamma):
    """Pure-JAX f32 reference mirroring the PyTorch PAM_Module forward."""
    B, C, H, W, _ = x.shape
    xs = x[..., 0]                                               # (B, C, H, W)
    N = H * W
    xf = xs.reshape(B, C, N)
    q = jnp.einsum("oc,bcn->bon", wq, xf) + bq[None, :, None]    # (B, C8, N)
    k = jnp.einsum("oc,bcn->bon", wk, xf) + bk[None, :, None]    # (B, C8, N)
    v = jnp.einsum("oc,bcn->bon", wv, xf) + bv[None, :, None]    # (B, C,  N)
    energy = jnp.einsum("bcn,bcm->bnm", q, k)                    # (B, N, N)
    attn = jax.nn.softmax(energy, axis=-1)
    out = jnp.einsum("bcm,bnm->bcn", v, attn)                    # (B, C, N)
    out = out.reshape(B, C, H, W)
    return (gamma[0] * out + xs)[..., None]


if __name__ == "__main__":
    key = jax.random.PRNGKey(0)
    B, C, H, W = 2, 64, 32, 32           # N = 1024 -> 4 query tiles of 256
    C8 = C // 8

    keys = jax.random.split(key, 8)
    x = jax.random.normal(keys[0], (B, C, H, W, 1), dtype=jnp.float32)
    wq = 0.1 * jax.random.normal(keys[1], (C8, C), dtype=jnp.float32)
    bq = 0.1 * jax.random.normal(keys[2], (C8,), dtype=jnp.float32)
    wk = 0.1 * jax.random.normal(keys[3], (C8, C), dtype=jnp.float32)
    bk = 0.1 * jax.random.normal(keys[4], (C8,), dtype=jnp.float32)
    wv = 0.1 * jax.random.normal(keys[5], (C, C), dtype=jnp.float32)
    bv = 0.1 * jax.random.normal(keys[6], (C,), dtype=jnp.float32)
    # nn.Parameter(torch.zeros(1)) init is gamma = 0; use a nonzero gamma so
    # the attention path is exercised (the gamma = 0 case is checked below).
    gamma = jnp.array([0.5], dtype=jnp.float32)

    # Multi-tile case (N = 1024, no padding): checks the per-batch K/V scratch
    # reuse across query tiles.  bf16 MXU operands + approx reciprocal give a
    # slightly looser tolerance than the pure-f32 reference.
    out = jax.block_until_ready(
        pam_module_forward(x, wq, bq, wk, bk, wv, bv, gamma))
    ref = pam_module_reference(x, wq, bq, wk, bk, wv, bv, gamma)
    assert out.shape == (B, C, H, W, 1)
    assert jnp.allclose(out, ref, atol=2e-2, rtol=1e-2), "mismatch vs reference"

    # Non-multiple-of-128 feature map (N = 100): exercises the padded / masked
    # final query tile instead of the old tq = N fallback.
    H2, W2 = 10, 10
    x2 = jax.random.normal(keys[7], (B, C, H2, W2, 1), dtype=jnp.float32)
    out2 = jax.block_until_ready(
        pam_module_forward(x2, wq, bq, wk, bk, wv, bv, gamma))
    ref2 = pam_module_reference(x2, wq, bq, wk, bk, wv, bv, gamma)
    assert out2.shape == (B, C, H2, W2, 1)
    assert jnp.allclose(out2, ref2, atol=2e-2, rtol=1e-2), "masked-tile mismatch"

    # PyTorch default init (gamma = 0): output must equal the input exactly.
    out0 = jax.block_until_ready(
        pam_module_forward(x, wq, bq, wk, bk, wv, bv,
                           jnp.zeros((1,), jnp.float32)))
    assert jnp.allclose(out0, x, atol=1e-5)

    print("KERNEL_OK")
</pallas_src>

<mosaic_0001>
module attributes {stable_mosaic.version = 11 : i64} {
  func.func @pam_kernel(%arg0: i32, %arg1: i32, %arg2: memref<1xf32, #tpu.memory_space<smem>>, %arg3: memref<8x64xf32, #tpu.memory_space<vmem>>, %arg4: memref<8x1xf32, #tpu.memory_space<vmem>>, %arg5: memref<8x64xf32, #tpu.memory_space<vmem>>, %arg6: memref<8x1xf32, #tpu.memory_space<vmem>>, %arg7: memref<64x64xf32, #tpu.memory_space<vmem>>, %arg8: memref<64x1xf32, #tpu.memory_space<vmem>>, %arg9: memref<1x64x1024xf32, #tpu.memory_space<vmem>>, %arg10: memref<1x64x256xf32, #tpu.memory_space<vmem>>, %arg11: memref<1x64x256xf32, #tpu.memory_space<vmem>>, %arg12: memref<8x1024xbf16, #tpu.memory_space<vmem>>, %arg13: memref<72x1024xbf16, #tpu.memory_space<vmem>>) attributes {dimension_semantics = [#tpu.dimension_semantics<parallel>, #tpu.dimension_semantics<arbitrary>], iteration_bounds = array<i64: 2, 4>, scalar_prefetch = 0 : i64, scratch_operands = 2 : i64, tpu.core_type = #tpu.core_type<tc>, window_params = [{transform_indices = @transform_0, window_bounds = array<i64: 1>}, {pipeline_mode = #tpu.pipeline_mode<synchronous>, transform_indices = @transform_1, window_bounds = array<i64: 8, 64>}, {pipeline_mode = #tpu.pipeline_mode<synchronous>, transform_indices = @transform_2, window_bounds = array<i64: 8, 1>}, {pipeline_mode = #tpu.pipeline_mode<synchronous>, transform_indices = @transform_3, window_bounds = array<i64: 8, 64>}, {pipeline_mode = #tpu.pipeline_mode<synchronous>, transform_indices = @transform_4, window_bounds = array<i64: 8, 1>}, {pipeline_mode = #tpu.pipeline_mode<synchronous>, transform_indices = @transform_5, window_bounds = array<i64: 64, 64>}, {pipeline_mode = #tpu.pipeline_mode<synchronous>, transform_indices = @transform_6, window_bounds = array<i64: 64, 1>}, {transform_indices = @transform_7, window_bounds = array<i64: 1, 64, 1024>}, {transform_indices = @transform_8, window_bounds = array<i64: 1, 64, 256>}, {transform_indices = @transform_9, window_bounds = array<i64: 1, 64, 256>}]} {
    %c0_i32 = arith.constant 0 : i32
    %0 = arith.cmpi eq, %arg1, %c0_i32 : i32
    %1 = arith.extui %0 : i1 to i32
    %c0_i32_0 = arith.constant 0 : i32
    %2 = arith.cmpi ne, %1, %c0_i32_0 : i32
    scf.if %2 {
      %c0_18 = arith.constant 0 : index
      %c0_19 = arith.constant 0 : index
      %c0_20 = arith.constant 0 : index
      %33 = vector.load %arg9[%c0_18, %c0_19, %c0_20] : memref<1x64x1024xf32, #tpu.memory_space<vmem>>, vector<1x64x1024xf32>
      %34 = vector.shape_cast %33 : vector<1x64x1024xf32> to vector<64x1024xf32>
      %c0_21 = arith.constant 0 : index
      %c0_22 = arith.constant 0 : index
      %35 = vector.load %arg5[%c0_21, %c0_22] : memref<8x64xf32, #tpu.memory_space<vmem>>, vector<8x64xf32>
      %cst_23 = arith.constant dense<0.000000e+00> : vector<8x1024xf32>
      %36 = tpu.matmul %35, %34, %cst_23 {dimension_numbers = #tpu.dot_dimension_numbers<[1], [0], [0], [1], [0, 0, 1, 1], [], []>} : vector<8x64xf32>, vector<64x1024xf32>, vector<8x1024xf32> -> vector<8x1024xf32>
      %c0_24 = arith.constant 0 : index
      %c0_25 = arith.constant 0 : index
      %37 = vector.load %arg6[%c0_24, %c0_25] : memref<8x1xf32, #tpu.memory_space<vmem>>, vector<8x1xf32>
      %38 = vector.broadcast %37 : vector<8x1xf32> to vector<8x1024xf32>
      %39 = arith.addf %36, %38 : vector<8x1024xf32>
      %c0_26 = arith.constant 0 : index
      %c0_27 = arith.constant 0 : index
      %40 = vector.load %arg7[%c0_26, %c0_27] : memref<64x64xf32, #tpu.memory_space<vmem>>, vector<64x64xf32>
      %cst_28 = arith.constant dense<0.000000e+00> : vector<64x1024xf32>
      %41 = tpu.matmul %40, %34, %cst_28 {dimension_numbers = #tpu.dot_dimension_numbers<[1], [0], [0], [1], [0, 0, 1, 1], [], []>} : vector<64x64xf32>, vector<64x1024xf32>, vector<64x1024xf32> -> vector<64x1024xf32>
      %c0_29 = arith.constant 0 : index
      %c0_30 = arith.constant 0 : index
      %42 = vector.load %arg8[%c0_29, %c0_30] : memref<64x1xf32, #tpu.memory_space<vmem>>, vector<64x1xf32>
      %43 = vector.broadcast %42 : vector<64x1xf32> to vector<64x1024xf32>
      %44 = arith.addf %41, %43 : vector<64x1024xf32>
      %45 = arith.truncf %39 : vector<8x1024xf32> to vector<8x1024xbf16>
      %c0_31 = arith.constant 0 : index
      %c0_32 = arith.constant 0 : index
      %46 = vector.load %arg12[%c0_31, %c0_32] : memref<8x1024xbf16, #tpu.memory_space<vmem>>, vector<8x1024xbf16>
      tpu.vector_store %arg12[%c0_31, %c0_32], %45 {strides = array<i32>} : memref<8x1024xbf16, #tpu.memory_space<vmem>>, vector<8x1024xbf16>,
      %47 = arith.truncf %44 : vector<64x1024xf32> to vector<64x1024xbf16>
      %c0_33 = arith.constant 0 : index
      %c0_34 = arith.constant 0 : index
      %48 = vector.load %arg13[%c0_33, %c0_34] : memref<72x1024xbf16, #tpu.memory_space<vmem>>, vector<64x1024xbf16>
      tpu.vector_store %arg13[%c0_33, %c0_34], %47 {strides = array<i32>} : memref<72x1024xbf16, #tpu.memory_space<vmem>>, vector<64x1024xbf16>,
      %cst_35 = arith.constant 1.000000e+00 : bf16
      %49 = vector.broadcast %cst_35 : bf16 to vector<8x1024xbf16>
      %c64 = arith.constant 64 : index
      %c0_36 = arith.constant 0 : index
      %50 = vector.load %arg13[%c64, %c0_36] : memref<72x1024xbf16, #tpu.memory_space<vmem>>, vector<8x1024xbf16>
      tpu.vector_store %arg13[%c64, %c0_36], %49 {strides = array<i32>} : memref<72x1024xbf16, #tpu.memory_space<vmem>>, vector<8x1024xbf16>,
    } else {
    }
    %c0 = arith.constant 0 : index
    %c0_1 = arith.constant 0 : index
    %c0_2 = arith.constant 0 : index
    %3 = vector.load %arg10[%c0, %c0_1, %c0_2] : memref<1x64x256xf32, #tpu.memory_space<vmem>>, vector<1x64x256xf32>
    %4 = vector.shape_cast %3 : vector<1x64x256xf32> to vector<64x256xf32>
    %c0_3 = arith.constant 0 : index
    %c0_4 = arith.constant 0 : index
    %5 = vector.load %arg3[%c0_3, %c0_4] : memref<8x64xf32, #tpu.memory_space<vmem>>, vector<8x64xf32>
    %cst = arith.constant dense<0.000000e+00> : vector<8x256xf32>
    %6 = tpu.matmul %5, %4, %cst {dimension_numbers = #tpu.dot_dimension_numbers<[1], [0], [0], [1], [0, 0, 1, 1], [], []>} : vector<8x64xf32>, vector<64x256xf32>, vector<8x256xf32> -> vector<8x256xf32>
    %c0_5 = arith.constant 0 : index
    %c0_6 = arith.constant 0 : index
    %7 = vector.load %arg4[%c0_5, %c0_6] : memref<8x1xf32, #tpu.memory_space<vmem>>, vector<8x1xf32>
    %8 = vector.broadcast %7 : vector<8x1xf32> to vector<8x256xf32>
    %9 = arith.addf %6, %8 : vector<8x256xf32>
    %10 = arith.truncf %9 : vector<8x256xf32> to vector<8x256xbf16>
    %c0_7 = arith.constant 0 : index
    %c0_8 = arith.constant 0 : index
    %11 = vector.load %arg12[%c0_7, %c0_8] : memref<8x1024xbf16, #tpu.memory_space<vmem>>, vector<8x1024xbf16>
    %cst_9 = arith.constant dense<0.000000e+00> : vector<256x1024xf32>
    %12 = tpu.matmul %10, %11, %cst_9 {dimension_numbers = #tpu.dot_dimension_numbers<[0], [0], [1], [1], [0, 1, 1, 1], [], []>} : vector<8x256xbf16>, vector<8x1024xbf16>, vector<256x1024xf32> -> vector<256x1024xf32>
    %cst_10 = arith.constant dense<0xFF800000> : vector<256xf32>
    %13 = vector.multi_reduction <maximumf>, %12, %cst_10 [1] : vector<256x1024xf32> to vector<256xf32>
    %14 = vector.shape_cast %13 : vector<256xf32> to vector<256x1xf32>
    %15 = vector.broadcast %14 : vector<256x1xf32> to vector<256x1024xf32>
    %16 = arith.subf %12, %15 : vector<256x1024xf32>
    %17 = math.exp %16 : vector<256x1024xf32>
    %18 = arith.truncf %17 : vector<256x1024xf32> to vector<256x1024xbf16>
    %c0_11 = arith.constant 0 : index
    %c0_12 = arith.constant 0 : index
    %19 = vector.load %arg13[%c0_11, %c0_12] : memref<72x1024xbf16, #tpu.memory_space<vmem>>, vector<72x1024xbf16>
    %cst_13 = arith.constant dense<0.000000e+00> : vector<72x256xf32>
    %20 = tpu.matmul %19, %18, %cst_13 {dimension_numbers = #tpu.dot_dimension_numbers<[1], [1], [0], [0], [0, 0, 1, 0], [], []>} : vector<72x1024xbf16>, vector<256x1024xbf16>, vector<72x256xf32> -> vector<72x256xf32>
    %21 = vector.extract_strided_slice %20 {offsets = [64, 0], sizes = [1, 256], strides = [1, 1]} : vector<72x256xf32> to vector<1x256xf32>
    %22 = tpu.reciprocal %21 {approx = true} : vector<1x256xf32> -> vector<1x256xf32>
    %23 = vector.extract_strided_slice %20 {offsets = [0, 0], sizes = [64, 256], strides = [1, 1]} : vector<72x256xf32> to vector<64x256xf32>
    %24 = vector.broadcast %22 : vector<1x256xf32> to vector<64x256xf32>
    %25 = arith.mulf %23, %24 : vector<64x256xf32>
    %c0_14 = arith.constant 0 : index
    %26 = memref.load %arg2[%c0_14] : memref<1xf32, #tpu.memory_space<smem>>
    %27 = vector.broadcast %26 : f32 to vector<64x256xf32>
    %28 = arith.mulf %27, %25 : vector<64x256xf32>
    %29 = arith.addf %28, %4 : vector<64x256xf32>
    %c0_15 = arith.constant 0 : index
    %c0_16 = arith.constant 0 : index
    %c0_17 = arith.constant 0 : index
    %30 = vector.load %arg11[%c0_15, %c0_16, %c0_17] : memref<1x64x256xf32, #tpu.memory_space<vmem>>, vector<1x64x256xf32>
    %31 = vector.shape_cast %30 : vector<1x64x256xf32> to vector<64x256xf32>
    %32 = vector.shape_cast %29 : vector<64x256xf32> to vector<1x64x256xf32>
    tpu.vector_store %arg11[%c0_15, %c0_16, %c0_17], %32 {strides = array<i32>} : memref<1x64x256xf32, #tpu.memory_space<vmem>>, vector<1x64x256xf32>,
    return
  }
  func.func @transform_0(%arg0: i32, %arg1: i32) -> i32 {
    %c0_i32 = arith.constant 0 : i32
    %c0_i32_0 = arith.constant 0 : i32
    return %c0_i32 : i32
  }
  func.func @transform_1(%arg0: i32, %arg1: i32) -> (i32, i32) {
    %c0_i32 = arith.constant 0 : i32
    %c0_i32_0 = arith.constant 0 : i32
    %c0_i32_1 = arith.constant 0 : i32
    return %c0_i32, %c0_i32_0 : i32, i32
  }
  func.func @transform_2(%arg0: i32, %arg1: i32) -> (i32, i32) {
    %c0_i32 = arith.constant 0 : i32
    %c0_i32_0 = arith.constant 0 : i32
    %c0_i32_1 = arith.constant 0 : i32
    return %c0_i32, %c0_i32_0 : i32, i32
  }
  func.func @transform_3(%arg0: i32, %arg1: i32) -> (i32, i32) {
    %c0_i32 = arith.constant 0 : i32
    %c0_i32_0 = arith.constant 0 : i32
    %c0_i32_1 = arith.constant 0 : i32
    return %c0_i32, %c0_i32_0 : i32, i32
  }
  func.func @transform_4(%arg0: i32, %arg1: i32) -> (i32, i32) {
    %c0_i32 = arith.constant 0 : i32
    %c0_i32_0 = arith.constant 0 : i32
    %c0_i32_1 = arith.constant 0 : i32
    return %c0_i32, %c0_i32_0 : i32, i32
  }
  func.func @transform_5(%arg0: i32, %arg1: i32) -> (i32, i32) {
    %c0_i32 = arith.constant 0 : i32
    %c0_i32_0 = arith.constant 0 : i32
    %c0_i32_1 = arith.constant 0 : i32
    return %c0_i32, %c0_i32_0 : i32, i32
  }
  func.func @transform_6(%arg0: i32, %arg1: i32) -> (i32, i32) {
    %c0_i32 = arith.constant 0 : i32
    %c0_i32_0 = arith.constant 0 : i32
    %c0_i32_1 = arith.constant 0 : i32
    return %c0_i32, %c0_i32_0 : i32, i32
  }
  func.func @transform_7(%arg0: i32, %arg1: i32) -> (i32, i32, i32) {
    %c0_i32 = arith.constant 0 : i32
    %c0_i32_0 = arith.constant 0 : i32
    %c0_i32_1 = arith.constant 0 : i32
    return %arg0, %c0_i32, %c0_i32_0 : i32, i32, i32
  }
  func.func @transform_8(%arg0: i32, %arg1: i32) -> (i32, i32, i32) {
    %c0_i32 = arith.constant 0 : i32
    %c0_i32_0 = arith.constant 0 : i32
    return %arg0, %c0_i32, %arg1 : i32, i32, i32
  }
  func.func @transform_9(%arg0: i32, %arg1: i32) -> (i32, i32, i32) {
    %c0_i32 = arith.constant 0 : i32
    %c0_i32_0 = arith.constant 0 : i32
    return %arg0, %c0_i32, %arg1 : i32, i32, i32
  }
}

</mosaic_0001>

<bundles_post_ra>
// kernel: tpu_custom_call.1
= control target key start
LH: loop header
LB: loop body
LE: loop exit
PB: predicated region body
PF: predicated region fallthrough
CT: control target
= control target key end

     0   :  { %s8407_s0 = inlined_call_operand.<no memory space> [shape: f32[1], index: 0, kind: input, shape index: {}]   ;;  %s8408_s1 = inlined_call_operand.vmem [shape: f32[8,64], index: 1, kind: input, shape index: {}]   ;;  %s8409_s2 = inlined_call_operand.vmem [shape: f32[8,1], index: 2, kind: input, shape index: {}]   ;;  %s8410_s3 = inlined_call_operand.vmem [shape: f32[8,64], index: 3, kind: input, shape index: {}]   ;;  %s8411_s4 = inlined_call_operand.vmem [shape: f32[8,1], index: 4, kind: input, shape index: {}]   ;;  %s8412_s5 = inlined_call_operand.vmem [shape: f32[64,64], index: 5, kind: input, shape index: {}]   ;;  %s8413_s6 = inlined_call_operand.vmem [shape: f32[64,1], index: 6, kind: input, shape index: {}]   ;;  %s8414_s7 = inlined_call_operand.hbm [shape: f32[2,64,1024], index: 7, kind: input, shape index: {}]   ;;  %s8415_s8 = inlined_call_operand.hbm [shape: f32[2,64,1024], index: 8, kind: input, shape index: {}]   ;;  %s8416_s9 = inlined_call_operand.hbm [shape: f32[2,64,1024], index: 9, kind: output, shape index: {}]  }
   0x1   :  { %8730 = sst [smem:[#allocation273_spill]] %s8408_s1 }
   0x2   :  { %8731 = sst [smem:[#allocation274_spill]] %s8409_s2 }
   0x3   :  { %8732 = sst [smem:[#allocation275_spill]] %s8410_s3 }
   0x4   :  { %8733 = sst [smem:[#allocation276_spill]] %s8411_s4 }
   0x5   :  { %8734 = sst [smem:[#allocation277_spill]] %s8412_s5 }
   0x6   :  { %8735 = sst [smem:[#allocation278_spill]] %s8413_s6 }
   0x7   :  { %8736 = sst [smem:[#allocation279_spill]] %s8414_s7 }
   0x8   :  { %8737 = sst [smem:[#allocation280_spill]] %s8416_s9 }
   0x9   :  { %14 = sst [smem:[#allocation4]] %s8407_s0 }
   0xa   :  { %15 = vsyncpa [#allocation6], 0 }
   0xb   :  { %17 = vsyncpa [#allocation6 + $0x1], 0 }
   0xc   :  { %18 = vsyncpa [#allocation9], 0 }
   0xd   :  { %20 = vsyncpa [#allocation9 + $0x1], 0 }
   0xe   :  { %21 = vsyncpa [#allocation7], 0 }
   0xf   :  { %23 = vsyncpa [#allocation7 + $0x1], 0  ;;  %s5721_s11 = smov 0   ;;  %s5723_s12 = smov 0  }
  0x10   :  { %s5725_s13 = smov 0   ;;  %s5727_s14 = smov 0  }
  0x11   :  { %s5729_s15 = smov 0   ;;  %s5731_s16 = smov 0  }
  0x12   :  { %s5733_s17 = smov 0   ;;  %s5735_s0 = smov 0  }
  0x13   :  { %s5737_s18 = smov 0   ;;  %s5739_s19 = smov 0  }
  0x14   :  { %s5741_s20 = smov 0  }
  0x15 LB: > { %8738 = sst [smem:[#allocation14_spill]] %s5611_s11  ;;  %s8417_s21 = sadd.s32 4294967295, %s5651_s20   ;;  %s5651_s20 = sphi %s5741_s20, %s29_s20   ;;  %s5647_s19 = sphi %s5739_s19, %s9464_s19   ;;  %s5643_s18 = sphi %s5737_s18, %s9463_s18   ;;  %s5639_s0 = sphi %s5735_s0, %s9462_s0   ;;  %s5635_s17 = sphi %s5733_s17, %s9461_s17   ;;  %s5631_s16 = sphi %s5731_s16, %s9460_s16   ;;  %s5627_s15 = sphi %s5729_s15, %s9459_s15   ;;  %s5623_s14 = sphi %s5727_s14, %s9458_s14   ;;  %s5619_s13 = sphi %s5725_s13, %s9457_s13   ;;  %s5615_s12 = sphi %s5723_s12, %s9456_s12   ;;  %s5611_s11 = sphi %s5721_s11, %s9455_s11  }
  0x16   : > { %8739 = sst [smem:[#allocation15_spill]] %s5639_s0  ;;  %p202_p0 = scmp.ne.s32.totalorder %s5631_s16, %s5627_s15 }
  0x17   : > { %p203_p1 = scmp.eq.s32.totalorder %s5651_s20, 0  ;;  %p208_p2 = scmp.ne.s32.totalorder %s5627_s15, %s5623_s14 }
  0x18   : > { %p5783_p3 = scmp.eq.s32.totalorder %s8417_s21, 0  ;;  %p4779_p5 = scmp.lt.s32.totalorder %s5651_s20, 8 }
  0x19   : > { %p204_p4 = por %p203_p1, %p202_p0  ;;  %s309_s26 = sand.u32 1, %s5631_s16  }
  0x1a   : > { %p5792_p6 = por %p5783_p3, %p208_p2  ;;  %s4516_s27 = sshll.u32 %s309_s26, 9 }
  0x1b   : > { %s4723_s28 = sshll.u32 %s5647_s19, 13  ;;  %s8742_s7 = sld [smem:[#allocation279_spill]] }
  0x1c   : > { %s313_s14 = scalar_lea.vmem [#allocation5], %s4516_s27  ;;  %p5803_p7 = pnand %p4779_p5, %p204_p4 }
  0x1d   : > { %s320_s23 = sshll.u32 %s313_s14, 4  ;;  %p4523_p8 = scmp.ge.s32.totalorder %s5651_s20, 1  ;;  %s321_s23 = int_to_ptr.vmem [resolvable:$true] %s320_s23 }
  0x1e   : > { %s310_s22 = scalar_lea.sflag [#allocation6], %s309_s26  ;;  %p5473_p9 = pneg %p5803_p7 }
  0x1f   : > { %s5484_s9 = scalar_lea.vmem %s321_s23, 8192  ;;  %s5653_s0 = smov [#allocation5]  }
  0x20   : > { %p5485_p10 = scmp.ne.s32.totalorder %s321_s23, %s5484_s9  ;;  %s5489_s29 = sshll.u32 %s5653_s0, 4  ;;  %s5490_s29 = int_to_ptr.vmem [resolvable:$false] %s5489_s29 }
  0x21   : > { %s319_s10 = scalar_lea.hbm %s8742_s7, %s4723_s28  ;;  %s5491_s27 = scalar_lea.vmem %s5490_s29, 16384 }
  0x22   : > { %p5487_p11 = pnand %p5485_p10, %p5473_p9  ;;  %p5492_p13 = scmp.lt.s32.totalorder %s321_s23, %s5490_s29 }
  0x23   : > { %p5493_p0 = scmp.lt.s32.totalorder %s5491_s27, %s5484_s9 }
  0x24   : > { %p5488_p12 = pneg %p5487_p11 }
  0x25   : > { %p5494_p2 = por %p5493_p0, %p5492_p13 }
  0x27   : > { %p5495_p4 = pnand %p5494_p2, %p5488_p12 }
  0x29   : > { %5498 = shalt.err (!%p5495_p4)
}
  0x2a   : > { %s8419_s28 = smov 1024   ;;  %s5655_s9 = smov 64  }
  0x2b   : > { %4771 = dma.hbm_to_vmem [thread:$0]  (!%p5803_p7), %s319_s10, 8192, %s321_s23, %s310_s22, %s8419_s28, %s8419_s28, %s5655_s9  }
  0x2c   : > { %p351_p9 = scmp.lt.s32.totalorder %s5651_s20, 9  ;;  %s4513_s26 = sadd.s32 4294967294, %s5651_s20  }
  0x2d   : > { %s38_s30 = sadd.s32 1, %s5643_s18  ;;  %s223_s14 = sadd.s32 1, %s5619_s13 }
  0x2e   : > { %p5817_p10 = pnand %p4523_p8, %p351_p9  ;;  %p39_p11 = scmp.ge.s32.totalorder %s38_s30, 4 }
  0x2f   : > { %p230_p12 = scmp.ne.s32.totalorder %s5619_s13, %s5615_s12  ;;  %p236_p13 = scmp.ne.s32.totalorder %s5615_s12, %s5611_s11 }
  0x30   : > { %s9466_s30 = smov (%p39_p11, %s38_s30), 0  ;;  %s8746_s21 = sadd.s32 1, %s5647_s19 }
  0x31   : > { %8745 = sst [smem:[#allocation16_spill]] %s9466_s30  ;;  %s9468_s21 = smov (!%p39_p11, %s8746_s21), %s5647_s19 }
  0x32   : > { %s219_s22 = ssub.s32 %s5643_s18, %s9466_s30  ;;  %p5837_p7 = por %p230_p12, %p203_p1 }
  0x33   : > { %p43_p8 = scmp.ge.s32.totalorder %s9468_s21, 2  ;;  %p5843_p0 = por %p236_p13, %p5783_p3 }
  0x34   : > { %s8749_s29 = sadd.s32 4294967295, %s5651_s20   ;;  %p268_p4 = scmp.eq.s32.totalorder %s4513_s26, 7 }
  0x35   : > { %p262_p2 = scmp.eq.s32.totalorder %s8749_s29, 7  ;;  %s9470_s21 = smov (%p43_p8, %s9468_s21), 0 }
  0x36   : > { %8750 = sst [smem:[#allocation17_spill]] %s9470_s21  ;;  %p5855_p1 = por %p268_p4, %p236_p13 }
  0x37   : > { %p5851_p9 = por %p262_p2, %p230_p12  ;;  %s192_s24 = ssub.s32 %s5647_s19, %s9470_s21 }
  0x38   : > { %s8753_s9 = scalar_select %p5855_p1, 1, 0 }
  0x39   : > { %s8751_s27 = scalar_select %p5851_p9, 1, 0 }
  0x3a   : > { %8754 = sst [smem:[#allocation19_spill]] %s8753_s9  ;;  %s330_s28 = sand.u32 1, %s5619_s13  }
  0x3b   : > { %8752 = sst [smem:[#allocation18_spill]] %s8751_s27  ;;  %p193_p3 = scmp.eq.s32.totalorder %s192_s24, 0 }
  0x3c   : > { %s220_s7 = sor.u32 %s219_s22, %s192_s24  ;;  %s8755_s29 = sadd.s32 1, %s5631_s16 }
  0x3d   : > { %p221_p11 = scmp.eq.s32.totalorder %s220_s7, 0  ;;  %s4519_s11 = sshll.u32 %s330_s28, 7 }
  0x3e   : > { %s5865_s26 = scalar_select %p193_p3, %s5631_s16, %s8755_s29  }
  0x3f   : > { %s5868_s30 = scalar_select %p221_p11, %s5619_s13, %s223_s14  }
  0x40   : > { %s4520_s1 = sshll.u32 %s5643_s18, 1  ;;  %s4521_s2 = sshll.u32 %s5647_s19, 6 }
  0x41   : > { %s340_s27 = sadd.s32 %s4521_s2, %s4520_s1  ;;  %s334_s6 = scalar_lea.vmem [#allocation8], %s4519_s11 }
  0x42   : > { %s343_s4 = sshll.u32 %s334_s6, 4  ;;  %s4522_s5 = sshll.u32 %s340_s27, 7  ;;  %s344_s4 = int_to_ptr.vmem [resolvable:$true] %s343_s4 }
  0x43   : > { %s342_s3 = scalar_lea.hbm %s8415_s8, %s4522_s5  ;;  %p5879_p12 = pnand %p4779_p5, %p5837_p7 }
  0x44   : > { %s331_s14 = scalar_lea.sflag [#allocation9], %s330_s28  ;;  %s5512_s22 = scalar_lea.vmem %s344_s4, 2048 }
  0x45   : > { %p5501_p13 = pneg %p5879_p12  ;;  %p5513_p8 = scmp.ne.s32.totalorder %s344_s4, %s5512_s22 }
  0x46   : > { %s5656_s1 = smov [#allocation8]  }
  0x47   : > { %p5515_p2 = pnand %p5513_p8, %p5501_p13  ;;  %s5517_s2 = sshll.u32 %s5656_s1, 4  ;;  %s5518_s2 = int_to_ptr.vmem [resolvable:$false] %s5517_s2 }
  0x48   : > { %s5519_s6 = scalar_lea.vmem %s5518_s2, 4096  ;;  %p5520_p3 = scmp.lt.s32.totalorder %s344_s4, %s5518_s2 }
  0x49   : > { %p5516_p4 = pneg %p5515_p2  ;;  %p5521_p11 = scmp.lt.s32.totalorder %s5519_s6, %s5512_s22 }
  0x4b   : > { %p5522_p1 = por %p5521_p11, %p5520_p3 }
  0x4d   : > { %p5523_p9 = pnand %p5522_p1, %p5516_p4 }
  0x4f   : > { %5526 = shalt.err (!%p5523_p9)
}
  0x50   : > { %s5657_s5 = smov 256   ;;  %s5658_s11 = smov 16  }
  0x51   : > { %s8757_s28 = smov 1024   ;;  %355 = sbr.rel (%p5817_p10) target bundleno = 1848 (0x738), region = 56 }
  0x52   : > { %4774 = dma.hbm_to_vmem [thread:$0]  (!%p5879_p12), %s342_s3, 2048, %s344_s4, %s331_s14, %s8757_s28, %s5657_s5, %s5658_s11  }
  0x56   : > { %s357_s21 = sand.u32 1, %s5627_s15  }
  0x57   : > { %s4524_s23 = sshll.u32 %s357_s21, 9  ;;  %s358_s27 = scalar_lea.sflag [#allocation6], %s357_s21 }
  0x58   : > { %s5891_s9 = scalar_lea.vmem [#allocation5], %s4524_s23 }
  0x59   : > { %5598 = dma.done.wait (%p5792_p6), %s358_s27, 8192  }
  0x5a   : > { %5600 = vsyncadd (%p5792_p6), %s358_s27, 4294959104  ;;  %s5898_s24 = sand.u32 1, %s5615_s12  }
  0x5b   : > { %s4525_s3 = sshll.u32 %s5898_s24, 7  ;;  %s367_s4 = scalar_lea.sflag [#allocation9], %s5898_s24 }
  0x5c   : > { %s5902_s0 = scalar_lea.vmem [#allocation8], %s4525_s3 }
  0x5d   : > { %5602 = dma.done.wait (%p5843_p0), %s367_s4, 2048  }
  0x5e   : > { %5604 = vsyncadd (%p5843_p0), %s367_s4, 4294965248  ;;  %s5908_s29 = scalar_lea.vmem [#allocation10], %s4525_s3  ;;  %p4527_p5 = scmp.ne.s32.totalorder %s5635_s17, 0 }
  0x60   : > { %417 = sbr.rel (%p4527_p5) target bundleno = 415 (0x19f), region = 68 }
  0x65   : > { %v5912_v0 = vld [vmem:[%s5891_s9 + $0x1c8] sm:$0xff]  ;;  %v5915_v1 = vld [vmem:[%s5891_s9 + $0x1d8] sm:$0xff]  ;;  %v5918_v2 = vld [vmem:[%s5891_s9 + $0x1c0] sm:$0xff]  ;;  %s8758_s7 = sld [smem:[#allocation275_spill]]  ;;  %vm489_vm0 = vcmask 523264   ;;  %v8429_v33 = vmov 0.0  }
  0x66   : > { %509 = vmatprep.subr.mxu0 %v5912_v0  ;;  %580 = vmatprep.subr.mxu1 %v5915_v1  ;;  %v5923_v3 = vld [vmem:[%s5891_s9 + $0x1d0] sm:$0xff]  ;;  %v5926_v4 = vld [vmem:[%s5891_s9 + $0x188] sm:$0xff]  ;;  %v5929_v5 = vld [vmem:[%s5891_s9 + $0x198] sm:$0xff]  ;;  %s8762_s1 = sld [smem:[#allocation277_spill]] }
  0x67   : > { %510 = vmatpush1.msra.mxu0 %v5918_v2  ;;  %581 = vmatpush1.msra.mxu1 %v5923_v3  ;;  %v5934_v6 = vld [vmem:[%s5891_s9 + $0x180] sm:$0xff]  ;;  %v5937_v7 = vld [vmem:[%s5891_s9 + $0x190] sm:$0xff]  ;;  %v5940_v8 = vld [vmem:[%s5891_s9 + $0x148] sm:$0xff]  ;;  %s8765_s2 = sld [smem:[#allocation276_spill]] }
  0x68   : > { %511 = vmatprep.subr.mxu0 %v5926_v4  ;;  %582 = vmatprep.subr.mxu1 %v5929_v5  ;;  %v5945_v9 = vld [vmem:[%s5891_s9 + $0x158] sm:$0xff]  ;;  %v5948_v10 = vld [vmem:[%s5891_s9 + $0x140] sm:$0xff]  ;;  %v5951_v11 = vld [vmem:[%s5891_s9 + $0x150] sm:$0xff]  ;;  %s8766_s11 = sld [smem:[#allocation278_spill]] }
  0x69   : > { %512 = vmatpush1.msra.mxu0 %v5934_v6  ;;  %583 = vmatpush1.msra.mxu1 %v5937_v7  ;;  %v5956_v12 = vld [vmem:[%s5891_s9 + $0x108] sm:$0xff]  ;;  %v5959_v13 = vld [vmem:[%s5891_s9 + $0x118] sm:$0xff]  ;;  %v5964_v14 = vld [vmem:[%s5891_s9 + $0x100] sm:$0xff] }
  0x6a   : > { %513 = vmatprep.subr.mxu0 %v5940_v8  ;;  %584 = vmatprep.subr.mxu1 %v5945_v9  ;;  %v5967_v15 = vld [vmem:[%s5891_s9 + $0x110] sm:$0xff]  ;;  %v5972_v16 = vld [vmem:[%s5891_s9 + $0xc8] sm:$0xff]  ;;  %v5975_v17 = vld [vmem:[%s5891_s9 + $0xd8] sm:$0xff] }
  0x6b   : > { %514 = vmatpush1.msra.mxu0 %v5948_v10  ;;  %585 = vmatpush1.msra.mxu1 %v5951_v11  ;;  %v5980_v18 = vld [vmem:[%s5891_s9 + $0xc0] sm:$0xff]  ;;  %v5983_v19 = vld [vmem:[%s5891_s9 + $0xd0] sm:$0xff]  ;;  %v5988_v20 = vld [vmem:[%s5891_s9 + $0x88] sm:$0xff] }
  0x6c   : > { %515 = vmatprep.subr.mxu0 %v5956_v12  ;;  %586 = vmatprep.subr.mxu1 %v5959_v13  ;;  %v5991_v21 = vld [vmem:[%s5891_s9 + $0x98] sm:$0xff]  ;;  %v5996_v22 = vld [vmem:[%s5891_s9 + $0x80] sm:$0xff]  ;;  %v5999_v23 = vld [vmem:[%s5891_s9 + $0x90] sm:$0xff] }
  0x6d   : > { %516 = vmatpush1.msra.mxu0 %v5964_v14  ;;  %587 = vmatpush1.msra.mxu1 %v5967_v15  ;;  %v6004_v24 = vld [vmem:[%s5891_s9 + $0x48] sm:$0xff]  ;;  %v6007_v25 = vld [vmem:[%s5891_s9 + $0x58] sm:$0xff]  ;;  %v6012_v26 = vld [vmem:[%s5891_s9 + $0x40] sm:$0xff] }
  0x6e   : > { %517 = vmatprep.subr.mxu0 %v5972_v16  ;;  %588 = vmatprep.subr.mxu1 %v5975_v17  ;;  %v6015_v27 = vld [vmem:[%s5891_s9 + $0x50] sm:$0xff]  ;;  %v6020_v28 = vld [vmem:[%s5891_s9 + $0x8] sm:$0xff]  ;;  %v6023_v29 = vld [vmem:[%s5891_s9 + $0x18] sm:$0xff]  ;;  %s8767_s28 = smov %s8766_s11 }
  0x6f   : > { %518 = vmatpush1.msra.mxu0 %v5980_v18  ;;  %589 = vmatpush1.msra.mxu1 %v5983_v19  ;;  %v6028_v30 = vld [vmem:[%s5891_s9] sm:$0xff]  ;;  %v6033_v31 = vld [vmem:[%s5891_s9 + $0x10] sm:$0xff]  ;;  %v6045_v34 = vld [vmem:[%s5891_s9 + $0x1e8] sm:$0xff] }
  0x70   : > { %519 = vmatprep.subr.mxu0 %v5988_v20  ;;  %590 = vmatprep.subr.mxu1 %v5991_v21  ;;  %v6040_v32 = vld [vmem:[%s8758_s7] sm:$0xff]  ;;  %v6048_v35 = vld [vmem:[%s5891_s9 + $0x1f8] sm:$0xff]  ;;  %v6056_v37 = vld [vmem:[%s5891_s9 + $0x1f0] sm:$0xff] }
  0x71   : > { %520 = vmatpush1.msra.mxu0 %v5996_v22  ;;  %591 = vmatpush1.msra.mxu1 %v5999_v23  ;;  %v6053_v36 = vld [vmem:[%s5891_s9 + $0x1e0] sm:$0xff]  ;;  %v6063_v38 = vld [vmem:[%s5891_s9 + $0x1a8] sm:$0xff]  ;;  %v6066_v39 = vld [vmem:[%s5891_s9 + $0x1b8] sm:$0xff] }
  0x72   : > { %521 = vmatprep.subr.mxu0 %v6004_v24  ;;  %592 = vmatprep.subr.mxu1 %v6007_v25  ;;  %v6071_v40 = vld [vmem:[%s5891_s9 + $0x1a0] sm:$0xff]  ;;  %v6074_v41 = vld [vmem:[%s5891_s9 + $0x1b0] sm:$0xff]  ;;  %v6079_v42 = vld [vmem:[%s5891_s9 + $0x168] sm:$0xff] }
  0x73   : > { %522 = vmatpush1.msra.mxu0 %v6012_v26  ;;  %593 = vmatpush1.msra.mxu1 %v6015_v27  ;;  %v6082_v43 = vld [vmem:[%s5891_s9 + $0x178] sm:$0xff]  ;;  %v6087_v44 = vld [vmem:[%s5891_s9 + $0x160] sm:$0xff]  ;;  %v6090_v45 = vld [vmem:[%s5891_s9 + $0x170] sm:$0xff] }
  0x74   : > { %523 = vmatprep.subr.mxu0 %v6020_v28  ;;  %594 = vmatprep.subr.mxu1 %v6023_v29  ;;  %v6095_v46 = vld [vmem:[%s5891_s9 + $0x128] sm:$0xff]  ;;  %v6098_v47 = vld [vmem:[%s5891_s9 + $0x138] sm:$0xff]  ;;  %v6103_v48 = vld [vmem:[%s5891_s9 + $0x120] sm:$0xff] }
  0x75   : > { %524 = vmatpush1.msra.mxu0 %v6028_v30  ;;  %557 = vmatprep.mubr.f32.mxu0 %v8429_v33  ;;  %v6106_v49 = vld [vmem:[%s5891_s9 + $0x130] sm:$0xff]  ;;  %v6111_v50 = vld [vmem:[%s5891_s9 + $0xe8] sm:$0xff]  ;;  %v6114_v51 = vld [vmem:[%s5891_s9 + $0xf8] sm:$0xff] }
  0x76   : > { %595 = vmatpush1.msra.mxu1 %v6033_v31  ;;  %628 = vmatprep.mubr.f32.mxu1 %v8429_v33  ;;  %v6119_v52 = vld [vmem:[%s5891_s9 + $0xe0] sm:$0xff]  ;;  %v6122_v53 = vld [vmem:[%s5891_s9 + $0xf0] sm:$0xff]  ;;  %v6127_v54 = vld [vmem:[%s5891_s9 + $0xa8] sm:$0xff] }
  0x77   : > { %4528 = vmatmul.mubr.msk.f32.vlgmr.msra.gmra.mxu0 %vm489_vm0, %v6040_v32  ;;  %4529 = vmatmul.mubr.msk.f32.vlgmr.msra.gmra.mxu1 %vm489_vm0, %v6040_v32  ;;  %v6130_v55 = vld [vmem:[%s5891_s9 + $0xb8] sm:$0xff]  ;;  %v6135_v56 = vld [vmem:[%s5891_s9 + $0xa0] sm:$0xff]  ;;  %v6138_v57 = vld [vmem:[%s5891_s9 + $0xb0] sm:$0xff] }
  0x78   : > { %651 = vmatprep.subr.mxu0 %v6045_v34  ;;  %722 = vmatprep.subr.mxu1 %v6048_v35  ;;  %8759 = vst [vmem:[#allocation20_spill] sm:$0xff] %v6130_v55  ;;  %8760 = vst [vmem:[#allocation21_spill] sm:$0xff] %v6138_v57  ;;  %v6143_v58 = vld [vmem:[%s5891_s9 + $0x68] sm:$0xff]  ;;  %v6146_v59 = vld [vmem:[%s5891_s9 + $0x78] sm:$0xff] }
  0x79   : > { %652 = vmatpush1.msra.mxu0 %v6053_v36  ;;  %723 = vmatpush1.msra.mxu1 %v6056_v37  ;;  %v6151_v60 = vld [vmem:[%s5891_s9 + $0x60] sm:$0xff]  ;;  %v6154_v61 = vld [vmem:[%s5891_s9 + $0x70] sm:$0xff]  ;;  %v6159_v62 = vld [vmem:[%s5891_s9 + $0x28] sm:$0xff] }
  0x7a   : > { %653 = vmatprep.subr.mxu0 %v6063_v38  ;;  %724 = vmatprep.subr.mxu1 %v6066_v39  ;;  %v6162_v63 = vld [vmem:[%s5891_s9 + $0x38] sm:$0xff]  ;;  %v6167_v33 = vld [vmem:[%s5891_s9 + $0x20] sm:$0xff] }
  0x7b   : > { %654 = vmatpush1.msra.mxu0 %v6071_v40  ;;  %725 = vmatpush1.msra.mxu1 %v6074_v41 }
  0x7c   : > { %655 = vmatprep.subr.mxu0 %v6079_v42  ;;  %726 = vmatprep.subr.mxu1 %v6082_v43 }
  0x7d   : > { %656 = vmatpush1.msra.mxu0 %v6087_v44  ;;  %727 = vmatpush1.msra.mxu1 %v6090_v45 }
  0x7e   : > { %657 = vmatprep.subr.mxu0 %v6095_v46  ;;  %728 = vmatprep.subr.mxu1 %v6098_v47 }
  0x7f   : > { %658 = vmatpush1.msra.mxu0 %v6103_v48  ;;  %729 = vmatpush1.msra.mxu1 %v6106_v49 }
  0x80   : > { %659 = vmatprep.subr.mxu0 %v6111_v50  ;;  %730 = vmatprep.subr.mxu1 %v6114_v51 }
  0x81   : > { %660 = vmatpush1.msra.mxu0 %v6119_v52  ;;  %731 = vmatpush1.msra.mxu1 %v6122_v53 }
  0x82   : > { %661 = vmatprep.subr.mxu0 %v6127_v54  ;;  %732 = vmatprep.subr.mxu1 %v6130_v55  ;;  %v6172_v55 = vld [vmem:[%s5891_s9 + $0x30] sm:$0xff] }
  0x83   : > { %662 = vmatpush1.msra.mxu0 %v6135_v56  ;;  %733 = vmatpush1.msra.mxu1 %v6138_v57  ;;  %v8761_v57 = vmov 0.0  }
  0x84   : > { %663 = vmatprep.subr.mxu0 %v6143_v58  ;;  %734 = vmatprep.subr.mxu1 %v6146_v59 }
  0x85   : > { %664 = vmatpush1.msra.mxu0 %v6151_v60  ;;  %735 = vmatpush1.msra.mxu1 %v6154_v61 }
  0x86   : > { %665 = vmatprep.subr.mxu0 %v6159_v62  ;;  %736 = vmatprep.subr.mxu1 %v6162_v63 }
  0x87   : > { %666 = vmatpush1.msra.mxu0 %v6167_v33  ;;  %699 = vmatprep.mubr.f32.mxu0 %v8761_v57 }
  0x88   : > { %737 = vmatpush1.msra.mxu1 %v6172_v55  ;;  %770 = vmatprep.mubr.f32.mxu1 %v8761_v57 }
  0x89   : > { %4530 = vmatmul.mubr.msk.f32.vlgmr.msra.gmra.mxu0 %vm489_vm0, %v6040_v32  ;;  %4531 = vmatmul.mubr.msk.f32.vlgmr.msra.gmra.mxu1 %vm489_vm0, %v6040_v32 }
  0x8a   : > { %873 = vmatprep.subr.mxu0 %v5912_v0  ;;  %986 = vmatprep.subr.mxu1 %v5915_v1  ;;  %v6217_v0 = vld [vmem:[%s8762_s1] sm:$0xff]  ;;  %v6232_v1 = vld [vmem:[%s8762_s1 + $0x8] sm:$0xff] }
  0x8b   : > { %874 = vmatpush1.msra.mxu0 %v5918_v2  ;;  %987 = vmatpush1.msra.mxu1 %v5923_v3  ;;  %v6247_v2 = vld [vmem:[%s8762_s1 + $0x10] sm:$0xff]  ;;  %v6262_v3 = vld [vmem:[%s8762_s1 + $0x18] sm:$0xff] }
  0x8c   : > { %875 = vmatprep.subr.mxu0 %v5926_v4  ;;  %988 = vmatprep.subr.mxu1 %v5929_v5  ;;  %v6277_v4 = vld [vmem:[%s8762_s1 + $0x20] sm:$0xff]  ;;  %v6292_v5 = vld [vmem:[%s8762_s1 + $0x28] sm:$0xff] }
  0x8d   : > { %876 = vmatpush1.msra.mxu0 %v5934_v6  ;;  %989 = vmatpush1.msra.mxu1 %v5937_v7  ;;  %v8763_v6 = vld [vmem:[#allocation20_spill] sm:$0xff]  ;;  %v6307_v7 = vld [vmem:[%s8762_s1 + $0x30] sm:$0xff] }
  0x8e   : > { %877 = vmatprep.subr.mxu0 %v5940_v8  ;;  %990 = vmatprep.subr.mxu1 %v5945_v9  ;;  %v8764_v8 = vld [vmem:[#allocation21_spill] sm:$0xff]  ;;  %v6322_v9 = vld [vmem:[%s8762_s1 + $0x38] sm:$0xff] }
  0x8f   : > { %878 = vmatpush1.msra.mxu0 %v5948_v10  ;;  %991 = vmatpush1.msra.mxu1 %v5951_v11  ;;  %v483_v10 = vld [vmem:[%s8765_s2] sm:$0xff]  ;;  %v786_v11 = vld [vmem:[%s8766_s11 + $0x8] sm:$0xff] }
  0x90   : > { %879 = vmatprep.subr.mxu0 %v5956_v12  ;;  %992 = vmatprep.subr.mxu1 %v5959_v13  ;;  %v5660_v12 = vmov 0   ;;  %v785_v13 = vld [vmem:[%s8767_s28] sm:$0xff] }
  0x91   : > { %880 = vmatpush1.msra.mxu0 %v5964_v14  ;;  %993 = vmatpush1.msra.mxu1 %v5967_v15  ;;  %v787_v14 = vld [vmem:[%s8767_s28 + $0x10] sm:$0xff]  ;;  %v788_v15 = vld [vmem:[%s8767_s28 + $0x18] sm:$0xff] }
  0x92   : > { %881 = vmatprep.subr.mxu0 %v5972_v16  ;;  %994 = vmatprep.subr.mxu1 %v5975_v17  ;;  %v789_v16 = vld [vmem:[%s8767_s28 + $0x20] sm:$0xff]  ;;  %v790_v17 = vld [vmem:[%s8767_s28 + $0x28] sm:$0xff] }
  0x93   : > { %882 = vmatpush1.msra.mxu0 %v5980_v18  ;;  %995 = vmatpush1.msra.mxu1 %v5983_v19  ;;  %v791_v18 = vld [vmem:[%s8767_s28 + $0x30] sm:$0xff]  ;;  %v792_v19 = vld [vmem:[%s8767_s28 + $0x38] sm:$0xff] }
  0x94   : > { %883 = vmatprep.subr.mxu0 %v5988_v20  ;;  %996 = vmatprep.subr.mxu1 %v5991_v21  ;;  %v5661_v20 = vmov 1065369472  }
  0x95   : > { %884 = vmatpush1.msra.mxu0 %v5996_v22  ;;  %997 = vmatpush1.msra.mxu1 %v5999_v23  ;;  %1569 = vst [vmem:[#allocation3 + $0x8] sm:$0xff] %v5661_v20  ;;  %1570 = vst [vmem:[#allocation3 + $0x48] sm:$0xff] %v5661_v20 }
  0x96   : > { %885 = vmatprep.subr.mxu0 %v6004_v24  ;;  %998 = vmatprep.subr.mxu1 %v6007_v25  ;;  %1571 = vst [vmem:[#allocation3 + $0x108] sm:$0xff] %v5661_v20  ;;  %1572 = vst [vmem:[#allocation3 + $0xa8] sm:$0xff] %v5661_v20 }
  0x97   : > { %886 = vmatpush1.msra.mxu0 %v6012_v26  ;;  %999 = vmatpush1.msra.mxu1 %v6015_v27 }
  0x98   : > { %887 = vmatprep.subr.mxu0 %v6020_v28  ;;  %1000 = vmatprep.subr.mxu1 %v6023_v29 }
  0x99   : > { %888 = vmatpush1.msra.mxu0 %v6028_v30  ;;  %921 = vmatprep.mubr.f32.mxu0 %v8761_v57 }
  0x9a   : > { %1001 = vmatpush1.msra.mxu1 %v6033_v31  ;;  %1034 = vmatprep.mubr.f32.mxu1 %v8761_v57 }
  0x9b   : > { %4532 = vmatmul.mubr.msk.f32.vlgmr.msra.gmra.mxu0 %vm489_vm0, %v6217_v0  ;;  %4540 = vmatmul.mubr.msk.f32.vlgmr.msra.gmra.mxu1 %vm489_vm0, %v6217_v0 }
  0x9c   : > { %1099 = vmatprep.subr.mxu0 %v6045_v34  ;;  %1212 = vmatprep.subr.mxu1 %v6048_v35 }
  0x9d   : > { %1100 = vmatpush1.msra.mxu0 %v6053_v36  ;;  %1213 = vmatpush1.msra.mxu1 %v6056_v37 }
  0x9e   : > { %927 = vmatprep.mubr.f32.mxu0 %v8761_v57  ;;  %1040 = vmatprep.mubr.f32.mxu1 %v8761_v57 }
  0x9f   : > { %4533 = vmatmul.mubr.msk.f32.gmra.mxu0 %vm489_vm0, %v6232_v1  ;;  %4541 = vmatmul.mubr.msk.f32.gmra.mxu1 %vm489_vm0, %v6232_v1 }
  0xa0   : > { %1101 = vmatprep.subr.mxu0 %v6063_v38  ;;  %1214 = vmatprep.subr.mxu1 %v6066_v39 }
  0xa1   : > { %1102 = vmatpush1.msra.mxu0 %v6071_v40  ;;  %1215 = vmatpush1.msra.mxu1 %v6074_v41 }
  0xa2   : > { %933 = vmatprep.mubr.f32.mxu0 %v8761_v57  ;;  %1046 = vmatprep.mubr.f32.mxu1 %v8761_v57 }
  0xa3   : > { %4534 = vmatmul.mubr.msk.f32.gmra.mxu0 %vm489_vm0, %v6247_v2  ;;  %4542 = vmatmul.mubr.msk.f32.gmra.mxu1 %vm489_vm0, %v6247_v2 }
  0xa4   : > { %1103 = vmatprep.subr.mxu0 %v6079_v42  ;;  %1216 = vmatprep.subr.mxu1 %v6082_v43 }
  0xa5   : > { %1104 = vmatpush1.msra.mxu0 %v6087_v44  ;;  %1217 = vmatpush1.msra.mxu1 %v6090_v45 }
  0xa6   : > { %939 = vmatprep.mubr.f32.mxu0 %v8761_v57  ;;  %1052 = vmatprep.mubr.f32.mxu1 %v8761_v57 }
  0xa7   : > { %4535 = vmatmul.mubr.msk.f32.gmra.mxu0 %vm489_vm0, %v6262_v3  ;;  %4543 = vmatmul.mubr.msk.f32.gmra.mxu1 %vm489_vm0, %v6262_v3 }
  0xa8   : > { %1105 = vmatprep.subr.mxu0 %v6095_v46  ;;  %1218 = vmatprep.subr.mxu1 %v6098_v47 }
  0xa9   : > { %1106 = vmatpush1.msra.mxu0 %v6103_v48  ;;  %1219 = vmatpush1.msra.mxu1 %v6106_v49 }
  0xaa   : > { %945 = vmatprep.mubr.f32.mxu0 %v8761_v57  ;;  %1058 = vmatprep.mubr.f32.mxu1 %v8761_v57 }
  0xab   : > { %4536 = vmatmul.mubr.msk.f32.gmra.mxu0 %vm489_vm0, %v6277_v4  ;;  %4544 = vmatmul.mubr.msk.f32.gmra.mxu1 %vm489_vm0, %v6277_v4 }
  0xac   : > { %1107 = vmatprep.subr.mxu0 %v6111_v50  ;;  %1220 = vmatprep.subr.mxu1 %v6114_v51 }
  0xad   : > { %1108 = vmatpush1.msra.mxu0 %v6119_v52  ;;  %1221 = vmatpush1.msra.mxu1 %v6122_v53 }
  0xae   : > { %951 = vmatprep.mubr.f32.mxu0 %v8761_v57  ;;  %1064 = vmatprep.mubr.f32.mxu1 %v8761_v57 }
  0xaf   : > { %4537 = vmatmul.mubr.msk.f32.gmra.mxu0 %vm489_vm0, %v6292_v5  ;;  %4545 = vmatmul.mubr.msk.f32.gmra.mxu1 %vm489_vm0, %v6292_v5 }
  0xb0   : > { %1109 = vmatprep.subr.mxu0 %v6127_v54  ;;  %1222 = vmatprep.subr.mxu1 %v8763_v6 }
  0xb1   : > { %1110 = vmatpush1.msra.mxu0 %v6135_v56  ;;  %1223 = vmatpush1.msra.mxu1 %v8764_v8 }
  0xb2   : > { %957 = vmatprep.mubr.f32.mxu0 %v8761_v57  ;;  %1070 = vmatprep.mubr.f32.mxu1 %v8761_v57 }
  0xb3   : > { %4538 = vmatmul.mubr.msk.f32.gmra.mxu0 %vm489_vm0, %v6307_v7  ;;  %4546 = vmatmul.mubr.msk.f32.gmra.mxu1 %vm489_vm0, %v6307_v7 }
  0xb4   : > { %1111 = vmatprep.subr.mxu0 %v6143_v58  ;;  %1224 = vmatprep.subr.mxu1 %v6146_v59 }
  0xb5   : > { %1112 = vmatpush1.msra.mxu0 %v6151_v60  ;;  %1225 = vmatpush1.msra.mxu1 %v6154_v61 }
  0xb6   : > { %963 = vmatprep.mubr.f32.mxu0 %v8761_v57  ;;  %1076 = vmatprep.mubr.f32.mxu1 %v8761_v57 }
  0xb7   : > { %4539 = vmatmul.mubr.msk.f32.gmra.mxu0 %vm489_vm0, %v6322_v9  ;;  %4547 = vmatmul.mubr.msk.f32.gmra.mxu1 %vm489_vm0, %v6322_v9 }
  0xb8   : > { %1113 = vmatprep.subr.mxu0 %v6159_v62  ;;  %1226 = vmatprep.subr.mxu1 %v6162_v63 }
  0xb9   : > { %1114 = vmatpush1.msra.mxu0 %v6167_v33  ;;  %1227 = vmatpush1.msra.mxu1 %v6172_v55 }
  0xba   : > { %1147 = vmatprep.mubr.f32.mxu0 %v8761_v57  ;;  %1260 = vmatprep.mubr.f32.mxu1 %v8761_v57 }
  0xbb   : > { %4548 = vmatmul.mubr.msk.f32.vlgmr.msra.gmra.mxu0 %vm489_vm0, %v6217_v0  ;;  %4556 = vmatmul.mubr.msk.f32.vlgmr.msra.gmra.mxu1 %vm489_vm0, %v6217_v0 }
  0xbc   : > { %1153 = vmatprep.mubr.f32.mxu0 %v8761_v57  ;;  %1266 = vmatprep.mubr.f32.mxu1 %v8761_v57 }
  0xbd   : > { %4881 = vset.pattern.permute.xlu0 %v5660_v12  ;;  %4882 = vset.pattern.permute.xlu1 %v5660_v12 }
  0xbe   : > { %486 = vperm.xlu0 %4881, %v483_v10   ;;  %800 = vperm.xlu1 %4882, %v786_v11  }
  0xbf   : > { %4549 = vmatmul.mubr.msk.f32.gmra.mxu0 %vm489_vm0, %v6232_v1  ;;  %4557 = vmatmul.mubr.msk.f32.gmra.mxu1 %vm489_vm0, %v6232_v1 }
  0xc0   : > { %1159 = vmatprep.mubr.f32.mxu0 %v8761_v57  ;;  %1272 = vmatprep.mubr.f32.mxu1 %v8761_v57 }
  0xc2   : > { %795 = vperm.xlu0 %4881, %v785_v13   ;;  %805 = vperm.xlu1 %4882, %v787_v14  }
  0xc3   : > { %4550 = vmatmul.mubr.msk.f32.gmra.mxu0 %vm489_vm0, %v6247_v2  ;;  %4558 = vmatmul.mubr.msk.f32.gmra.mxu1 %vm489_vm0, %v6247_v2 }
  0xc4   : > { %1165 = vmatprep.mubr.f32.mxu0 %v8761_v57  ;;  %1278 = vmatprep.mubr.f32.mxu1 %v8761_v57 }
  0xc6   : > { %810 = vperm.xlu0 %4881, %v788_v15   ;;  %815 = vperm.xlu1 %4882, %v789_v16  }
  0xc7   : > { %4551 = vmatmul.mubr.msk.f32.gmra.mxu0 %vm489_vm0, %v6262_v3  ;;  %4559 = vmatmul.mubr.msk.f32.gmra.mxu1 %vm489_vm0, %v6262_v3 }
  0xc8   : > { %1171 = vmatprep.mubr.f32.mxu0 %v8761_v57  ;;  %1284 = vmatprep.mubr.f32.mxu1 %v8761_v57 }
  0xca   : > { %820 = vperm.xlu0 %4881, %v790_v17   ;;  %825 = vperm.xlu1 %4882, %v791_v18  }
  0xcb   : > { %4552 = vmatmul.mubr.msk.f32.gmra.mxu0 %vm489_vm0, %v6277_v4  ;;  %4560 = vmatmul.mubr.msk.f32.gmra.mxu1 %vm489_vm0, %v6277_v4 }
  0xcc   : > { %1177 = vmatprep.mubr.f32.mxu0 %v8761_v57  ;;  %1290 = vmatprep.mubr.f32.mxu1 %v8761_v57 }
  0xce   : > { %830 = vperm.xlu0 %4881, %v792_v19  }
  0xcf   : > { %4553 = vmatmul.mubr.msk.f32.gmra.mxu0 %vm489_vm0, %v6292_v5  ;;  %4561 = vmatmul.mubr.msk.f32.gmra.mxu1 %vm489_vm0, %v6292_v5 }
  0xd0   : > { %1183 = vmatprep.mubr.f32.mxu0 %v8761_v57  ;;  %1296 = vmatprep.mubr.f32.mxu1 %v8761_v57 }
  0xd3   : > { %4554 = vmatmul.mubr.msk.f32.gmra.mxu0 %vm489_vm0, %v6307_v7  ;;  %4562 = vmatmul.mubr.msk.f32.gmra.mxu1 %vm489_vm0, %v6307_v7 }
  0xd4   : > { %1189 = vmatprep.mubr.f32.mxu0 %v8761_v57  ;;  %1302 = vmatprep.mubr.f32.mxu1 %v8761_v57 }
  0xd7   : > { %4555 = vmatmul.mubr.msk.f32.gmra.mxu0 %vm489_vm0, %v6322_v9  ;;  %4563 = vmatmul.mubr.msk.f32.gmra.mxu1 %vm489_vm0, %v6322_v9 }
 0x137   : > { %v559_v21 = vpop.f32.mrf.mxu0  ;;  %v630_v22 = vpop.f32.mrf.mxu1 }
 0x139   : > { %v487_v23 = vpop.permute.xlu0 %486  ;;  %v561_v24 = vpop.f32.mrf.mxu0 }
 0x13a   : > { %v560_v25 = vadd.f32 %v559_v21, %v487_v23  ;;  %v562_v26 = vadd.f32 %v561_v24, %v487_v23  ;;  %v631_v27 = vadd.f32 %v630_v22, %v487_v23  ;;  %v632_v28 = vpop.f32.mrf.mxu1  ;;  %v6413_v45 = vpop.permute.xlu1 %800 }
 0x13b   : > { %v633_v29 = vadd.f32 %v632_v28, %v487_v23 }
 0x13c   : > { %v4724_v30 = vpack.c.bf16 %v562_v26, %v560_v25 }
 0x13d   : > { %v4725_v31 = vpack.c.bf16 %v633_v29, %v631_v27  ;;  %v6411_v42 = vpop.permute.xlu0 %795 }
 0x13e   : > { %1341 = vst [vmem:[#allocation2 + $0x10] sm:$0xff] %v4724_v30  ;;  %v6423_v62 = vpop.permute.xlu1 %805 }
 0x13f   : > { %1342 = vst [vmem:[#allocation2] sm:$0xff] %v4725_v31 }
 0x141   : > { %v6429_v9 = vpop.permute.xlu0 %810 }
 0x142   : > { %v6435_v20 = vpop.permute.xlu1 %815 }
 0x145   : > { %v6441_v31 = vpop.permute.xlu0 %820 }
 0x149   : > { %v701_v32 = vpop.f32.mrf.mxu0  ;;  %v772_v33 = vpop.f32.mrf.mxu1 }
 0x14a   : > { %v702_v34 = vadd.f32 %v701_v32, %v487_v23  ;;  %v773_v35 = vadd.f32 %v772_v33, %v487_v23 }
 0x14b   : > { %v703_v36 = vpop.f32.mrf.mxu0  ;;  %v774_v37 = vpop.f32.mrf.mxu1 }
 0x14c   : > { %v704_v38 = vadd.f32 %v703_v36, %v487_v23  ;;  %v775_v39 = vadd.f32 %v774_v37, %v487_v23 }
 0x14e   : > { %v4726_v40 = vpack.c.bf16 %v704_v38, %v702_v34  ;;  %v4727_v41 = vpack.c.bf16 %v775_v39, %v773_v35 }
 0x150   : > { %1343 = vst [vmem:[#allocation2 + $0x18] sm:$0xff] %v4726_v40  ;;  %1344 = vst [vmem:[#allocation2 + $0x8] sm:$0xff] %v4727_v41 }
 0x15b   : > { %v923_v43 = vpop.f32.mrf.mxu0  ;;  %v1036_v44 = vpop.f32.mrf.mxu1 }
 0x15c   : > { %v924_v48 = vadd.f32 %v923_v43, %v6411_v42  ;;  %v1037_v50 = vadd.f32 %v1036_v44, %v6411_v42  ;;  %v6447_v43 = vpop.permute.xlu1 %825 }
 0x15d   : > { %v925_v46 = vpop.f32.mrf.mxu0  ;;  %v1038_v47 = vpop.f32.mrf.mxu1 }
 0x15e   : > { %v926_v49 = vadd.f32 %v925_v46, %v6411_v42  ;;  %v1039_v51 = vadd.f32 %v1038_v47, %v6411_v42 }
 0x15f   : > { %v929_v52 = vpop.f32.mrf.mxu0  ;;  %v1042_v53 = vpop.f32.mrf.mxu1 }
 0x160   : > { %v4728_v54 = vpack.c.bf16 %v926_v49, %v924_v48  ;;  %v4729_v55 = vpack.c.bf16 %v1039_v51, %v1037_v50  ;;  %v930_v58 = vadd.f32 %v929_v52, %v6413_v45  ;;  %v1043_v60 = vadd.f32 %v1042_v53, %v6413_v45 }
 0x161   : > { %v931_v56 = vpop.f32.mrf.mxu0  ;;  %v1044_v57 = vpop.f32.mrf.mxu1 }
 0x162   : > { %1537 = vst [vmem:[#allocation3] sm:$0xff] %v4728_v54  ;;  %1538 = vst [vmem:[#allocation3 + $0x38] sm:$0xff] %v4729_v55  ;;  %v932_v59 = vadd.f32 %v931_v56, %v6413_v45  ;;  %v1045_v61 = vadd.f32 %v1044_v57, %v6413_v45  ;;  %v6453_v55 = vpop.permute.xlu0 %830 }
 0x163   : > { %v935_v63 = vpop.f32.mrf.mxu0  ;;  %v1048_v0 = vpop.f32.mrf.mxu1 }
 0x164   : > { %v4732_v1 = vpack.c.bf16 %v932_v59, %v930_v58  ;;  %v4733_v2 = vpack.c.bf16 %v1045_v61, %v1043_v60  ;;  %v936_v5 = vadd.f32 %v935_v63, %v6423_v62  ;;  %v1049_v7 = vadd.f32 %v1048_v0, %v6423_v62 }
 0x165   : > { %v937_v3 = vpop.f32.mrf.mxu0  ;;  %v1050_v4 = vpop.f32.mrf.mxu1 }
 0x166   : > { %1541 = vst [vmem:[#allocation3 + $0x60] sm:$0xff] %v4732_v1  ;;  %1542 = vst [vmem:[#allocation3 + $0xf0] sm:$0xff] %v4733_v2  ;;  %v938_v6 = vadd.f32 %v937_v3, %v6423_v62  ;;  %v1051_v8 = vadd.f32 %v1050_v4, %v6423_v62 }
 0x167   : > { %v941_v10 = vpop.f32.mrf.mxu0  ;;  %v1054_v11 = vpop.f32.mrf.mxu1 }
 0x168   : > { %v4736_v12 = vpack.c.bf16 %v938_v6, %v936_v5  ;;  %v4737_v13 = vpack.c.bf16 %v1051_v8, %v1049_v7  ;;  %v942_v16 = vadd.f32 %v941_v10, %v6429_v9  ;;  %v1055_v18 = vadd.f32 %v1054_v11, %v6429_v9 }
 0x169   : > { %v943_v14 = vpop.f32.mrf.mxu0  ;;  %v1056_v15 = vpop.f32.mrf.mxu1 }
 0x16a   : > { %1545 = vst [vmem:[#allocation3 + $0x100] sm:$0xff] %v4736_v12  ;;  %1546 = vst [vmem:[#allocation3 + $0xe0] sm:$0xff] %v4737_v13  ;;  %v944_v17 = vadd.f32 %v943_v14, %v6429_v9  ;;  %v1057_v19 = vadd.f32 %v1056_v15, %v6429_v9 }
 0x16b   : > { %v947_v21 = vpop.f32.mrf.mxu0  ;;  %v1060_v22 = vpop.f32.mrf.mxu1 }
 0x16c   : > { %v4740_v23 = vpack.c.bf16 %v944_v17, %v942_v16  ;;  %v4741_v24 = vpack.c.bf16 %v1057_v19, %v1055_v18  ;;  %v948_v27 = vadd.f32 %v947_v21, %v6435_v20  ;;  %v1061_v29 = vadd.f32 %v1060_v22, %v6435_v20 }
 0x16d   : > { %v949_v25 = vpop.f32.mrf.mxu0  ;;  %v1062_v26 = vpop.f32.mrf.mxu1 }
 0x16e   : > { %1549 = vst [vmem:[#allocation3 + $0x20] sm:$0xff] %v4740_v23  ;;  %1550 = vst [vmem:[#allocation3 + $0x10] sm:$0xff] %v4741_v24  ;;  %v950_v28 = vadd.f32 %v949_v25, %v6435_v20  ;;  %v1063_v30 = vadd.f32 %v1062_v26, %v6435_v20 }
 0x16f   : > { %v953_v32 = vpop.f32.mrf.mxu0  ;;  %v1066_v33 = vpop.f32.mrf.mxu1 }
 0x170   : > { %v4744_v34 = vpack.c.bf16 %v950_v28, %v948_v27  ;;  %v4745_v35 = vpack.c.bf16 %v1063_v30, %v1061_v29  ;;  %v954_v38 = vadd.f32 %v953_v32, %v6441_v31  ;;  %v1067_v40 = vadd.f32 %v1066_v33, %v6441_v31 }
 0x171   : > { %v955_v36 = vpop.f32.mrf.mxu0  ;;  %v1068_v37 = vpop.f32.mrf.mxu1 }
 0x172   : > { %1553 = vst [vmem:[#allocation3 + $0xc0] sm:$0xff] %v4744_v34  ;;  %1554 = vst [vmem:[#allocation3 + $0x88] sm:$0xff] %v4745_v35  ;;  %v956_v39 = vadd.f32 %v955_v36, %v6441_v31  ;;  %v1069_v41 = vadd.f32 %v1068_v37, %v6441_v31 }
 0x173   : > { %v959_v44 = vpop.f32.mrf.mxu0  ;;  %v1072_v46 = vpop.f32.mrf.mxu1 }
 0x174   : > { %v4748_v47 = vpack.c.bf16 %v956_v39, %v954_v38  ;;  %v4749_v48 = vpack.c.bf16 %v1069_v41, %v1067_v40  ;;  %v960_v51 = vadd.f32 %v959_v44, %v6447_v43  ;;  %v1073_v53 = vadd.f32 %v1072_v46, %v6447_v43 }
 0x175   : > { %v961_v49 = vpop.f32.mrf.mxu0  ;;  %v1074_v50 = vpop.f32.mrf.mxu1 }
 0x176   : > { %1557 = vst [vmem:[#allocation3 + $0xd0] sm:$0xff] %v4748_v47  ;;  %1558 = vst [vmem:[#allocation3 + $0xe8] sm:$0xff] %v4749_v48  ;;  %v962_v52 = vadd.f32 %v961_v49, %v6447_v43  ;;  %v1075_v54 = vadd.f32 %v1074_v50, %v6447_v43 }
 0x177   : > { %v965_v56 = vpop.f32.mrf.mxu0  ;;  %v1078_v57 = vpop.f32.mrf.mxu1 }
 0x178   : > { %v4752_v58 = vpack.c.bf16 %v962_v52, %v960_v51  ;;  %v4753_v59 = vpack.c.bf16 %v1075_v54, %v1073_v53  ;;  %v966_v63 = vadd.f32 %v965_v56, %v6453_v55  ;;  %v1079_v1 = vadd.f32 %v1078_v57, %v6453_v55 }
 0x179   : > { %v967_v60 = vpop.f32.mrf.mxu0  ;;  %v1080_v61 = vpop.f32.mrf.mxu1 }
 0x17a   : > { %1561 = vst [vmem:[#allocation3 + $0xb0] sm:$0xff] %v4752_v58  ;;  %1562 = vst [vmem:[#allocation3 + $0x70] sm:$0xff] %v4753_v59  ;;  %v968_v0 = vadd.f32 %v967_v60, %v6453_v55  ;;  %v1081_v2 = vadd.f32 %v1080_v61, %v6453_v55 }
 0x17b   : > { %v1149_v3 = vpop.f32.mrf.mxu0  ;;  %v1262_v4 = vpop.f32.mrf.mxu1 }
 0x17c   : > { %v4756_v5 = vpack.c.bf16 %v968_v0, %v966_v63  ;;  %v4757_v6 = vpack.c.bf16 %v1081_v2, %v1079_v1  ;;  %v1150_v10 = vadd.f32 %v1149_v3, %v6411_v42  ;;  %v1263_v11 = vadd.f32 %v1262_v4, %v6411_v42 }
 0x17d   : > { %v1151_v7 = vpop.f32.mrf.mxu0  ;;  %v1264_v8 = vpop.f32.mrf.mxu1 }
 0x17e   : > { %1565 = vst [vmem:[#allocation3 + $0xc8] sm:$0xff] %v4756_v5  ;;  %1566 = vst [vmem:[#allocation3 + $0x18] sm:$0xff] %v4757_v6  ;;  %v1152_v12 = vadd.f32 %v1151_v7, %v6411_v42  ;;  %v1265_v13 = vadd.f32 %v1264_v8, %v6411_v42 }
 0x17f   : > { %v1155_v14 = vpop.f32.mrf.mxu0  ;;  %v1268_v15 = vpop.f32.mrf.mxu1 }
 0x180   : > { %v4730_v16 = vpack.c.bf16 %v1152_v12, %v1150_v10  ;;  %v4731_v17 = vpack.c.bf16 %v1265_v13, %v1263_v11  ;;  %v1156_v21 = vadd.f32 %v1155_v14, %v6413_v45  ;;  %v1269_v22 = vadd.f32 %v1268_v15, %v6413_v45 }
 0x181   : > { %v1157_v18 = vpop.f32.mrf.mxu0  ;;  %v1270_v19 = vpop.f32.mrf.mxu1 }
 0x182   : > { %1539 = vst [vmem:[#allocation3 + $0x110] sm:$0xff] %v4730_v16  ;;  %1540 = vst [vmem:[#allocation3 + $0x28] sm:$0xff] %v4731_v17  ;;  %v1158_v23 = vadd.f32 %v1157_v18, %v6413_v45  ;;  %v1271_v24 = vadd.f32 %v1270_v19, %v6413_v45 }
 0x183   : > { %v1161_v25 = vpop.f32.mrf.mxu0  ;;  %v1274_v26 = vpop.f32.mrf.mxu1 }
 0x184   : > { %v4734_v27 = vpack.c.bf16 %v1158_v23, %v1156_v21  ;;  %v4735_v42 = vpack.c.bf16 %v1271_v24, %v1269_v22  ;;  %v1162_v30 = vadd.f32 %v1161_v25, %v6423_v62  ;;  %v1275_v32 = vadd.f32 %v1274_v26, %v6423_v62 }
 0x185   : > { %v1163_v28 = vpop.f32.mrf.mxu0  ;;  %v1276_v29 = vpop.f32.mrf.mxu1 }
 0x186   : > { %1543 = vst [vmem:[#allocation3 + $0xf8] sm:$0xff] %v4734_v27  ;;  %1544 = vst [vmem:[#allocation3 + $0x78] sm:$0xff] %v4735_v42  ;;  %v1164_v33 = vadd.f32 %v1163_v28, %v6423_v62  ;;  %v1277_v34 = vadd.f32 %v1276_v29, %v6423_v62 }
 0x187   : > { %v1167_v35 = vpop.f32.mrf.mxu0  ;;  %v1280_v36 = vpop.f32.mrf.mxu1 }
 0x188   : > { %v4738_v37 = vpack.c.bf16 %v1164_v33, %v1162_v30  ;;  %v4739_v45 = vpack.c.bf16 %v1277_v34, %v1275_v32  ;;  %v1168_v40 = vadd.f32 %v1167_v35, %v6429_v9  ;;  %v1281_v41 = vadd.f32 %v1280_v36, %v6429_v9 }
 0x189   : > { %v1169_v38 = vpop.f32.mrf.mxu0  ;;  %v1282_v39 = vpop.f32.mrf.mxu1 }
 0x18a   : > { %1547 = vst [vmem:[#allocation3 + $0x30] sm:$0xff] %v4738_v37  ;;  %1548 = vst [vmem:[#allocation3 + $0xb8] sm:$0xff] %v4739_v45  ;;  %v1170_v44 = vadd.f32 %v1169_v38, %v6429_v9  ;;  %v1283_v46 = vadd.f32 %v1282_v39, %v6429_v9 }
 0x18b   : > { %v1173_v47 = vpop.f32.mrf.mxu0  ;;  %v1286_v48 = vpop.f32.mrf.mxu1 }
 0x18c   : > { %v4742_v49 = vpack.c.bf16 %v1170_v44, %v1168_v40  ;;  %v4743_v62 = vpack.c.bf16 %v1283_v46, %v1281_v41  ;;  %v1174_v52 = vadd.f32 %v1173_v47, %v6435_v20  ;;  %v1287_v53 = vadd.f32 %v1286_v48, %v6435_v20 }
 0x18d   : > { %v1175_v50 = vpop.f32.mrf.mxu0  ;;  %v1288_v51 = vpop.f32.mrf.mxu1 }
 0x18e   : > { %1551 = vst [vmem:[#allocation3 + $0x118] sm:$0xff] %v4742_v49  ;;  %1552 = vst [vmem:[#allocation3 + $0x40] sm:$0xff] %v4743_v62  ;;  %v1176_v54 = vadd.f32 %v1175_v50, %v6435_v20  ;;  %v1289_v56 = vadd.f32 %v1288_v51, %v6435_v20 }
 0x18f   : > { %v1179_v57 = vpop.f32.mrf.mxu0  ;;  %v1292_v58 = vpop.f32.mrf.mxu1 }
 0x190   : > { %v4746_v59 = vpack.c.bf16 %v1176_v54, %v1174_v52  ;;  %v4747_v9 = vpack.c.bf16 %v1289_v56, %v1287_v53  ;;  %v1180_v63 = vadd.f32 %v1179_v57, %v6441_v31  ;;  %v1293_v0 = vadd.f32 %v1292_v58, %v6441_v31 }
 0x191   : > { %v1181_v60 = vpop.f32.mrf.mxu0  ;;  %v1294_v61 = vpop.f32.mrf.mxu1 }
 0x192   : > { %1555 = vst [vmem:[#allocation3 + $0x98] sm:$0xff] %v4746_v59  ;;  %1556 = vst [vmem:[#allocation3 + $0x80] sm:$0xff] %v4747_v9  ;;  %v1182_v1 = vadd.f32 %v1181_v60, %v6441_v31  ;;  %v1295_v2 = vadd.f32 %v1294_v61, %v6441_v31 }
 0x193   : > { %v1185_v3 = vpop.f32.mrf.mxu0  ;;  %v1298_v4 = vpop.f32.mrf.mxu1 }
 0x194   : > { %v4750_v5 = vpack.c.bf16 %v1182_v1, %v1180_v63  ;;  %v4751_v20 = vpack.c.bf16 %v1295_v2, %v1293_v0  ;;  %v1186_v8 = vadd.f32 %v1185_v3, %v6447_v43  ;;  %v1299_v10 = vadd.f32 %v1298_v4, %v6447_v43 }
 0x195   : > { %v1187_v6 = vpop.f32.mrf.mxu0  ;;  %v1300_v7 = vpop.f32.mrf.mxu1 }
 0x196   : > { %1559 = vst [vmem:[#allocation3 + $0x90] sm:$0xff] %v4750_v5  ;;  %1560 = vst [vmem:[#allocation3 + $0x68] sm:$0xff] %v4751_v20  ;;  %v1188_v11 = vadd.f32 %v1187_v6, %v6447_v43  ;;  %v1301_v12 = vadd.f32 %v1300_v7, %v6447_v43 }
 0x197   : > { %v1191_v13 = vpop.f32.mrf.mxu0  ;;  %v1304_v14 = vpop.f32.mrf.mxu1 }
 0x198   : > { %v4754_v15 = vpack.c.bf16 %v1188_v11, %v1186_v8  ;;  %v4755_v31 = vpack.c.bf16 %v1301_v12, %v1299_v10  ;;  %v1192_v18 = vadd.f32 %v1191_v13, %v6453_v55  ;;  %v1305_v19 = vadd.f32 %v1304_v14, %v6453_v55 }
 0x199   : > { %v1193_v16 = vpop.f32.mrf.mxu0  ;;  %v1306_v17 = vpop.f32.mrf.mxu1 }
 0x19a   : > { %1563 = vst [vmem:[#allocation3 + $0xd8] sm:$0xff] %v4754_v15  ;;  %1564 = vst [vmem:[#allocation3 + $0xa0] sm:$0xff] %v4755_v31  ;;  %v1194_v21 = vadd.f32 %v1193_v16, %v6453_v55  ;;  %v1307_v22 = vadd.f32 %v1306_v17, %v6453_v55 }
 0x19c   : > { %v4758_v23 = vpack.c.bf16 %v1194_v21, %v1192_v18  ;;  %v4759_v24 = vpack.c.bf16 %v1307_v22, %v1305_v19 }
 0x19e   : > { %1567 = vst [vmem:[#allocation3 + $0x50] sm:$0xff] %v4758_v23  ;;  %1568 = vst [vmem:[#allocation3 + $0x58] sm:$0xff] %v4759_v24 }
 0x19f PF: > { %v1588_v43 = vld [vmem:[%s5902_s0 + $0x78] sm:$0xff]  ;;  %v1587_v25 = vld [vmem:[%s5902_s0 + $0x70] sm:$0xff]  ;;  %v1586_v26 = vld [vmem:[%s5902_s0 + $0x68] sm:$0xff]  ;;  %v5662_v27 = vmov 0.0   ;;  %v5663_v28 = vmov 0   ;;  %s8768_s23 = sld [smem:[#allocation274_spill]] }
 0x1a0   : > { %1616 = vmatprep.subr.mxu0 %v1588_v43  ;;  %v1585_v55 = vld [vmem:[%s5902_s0 + $0x60] sm:$0xff]  ;;  %1664 = vmatprep.mubr.f32.mxu0 %v5662_v27  ;;  %v1584_v42 = vld [vmem:[%s5902_s0 + $0x58] sm:$0xff]  ;;  %v1583_v29 = vld [vmem:[%s5902_s0 + $0x50] sm:$0xff]  ;;  %s8769_s3 = sld [smem:[#allocation273_spill]]  ;;  %vm1596_vm1 = vcmask 523264   ;;  %vm1778_vm2 = vcmask 1043456  }
 0x1a1   : > { %1617 = vmatpush1.msra.mxu0 %v1587_v25  ;;  %4883 = vset.pattern.permute.xlu0 %v5663_v28  ;;  %v1582_v30 = vld [vmem:[%s5902_s0 + $0x48] sm:$0xff]  ;;  %v1581_v32 = vld [vmem:[%s5902_s0 + $0x40] sm:$0xff]  ;;  %v1580_v33 = vld [vmem:[%s5902_s0 + $0x38] sm:$0xff]  ;;  %vm1729_vm3 = vcmask 64512   ;;  %s4333_s4 = sld [smem:[#allocation4]]  ;;  %s4718_s10 = sshll.u32 %s5635_s17, 1 }
 0x1a2   : > { %1618 = vmatprep.subr.mxu0 %v1586_v26  ;;  %1835 = vmatprep.mubr.bf16.mxu1 %v5663_v28  ;;  %v1579_v34 = vld [vmem:[%s5902_s0 + $0x30] sm:$0xff]  ;;  %v1578_v36 = vld [vmem:[%s5902_s0 + $0x28] sm:$0xff]  ;;  %v1577_v37 = vld [vmem:[%s5902_s0 + $0x20] sm:$0xff]  ;;  %s9445_s25 = sld [smem:[#allocation15_spill]]  ;;  %s4399_s14 = sshll.u32 %s5908_s29, 4  ;;  %s8324_s14 = int_to_ptr.vmem [resolvable:$true] %s4399_s14 }
 0x1a3   : > { %1619 = vmatpush1.msra.mxu0 %v1585_v55  ;;  %v1576_v45 = vld [vmem:[%s5902_s0 + $0x18] sm:$0xff]  ;;  %v1575_v38 = vld [vmem:[%s5902_s0 + $0x10] sm:$0xff]  ;;  %v1574_v39 = vld [vmem:[%s5902_s0 + $0x8] sm:$0xff]  ;;  %s9447_s5 = sld [smem:[#allocation280_spill]]  ;;  %s5527_s27 = scalar_lea.vmem %s8324_s14, 2048 }
 0x1a4   : > { %1620 = vmatprep.subr.mxu0 %v1584_v42  ;;  %v1573_v40 = vld [vmem:[%s5902_s0] sm:$0xff]  ;;  %v1673_v44 = vld [vmem:[#allocation2 + $0x10] sm:$0xff]  ;;  %v1676_v52 = vld [vmem:[#allocation2 + $0x8] sm:$0xff]  ;;  %s9448_s21 = sld [smem:[#allocation18_spill]]  ;;  %p5528_p6 = scmp.ne.s32.totalorder %s8324_s14, %s5527_s27 }
 0x1a5   : > { %v1590_v35 = vld [vmem:[%s8768_s23] sm:$0xff]  ;;  %1621 = vmatpush1.msra.mxu0 %v1583_v29  ;;  %v4602_v47 = vcombine.high %v1673_v44, %v1673_v44  ;;  %v4601_v48 = vcombine.low %v1673_v44, %v1673_v44  ;;  %v4608_v53 = vcombine.high %v1676_v52, %v1676_v52  ;;  %v4607_v61 = vcombine.low %v1676_v52, %v1676_v52  ;;  %v6522_v63 = vld [vmem:[#allocation2 + $0x18] sm:$0xff]  ;;  %s4384_s23 = scalar_lea.sflag [#allocation7], %s5898_s24  ;;  %s5664_s9 = smov [#allocation10]  }
 0x1a6   : > { %1593 = vperm.xlu0 %4883, %v1590_v35   ;;  %1622 = vmatprep.subr.mxu0 %v1582_v30  ;;  %v1589_v41 = vld [vmem:[%s8769_s3] sm:$0xff]  ;;  %v4606_v2 = vcombine.high %v6522_v63, %v6522_v63  ;;  %v4605_v17 = vcombine.low %v6522_v63, %v6522_v63  ;;  %s5531_s3 = sshll.u32 %s5664_s9, 4  ;;  %s5532_s3 = int_to_ptr.vmem [resolvable:$false] %s5531_s3 }
 0x1a7   : > { %1623 = vmatpush1.msra.mxu0 %v1581_v32  ;;  %v1674_v46 = vld [vmem:[#allocation2] sm:$0xff]  ;;  %4609 = vmatprep.subr.msk.bf16.mxu1 %vm1778_vm2, %v4602_v47  ;;  %v1780_v50 = vsel %vm1778_vm2, %v4601_v48, 0  ;;  %v1798_v1 = vsel %vm1778_vm2, %v4607_v61, 0  ;;  %p5534_p9 = scmp.lt.s32.totalorder %s8324_s14, %s5532_s3 }
 0x1a8   : > { %1624 = vmatprep.subr.mxu0 %v1580_v33  ;;  %v4604_v49 = vcombine.high %v1674_v46, %v1674_v46  ;;  %v4603_v62 = vcombine.low %v1674_v46, %v1674_v46  ;;  %1818 = vmatpush1.bf16.msra.mxu1 %v1780_v50  ;;  %v1792_v18 = vsel %vm1778_vm2, %v4605_v17, 0  ;;  %s4719_s7 = sshll.u32 %s9445_s25, 6 }
 0x1a9   : > { %1625 = vmatpush1.msra.mxu0 %v1579_v34  ;;  %s8303_s17 = sadd.s32 %s4719_s7, %s4718_s10 }
 0x1aa   : > { %1626 = vmatprep.subr.mxu0 %v1578_v36  ;;  %v1786_v51 = vsel %vm1778_vm2, %v4603_v62, 0  ;;  %4760 = vmatprep.subr.msk.bf16.mxu1 %vm1778_vm2, %v4604_v49  ;;  %s4720_s22 = sshll.u32 %s8303_s17, 7  ;;  %p9449_p10 = scmp.ne.s32.totalorder %s9448_s21, 0 }
 0x1ab   : > { %1627 = vmatpush1.msra.mxu0 %v1577_v37  ;;  %s8333_s11 = scalar_lea.hbm %s9447_s5, %s4720_s22 }
 0x1ac   : > { %1628 = vmatprep.subr.mxu0 %v1576_v45  ;;  %p5529_p7 = pnand %p5528_p6, %p9449_p10 }
 0x1ad   : > { %1629 = vmatpush1.msra.mxu0 %v1575_v38 }
 0x1ae   : > { %1630 = vmatprep.subr.mxu0 %v1574_v39  ;;  %p5530_p0 = pneg %p5529_p7 }
 0x1af   : > { %1631 = vmatpush1.msra.mxu0 %v1573_v40 }
 0x1b0   : > { %4600 = vmatmul.mubr.msk.f32.vlgmr.msra.gmra.mxu0 %vm1596_vm1, %v1589_v41  ;;  %4626 = vmatprep.subr.msk.bf16.mxu0 %vm1778_vm2, %v4604_v49 }
 0x1b1   : > { %2028 = vmatprep.mubr.bf16.mxu0 %v5663_v28  ;;  %2011 = vmatpush1.bf16.msra.mxu0 %v1786_v51 }
 0x1b2   : > { %4660 = vmatprep.subr.msk.bf16.mxu0 %vm1778_vm2, %v4608_v53 }
 0x221   : > { %v1594_v54 = vpop.permute.xlu0 %1593 }
 0x270   : > { %v1666_v56 = vpop.f32.mrf.mxu0 }
 0x271   : > { %v1667_v57 = vadd.f32 %v1666_v56, %v1594_v54 }
 0x272   : > { %v1668_v58 = vpop.f32.mrf.mxu0 }
 0x273   : > { %v1671_v59 = vpack.c.bf16 %v1667_v57, %v1667_v57  ;;  %v1669_v9 = vadd.f32 %v1668_v58, %v1594_v54 }
 0x275   : > { %1677 = vxpose.xlu0.c.b16.start.end [1/1] (short) %v1671_v59, 128  ;;  %v1672_v60 = vpack.c.bf16 %v1669_v9, %v1669_v9 }
 0x277   : > { %1693 = vxpose.xlu1.c.b16.start.end [1/1] (short) %v1672_v60, 128 }
 0x2d7   : > { %v6524_v0 = vpop.trf.xlu0 }
 0x2d8   : > { %4610 = vmatmul.mubr.msk.bf16.vlgmr.msra.gmra.mxu1 %vm1729_vm3, %v6524_v0  ;;  %4627 = vmatmul.mubr.msk.bf16.vlgmr.msra.gmra.mxu0 %vm1729_vm3, %v6524_v0 }
 0x2d9   : > { %4761 = vmatpush1.bf16.msra.mxu1 %v1786_v51  ;;  %1845 = vmatprep.mubr.bf16.mxu1 %v5663_v28  ;;  %v6592_v10 = vpop.trf.xlu1 }
 0x2da   : > { %2038 = vmatprep.mubr.bf16.mxu0 %v5663_v28  ;;  %2397 = vmatpush1.bf16.msra.mxu0 %v1798_v1 }
 0x2db   : > { %4643 = vmatprep.subr.msk.bf16.mxu1 %vm1778_vm2, %v4606_v2  ;;  %v6536_v3 = vpop.trf.xlu0 }
 0x2dd   : > { %v6600_v11 = vpop.trf.xlu1 }
 0x2df   : > { %v6544_v4 = vpop.trf.xlu0 }
 0x2e0   : > { %4611 = vmatmul.mubr.msk.bf16.gmra.mxu1 %vm1729_vm3, %v6536_v3  ;;  %4628 = vmatmul.mubr.msk.bf16.gmra.mxu0 %vm1729_vm3, %v6536_v3 }
 0x2e1   : > { %1855 = vmatprep.mubr.bf16.mxu1 %v5663_v28  ;;  %2048 = vmatprep.mubr.bf16.mxu0 %v5663_v28  ;;  %v6608_v12 = vpop.trf.xlu1 }
 0x2e3   : > { %v6552_v5 = vpop.trf.xlu0 }
 0x2e5   : > { %v6616_v13 = vpop.trf.xlu1 }
 0x2e7   : > { %v6560_v20 = vpop.trf.xlu0 }
 0x2e8   : > { %4612 = vmatmul.mubr.msk.bf16.gmra.mxu1 %vm1729_vm3, %v6544_v4  ;;  %4629 = vmatmul.mubr.msk.bf16.gmra.mxu0 %vm1729_vm3, %v6544_v4 }
 0x2e9   : > { %1865 = vmatprep.mubr.bf16.mxu1 %v5663_v28  ;;  %2058 = vmatprep.mubr.bf16.mxu0 %v5663_v28  ;;  %v6624_v14 = vpop.trf.xlu1 }
 0x2eb   : > { %v6568_v6 = vpop.trf.xlu0 }
 0x2ed   : > { %v6632_v15 = vpop.trf.xlu1 }
 0x2ef   : > { %v6576_v7 = vpop.trf.xlu0 }
 0x2f0   : > { %4613 = vmatmul.mubr.msk.bf16.gmra.mxu1 %vm1729_vm3, %v6552_v5  ;;  %4630 = vmatmul.mubr.msk.bf16.gmra.mxu0 %vm1729_vm3, %v6552_v5 }
 0x2f1   : > { %1875 = vmatprep.mubr.bf16.mxu1 %v5663_v28  ;;  %2068 = vmatprep.mubr.bf16.mxu0 %v5663_v28  ;;  %v6640_v31 = vpop.trf.xlu1 }
 0x2f3   : > { %v6584_v8 = vpop.trf.xlu0 }
 0x2f5   : > { %v6648_v16 = vpop.trf.xlu1 }
 0x2f8   : > { %4614 = vmatmul.mubr.msk.bf16.gmra.mxu1 %vm1729_vm3, %v6560_v20  ;;  %4631 = vmatmul.mubr.msk.bf16.gmra.mxu0 %vm1729_vm3, %v6560_v20 }
 0x2f9   : > { %1885 = vmatprep.mubr.bf16.mxu1 %v5663_v28  ;;  %2078 = vmatprep.mubr.bf16.mxu0 %v5663_v28 }
 0x300   : > { %4615 = vmatmul.mubr.msk.bf16.gmra.mxu1 %vm1729_vm3, %v6568_v6  ;;  %4632 = vmatmul.mubr.msk.bf16.gmra.mxu0 %vm1729_vm3, %v6568_v6 }
 0x301   : > { %1895 = vmatprep.mubr.bf16.mxu1 %v5663_v28  ;;  %2088 = vmatprep.mubr.bf16.mxu0 %v5663_v28 }
 0x308   : > { %4616 = vmatmul.mubr.msk.bf16.gmra.mxu1 %vm1729_vm3, %v6576_v7  ;;  %4633 = vmatmul.mubr.msk.bf16.gmra.mxu0 %vm1729_vm3, %v6576_v7 }
 0x309   : > { %1905 = vmatprep.mubr.bf16.mxu1 %v5663_v28  ;;  %2098 = vmatprep.mubr.bf16.mxu0 %v5663_v28 }
 0x310   : > { %4617 = vmatmul.mubr.msk.bf16.gmra.mxu1 %vm1729_vm3, %v6584_v8  ;;  %4634 = vmatmul.mubr.msk.bf16.gmra.mxu0 %vm1729_vm3, %v6584_v8 }
 0x311   : > { %1915 = vmatprep.mubr.bf16.mxu1 %v5663_v28  ;;  %2108 = vmatprep.mubr.bf16.mxu0 %v5663_v28 }
 0x318   : > { %4618 = vmatmul.mubr.msk.bf16.gmra.mxu1 %vm1729_vm3, %v6592_v10  ;;  %4635 = vmatmul.mubr.msk.bf16.gmra.mxu0 %vm1729_vm3, %v6592_v10 }
 0x319   : > { %1925 = vmatprep.mubr.bf16.mxu1 %v5663_v28  ;;  %2118 = vmatprep.mubr.bf16.mxu0 %v5663_v28 }
 0x320   : > { %4619 = vmatmul.mubr.msk.bf16.gmra.mxu1 %vm1729_vm3, %v6600_v11  ;;  %4636 = vmatmul.mubr.msk.bf16.gmra.mxu0 %vm1729_vm3, %v6600_v11 }
 0x321   : > { %1935 = vmatprep.mubr.bf16.mxu1 %v5663_v28  ;;  %2128 = vmatprep.mubr.bf16.mxu0 %v5663_v28 }
 0x328   : > { %4620 = vmatmul.mubr.msk.bf16.gmra.mxu1 %vm1729_vm3, %v6608_v12  ;;  %4637 = vmatmul.mubr.msk.bf16.gmra.mxu0 %vm1729_vm3, %v6608_v12 }
 0x329   : > { %1945 = vmatprep.mubr.bf16.mxu1 %v5663_v28  ;;  %2138 = vmatprep.mubr.bf16.mxu0 %v5663_v28 }
 0x330   : > { %4621 = vmatmul.mubr.msk.bf16.gmra.mxu1 %vm1729_vm3, %v6616_v13  ;;  %4638 = vmatmul.mubr.msk.bf16.gmra.mxu0 %vm1729_vm3, %v6616_v13 }
 0x331   : > { %1955 = vmatprep.mubr.bf16.mxu1 %v5663_v28  ;;  %2148 = vmatprep.mubr.bf16.mxu0 %v5663_v28 }
 0x338   : > { %4622 = vmatmul.mubr.msk.bf16.gmra.mxu1 %vm1729_vm3, %v6624_v14  ;;  %4639 = vmatmul.mubr.msk.bf16.gmra.mxu0 %vm1729_vm3, %v6624_v14 }
 0x339   : > { %1965 = vmatprep.mubr.bf16.mxu1 %v5663_v28  ;;  %2158 = vmatprep.mubr.bf16.mxu0 %v5663_v28 }
 0x340   : > { %4623 = vmatmul.mubr.msk.bf16.gmra.mxu1 %vm1729_vm3, %v6632_v15  ;;  %4640 = vmatmul.mubr.msk.bf16.gmra.mxu0 %vm1729_vm3, %v6632_v15 }
 0x341   : > { %1975 = vmatprep.mubr.bf16.mxu1 %v5663_v28  ;;  %2168 = vmatprep.mubr.bf16.mxu0 %v5663_v28 }
 0x348   : > { %4624 = vmatmul.mubr.msk.bf16.gmra.mxu1 %vm1729_vm3, %v6640_v31  ;;  %4641 = vmatmul.mubr.msk.bf16.gmra.mxu0 %vm1729_vm3, %v6640_v31 }
 0x349   : > { %1985 = vmatprep.mubr.bf16.mxu1 %v5663_v28  ;;  %2414 = vmatprep.mubr.bf16.mxu0 %v5663_v28 }
 0x350   : > { %4625 = vmatmul.mubr.msk.bf16.gmra.mxu1 %vm1729_vm3, %v6648_v16  ;;  %4661 = vmatmul.mubr.msk.bf16.vlgmr.msra.gmra.mxu0 %vm1729_vm3, %v6524_v0 }
 0x351   : > { %2178 = vmatprep.mubr.bf16.mxu1 %v5663_v28  ;;  %2424 = vmatprep.mubr.bf16.mxu0 %v5663_v28 }
 0x358   : > { %4642 = vmatmul.mubr.msk.bf16.vlgmr.msra.gmra.mxu1 %vm1729_vm3, %v6648_v16  ;;  %4662 = vmatmul.mubr.msk.bf16.gmra.mxu0 %vm1729_vm3, %v6536_v3 }
 0x359   : > { %2204 = vmatpush1.bf16.msra.mxu1 %v1792_v18  ;;  %2221 = vmatprep.mubr.bf16.mxu1 %v5663_v28 }
 0x35a   : > { %2434 = vmatprep.mubr.bf16.mxu0 %v5663_v28 }
 0x360   : > { %4644 = vmatmul.mubr.msk.bf16.vlgmr.msra.gmra.mxu1 %vm1729_vm3, %v6524_v0  ;;  %4663 = vmatmul.mubr.msk.bf16.gmra.mxu0 %vm1729_vm3, %v6544_v4 }
 0x361   : > { %2231 = vmatprep.mubr.bf16.mxu1 %v5663_v28  ;;  %2444 = vmatprep.mubr.bf16.mxu0 %v5663_v28 }
 0x368   : > { %4645 = vmatmul.mubr.msk.bf16.gmra.mxu1 %vm1729_vm3, %v6536_v3  ;;  %4664 = vmatmul.mubr.msk.bf16.gmra.mxu0 %vm1729_vm3, %v6552_v5 }
 0x369   : > { %2241 = vmatprep.mubr.bf16.mxu1 %v5663_v28  ;;  %2454 = vmatprep.mubr.bf16.mxu0 %v5663_v28 }
 0x370   : > { %4646 = vmatmul.mubr.msk.bf16.gmra.mxu1 %vm1729_vm3, %v6544_v4  ;;  %4665 = vmatmul.mubr.msk.bf16.gmra.mxu0 %vm1729_vm3, %v6560_v20 }
 0x371   : > { %2251 = vmatprep.mubr.bf16.mxu1 %v5663_v28  ;;  %2464 = vmatprep.mubr.bf16.mxu0 %v5663_v28 }
 0x378   : > { %4647 = vmatmul.mubr.msk.bf16.gmra.mxu1 %vm1729_vm3, %v6552_v5  ;;  %4666 = vmatmul.mubr.msk.bf16.gmra.mxu0 %vm1729_vm3, %v6568_v6 }
 0x379   : > { %2261 = vmatprep.mubr.bf16.mxu1 %v5663_v28  ;;  %2474 = vmatprep.mubr.bf16.mxu0 %v5663_v28 }
 0x380   : > { %4648 = vmatmul.mubr.msk.bf16.gmra.mxu1 %vm1729_vm3, %v6560_v20  ;;  %4667 = vmatmul.mubr.msk.bf16.gmra.mxu0 %vm1729_vm3, %v6576_v7 }
 0x381   : > { %2271 = vmatprep.mubr.bf16.mxu1 %v5663_v28  ;;  %2484 = vmatprep.mubr.bf16.mxu0 %v5663_v28 }
 0x388   : > { %4649 = vmatmul.mubr.msk.bf16.gmra.mxu1 %vm1729_vm3, %v6568_v6  ;;  %4668 = vmatmul.mubr.msk.bf16.gmra.mxu0 %vm1729_vm3, %v6584_v8 }
 0x389   : > { %2281 = vmatprep.mubr.bf16.mxu1 %v5663_v28  ;;  %2494 = vmatprep.mubr.bf16.mxu0 %v5663_v28 }
 0x390   : > { %4650 = vmatmul.mubr.msk.bf16.gmra.mxu1 %vm1729_vm3, %v6576_v7  ;;  %4669 = vmatmul.mubr.msk.bf16.gmra.mxu0 %vm1729_vm3, %v6592_v10 }
 0x391   : > { %2291 = vmatprep.mubr.bf16.mxu1 %v5663_v28  ;;  %2504 = vmatprep.mubr.bf16.mxu0 %v5663_v28 }
 0x398   : > { %v6707_v19 = vpop.f32.mrf.mxu1  ;;  %v6709_v21 = vpop.f32.mrf.mxu0  ;;  %4651 = vmatmul.mubr.msk.bf16.gmra.mxu1 %vm1729_vm3, %v6584_v8  ;;  %4670 = vmatmul.mubr.msk.bf16.gmra.mxu0 %vm1729_vm3, %v6600_v11 }
 0x399   : > { %8770 = vst [vmem:[#allocation22_spill] sm:$0xff] %v6707_v19  ;;  %8771 = vst [vmem:[#allocation23_spill] sm:$0xff] %v6709_v21  ;;  %2301 = vmatprep.mubr.bf16.mxu1 %v5663_v28  ;;  %2514 = vmatprep.mubr.bf16.mxu0 %v5663_v28 }
 0x39a   : > { %v6717_v22 = vpop.f32.mrf.mxu1  ;;  %v6719_v23 = vpop.f32.mrf.mxu0 }
 0x39b   : > { %8772 = vst [vmem:[#allocation24_spill] sm:$0xff] %v6717_v22  ;;  %8773 = vst [vmem:[#allocation25_spill] sm:$0xff] %v6719_v23 }
 0x39c   : > { %v6721_v24 = vpop.f32.mrf.mxu1  ;;  %v6723_v43 = vpop.f32.mrf.mxu0 }
 0x39d   : > { %8774 = vst [vmem:[#allocation26_spill] sm:$0xff] %v6721_v24  ;;  %8775 = vst [vmem:[#allocation27_spill] sm:$0xff] %v6723_v43 }
 0x39e   : > { %v6725_v25 = vpop.f32.mrf.mxu1  ;;  %v6727_v26 = vpop.f32.mrf.mxu0 }
 0x39f   : > { %8776 = vst [vmem:[#allocation28_spill] sm:$0xff] %v6725_v25  ;;  %8777 = vst [vmem:[#allocation29_spill] sm:$0xff] %v6727_v26 }
 0x3a0   : > { %v6729_v55 = vpop.f32.mrf.mxu1  ;;  %v6731_v27 = vpop.f32.mrf.mxu0  ;;  %4652 = vmatmul.mubr.msk.bf16.gmra.mxu1 %vm1729_vm3, %v6592_v10  ;;  %4671 = vmatmul.mubr.msk.bf16.gmra.mxu0 %vm1729_vm3, %v6608_v12 }
 0x3a1   : > { %8778 = vst [vmem:[#allocation30_spill] sm:$0xff] %v6729_v55  ;;  %8779 = vst [vmem:[#allocation31_spill] sm:$0xff] %v6731_v27  ;;  %2311 = vmatprep.mubr.bf16.mxu1 %v5663_v28  ;;  %2524 = vmatprep.mubr.bf16.mxu0 %v5663_v28 }
 0x3a2   : > { %v6739_v42 = vpop.f32.mrf.mxu1  ;;  %v6741_v29 = vpop.f32.mrf.mxu0 }
 0x3a3   : > { %8780 = vst [vmem:[#allocation32_spill] sm:$0xff] %v6739_v42  ;;  %8781 = vst [vmem:[#allocation33_spill] sm:$0xff] %v6741_v29 }
 0x3a4   : > { %v6743_v30 = vpop.f32.mrf.mxu1  ;;  %v6745_v32 = vpop.f32.mrf.mxu0 }
 0x3a5   : > { %8782 = vst [vmem:[#allocation34_spill] sm:$0xff] %v6743_v30  ;;  %8783 = vst [vmem:[#allocation35_spill] sm:$0xff] %v6745_v32 }
 0x3a6   : > { %v6747_v33 = vpop.f32.mrf.mxu1  ;;  %v6749_v34 = vpop.f32.mrf.mxu0 }
 0x3a7   : > { %8784 = vst [vmem:[#allocation36_spill] sm:$0xff] %v6747_v33  ;;  %8785 = vst [vmem:[#allocation37_spill] sm:$0xff] %v6749_v34 }
 0x3a8   : > { %v6751_v35 = vpop.f32.mrf.mxu1  ;;  %v6753_v36 = vpop.f32.mrf.mxu0  ;;  %4653 = vmatmul.mubr.msk.bf16.gmra.mxu1 %vm1729_vm3, %v6600_v11  ;;  %4672 = vmatmul.mubr.msk.bf16.gmra.mxu0 %vm1729_vm3, %v6616_v13 }
 0x3a9   : > { %8786 = vst [vmem:[#allocation38_spill] sm:$0xff] %v6751_v35  ;;  %8787 = vst [vmem:[#allocation39_spill] sm:$0xff] %v6753_v36  ;;  %2321 = vmatprep.mubr.bf16.mxu1 %v5663_v28  ;;  %2534 = vmatprep.mubr.bf16.mxu0 %v5663_v28 }
 0x3aa   : > { %v6761_v37 = vpop.f32.mrf.mxu1  ;;  %v6763_v45 = vpop.f32.mrf.mxu0 }
 0x3ab   : > { %8788 = vst [vmem:[#allocation40_spill] sm:$0xff] %v6761_v37  ;;  %8789 = vst [vmem:[#allocation41_spill] sm:$0xff] %v6763_v45 }
 0x3ac   : > { %v6765_v38 = vpop.f32.mrf.mxu1  ;;  %v6767_v39 = vpop.f32.mrf.mxu0 }
 0x3ad   : > { %8790 = vst [vmem:[#allocation42_spill] sm:$0xff] %v6765_v38  ;;  %8791 = vst [vmem:[#allocation43_spill] sm:$0xff] %v6767_v39 }
 0x3ae   : > { %v6769_v40 = vpop.f32.mrf.mxu1  ;;  %v6771_v41 = vpop.f32.mrf.mxu0 }
 0x3af   : > { %8792 = vst [vmem:[#allocation44_spill] sm:$0xff] %v6769_v40  ;;  %8793 = vst [vmem:[#allocation45_spill] sm:$0xff] %v6771_v41 }
 0x3b0   : > { %v6773_v44 = vpop.f32.mrf.mxu1  ;;  %v6775_v46 = vpop.f32.mrf.mxu0  ;;  %4654 = vmatmul.mubr.msk.bf16.gmra.mxu1 %vm1729_vm3, %v6608_v12  ;;  %4673 = vmatmul.mubr.msk.bf16.gmra.mxu0 %vm1729_vm3, %v6624_v14 }
 0x3b1   : > { %8794 = vst [vmem:[#allocation46_spill] sm:$0xff] %v6773_v44  ;;  %8795 = vst [vmem:[#allocation47_spill] sm:$0xff] %v6775_v46  ;;  %2331 = vmatprep.mubr.bf16.mxu1 %v5663_v28  ;;  %2544 = vmatprep.mubr.bf16.mxu0 %v5663_v28 }
 0x3b2   : > { %v6783_v47 = vpop.f32.mrf.mxu1  ;;  %v6785_v48 = vpop.f32.mrf.mxu0 }
 0x3b3   : > { %8796 = vst [vmem:[#allocation48_spill] sm:$0xff] %v6783_v47  ;;  %8797 = vst [vmem:[#allocation49_spill] sm:$0xff] %v6785_v48 }
 0x3b4   : > { %v6787_v49 = vpop.f32.mrf.mxu1  ;;  %v6789_v62 = vpop.f32.mrf.mxu0 }
 0x3b5   : > { %8798 = vst [vmem:[#allocation50_spill] sm:$0xff] %v6787_v49  ;;  %8799 = vst [vmem:[#allocation51_spill] sm:$0xff] %v6789_v62 }
 0x3b6   : > { %v6791_v50 = vpop.f32.mrf.mxu1  ;;  %v6793_v51 = vpop.f32.mrf.mxu0 }
 0x3b7   : > { %8800 = vst [vmem:[#allocation52_spill] sm:$0xff] %v6791_v50  ;;  %8801 = vst [vmem:[#allocation53_spill] sm:$0xff] %v6793_v51 }
 0x3b8   : > { %v6795_v52 = vpop.f32.mrf.mxu1  ;;  %v6797_v53 = vpop.f32.mrf.mxu0  ;;  %4655 = vmatmul.mubr.msk.bf16.gmra.mxu1 %vm1729_vm3, %v6616_v13  ;;  %4674 = vmatmul.mubr.msk.bf16.gmra.mxu0 %vm1729_vm3, %v6632_v15 }
 0x3b9   : > { %8802 = vst [vmem:[#allocation54_spill] sm:$0xff] %v6795_v52  ;;  %8803 = vst [vmem:[#allocation55_spill] sm:$0xff] %v6797_v53  ;;  %2341 = vmatprep.mubr.bf16.mxu1 %v5663_v28  ;;  %2554 = vmatprep.mubr.bf16.mxu0 %v5663_v28 }
 0x3ba   : > { %v6805_v54 = vpop.f32.mrf.mxu1  ;;  %v6807_v56 = vpop.f32.mrf.mxu0 }
 0x3bb   : > { %8804 = vst [vmem:[#allocation56_spill] sm:$0xff] %v6805_v54  ;;  %8805 = vst [vmem:[#allocation57_spill] sm:$0xff] %v6807_v56 }
 0x3bc   : > { %v6809_v57 = vpop.f32.mrf.mxu1  ;;  %v6811_v58 = vpop.f32.mrf.mxu0 }
 0x3bd   : > { %8806 = vst [vmem:[#allocation58_spill] sm:$0xff] %v6809_v57  ;;  %8807 = vst [vmem:[#allocation59_spill] sm:$0xff] %v6811_v58  ;;  %v2611_v58 = vmax.f32 %v6751_v35, %v6761_v37  ;;  %v2593_v35 = vmax.f32 %v6729_v55, %v6739_v42 }
 0x3be   : > { %v6813_v59 = vpop.f32.mrf.mxu1  ;;  %v6815_v9 = vpop.f32.mrf.mxu0 }
 0x3bf   : > { %8808 = vst [vmem:[#allocation60_spill] sm:$0xff] %v6813_v59  ;;  %8809 = vst [vmem:[#allocation61_spill] sm:$0xff] %v6815_v9  ;;  %v2612_v37 = vmax.f32 %v2611_v58, %v6753_v36  ;;  %v2575_v36 = vmax.f32 %v6707_v19, %v6717_v22  ;;  %v2594_v42 = vmax.f32 %v2593_v35, %v6731_v27 }
 0x3c0   : > { %v6817_v60 = vpop.f32.mrf.mxu1  ;;  %v6819_v61 = vpop.f32.mrf.mxu0  ;;  %4656 = vmatmul.mubr.msk.bf16.gmra.mxu1 %vm1729_vm3, %v6624_v14  ;;  %4675 = vmatmul.mubr.msk.bf16.gmra.mxu0 %vm1729_vm3, %v6640_v31 }
 0x3c1   : > { %8810 = vst [vmem:[#allocation62_spill] sm:$0xff] %v6817_v60  ;;  %8811 = vst [vmem:[#allocation63_spill] sm:$0xff] %v6819_v61  ;;  %2351 = vmatprep.mubr.bf16.mxu1 %v5663_v28  ;;  %2564 = vmatprep.mubr.bf16.mxu0 %v5663_v28 }
 0x3c2   : > { %v6827_v63 = vpop.f32.mrf.mxu1  ;;  %v6829_v0 = vpop.f32.mrf.mxu0 }
 0x3c3   : > { %8812 = vst [vmem:[#allocation64_spill] sm:$0xff] %v6827_v63  ;;  %8813 = vst [vmem:[#allocation65_spill] sm:$0xff] %v6829_v0 }
 0x3c4   : > { %v6831_v1 = vpop.f32.mrf.mxu1  ;;  %v6833_v2 = vpop.f32.mrf.mxu0 }
 0x3c5   : > { %8814 = vst [vmem:[#allocation66_spill] sm:$0xff] %v6831_v1  ;;  %8815 = vst [vmem:[#allocation67_spill] sm:$0xff] %v6833_v2 }
 0x3c6   : > { %v6835_v3 = vpop.f32.mrf.mxu1  ;;  %v6837_v4 = vpop.f32.mrf.mxu0 }
 0x3c7   : > { %8816 = vst [vmem:[#allocation68_spill] sm:$0xff] %v6835_v3  ;;  %8817 = vst [vmem:[#allocation69_spill] sm:$0xff] %v6837_v4 }
 0x3c8   : > { %v6839_v5 = vpop.f32.mrf.mxu1  ;;  %v6841_v20 = vpop.f32.mrf.mxu0  ;;  %4657 = vmatmul.mubr.msk.bf16.gmra.mxu1 %vm1729_vm3, %v6632_v15  ;;  %4676 = vmatmul.mubr.msk.bf16.gmra.mxu0 %vm1729_vm3, %v6648_v16 }
 0x3c9   : > { %8818 = vst [vmem:[#allocation70_spill] sm:$0xff] %v6839_v5  ;;  %8819 = vst [vmem:[#allocation71_spill] sm:$0xff] %v6841_v20  ;;  %2361 = vmatprep.mubr.bf16.mxu1 %v5663_v28 }
 0x3ca   : > { %v6848_v6 = vpop.f32.mrf.mxu1  ;;  %v6850_v7 = vpop.f32.mrf.mxu0 }
 0x3cb   : > { %8820 = vst [vmem:[#allocation72_spill] sm:$0xff] %v6848_v6  ;;  %8821 = vst [vmem:[#allocation73_spill] sm:$0xff] %v6850_v7 }
 0x3cc   : > { %v6852_v8 = vpop.f32.mrf.mxu1  ;;  %v6854_v10 = vpop.f32.mrf.mxu0 }
 0x3cd   : > { %8822 = vst [vmem:[#allocation74_spill] sm:$0xff] %v6852_v8  ;;  %8823 = vst [vmem:[#allocation75_spill] sm:$0xff] %v6854_v10 }
 0x3ce   : > { %v6856_v11 = vpop.f32.mrf.mxu1  ;;  %v6858_v12 = vpop.f32.mrf.mxu0 }
 0x3cf   : > { %8824 = vst [vmem:[#allocation76_spill] sm:$0xff] %v6856_v11  ;;  %8825 = vst [vmem:[#allocation77_spill] sm:$0xff] %v6858_v12 }
 0x3d0   : > { %v6860_v13 = vpop.f32.mrf.mxu1  ;;  %v6862_v14 = vpop.f32.mrf.mxu0  ;;  %4658 = vmatmul.mubr.msk.bf16.gmra.mxu1 %vm1729_vm3, %v6640_v31 }
 0x3d1   : > { %8826 = vst [vmem:[#allocation78_spill] sm:$0xff] %v6860_v13  ;;  %8827 = vst [vmem:[#allocation79_spill] sm:$0xff] %v6862_v14  ;;  %2371 = vmatprep.mubr.bf16.mxu1 %v5663_v28 }
 0x3d2   : > { %v6867_v15 = vpop.f32.mrf.mxu1  ;;  %v6869_v17 = vpop.f32.mrf.mxu0 }
 0x3d3   : > { %8828 = vst [vmem:[#allocation80_spill] sm:$0xff] %v6867_v15  ;;  %8829 = vst [vmem:[#allocation81_spill] sm:$0xff] %v6869_v17 }
 0x3d4   : > { %v6871_v18 = vpop.f32.mrf.mxu1  ;;  %v6873_v26 = vpop.f32.mrf.mxu0 }
 0x3d5   : > { %8830 = vst [vmem:[#allocation82_spill] sm:$0xff] %v6871_v18  ;;  %8831 = vst [vmem:[#allocation83_spill] sm:$0xff] %v6873_v26 }
 0x3d6   : > { %v6875_v34 = vpop.f32.mrf.mxu1  ;;  %v6877_v43 = vpop.f32.mrf.mxu0 }
 0x3d7   : > { %8832 = vst [vmem:[#allocation84_spill] sm:$0xff] %v6875_v34  ;;  %8833 = vst [vmem:[#allocation85_spill] sm:$0xff] %v6877_v43 }
 0x3d8   : > { %v6879_v41 = vpop.f32.mrf.mxu1  ;;  %v6881_v32 = vpop.f32.mrf.mxu0  ;;  %4659 = vmatmul.mubr.msk.bf16.gmra.mxu1 %vm1729_vm3, %v6648_v16 }
 0x3d9   : > { %8834 = vst [vmem:[#allocation86_spill] sm:$0xff] %v6879_v41  ;;  %8835 = vst [vmem:[#allocation87_spill] sm:$0xff] %v6881_v32 }
 0x3da   : > { %v6885_v28 = vpop.f32.mrf.mxu1  ;;  %v6887_v31 = vpop.f32.mrf.mxu0 }
 0x3db   : > { %8836 = vst [vmem:[#allocation88_spill] sm:$0xff] %v6885_v28  ;;  %8837 = vst [vmem:[#allocation89_spill] sm:$0xff] %v6887_v31 }
 0x3dc   : > { %v6889_v24 = vpop.f32.mrf.mxu1  ;;  %v6891_v25 = vpop.f32.mrf.mxu0 }
 0x3dd   : > { %8838 = vst [vmem:[#allocation90_spill] sm:$0xff] %v6889_v24  ;;  %8839 = vst [vmem:[#allocation91_spill] sm:$0xff] %v6891_v25 }
 0x3de   : > { %v6893_v51 = vpop.f32.mrf.mxu1  ;;  %v6895_v39 = vpop.f32.mrf.mxu0 }
 0x3df   : > { %8840 = vst [vmem:[#allocation92_spill] sm:$0xff] %v6893_v51  ;;  %8841 = vst [vmem:[#allocation93_spill] sm:$0xff] %v6895_v39 }
 0x3e0   : > { %v6897_v30 = vpop.f32.mrf.mxu1  ;;  %v6899_v41 = vpop.f32.mrf.mxu0 }
 0x3e1   : > { %8842 = vst [vmem:[#allocation94_spill] sm:$0xff] %v6897_v30  ;;  %8843 = vst [vmem:[#allocation95_spill] sm:$0xff] %v6899_v41 }
 0x3e2   : > { %v6901_v32 = vpop.f32.mrf.mxu1  ;;  %v6903_v33 = vpop.f32.mrf.mxu0 }
 0x3e3   : > { %8844 = vst [vmem:[#allocation96_spill] sm:$0xff] %v6901_v32  ;;  %8845 = vst [vmem:[#allocation97_spill] sm:$0xff] %v6903_v33 }
 0x3e4   : > { %v6905_v16 = vpop.f32.mrf.mxu1  ;;  %v6907_v28 = vpop.f32.mrf.mxu0 }
 0x3e5   : > { %8846 = vst [vmem:[#allocation98_spill] sm:$0xff] %v6905_v16  ;;  %8847 = vst [vmem:[#allocation99_spill] sm:$0xff] %v6907_v28 }
 0x3e6   : > { %v6909_v31 = vpop.f32.mrf.mxu1  ;;  %v6911_v24 = vpop.f32.mrf.mxu0 }
 0x3e7   : > { %8848 = vst [vmem:[#allocation100_spill] sm:$0xff] %v6909_v31  ;;  %8849 = vst [vmem:[#allocation101_spill] sm:$0xff] %v6911_v24 }
 0x3e8   : > { %v6913_v25 = vpop.f32.mrf.mxu1  ;;  %v6915_v51 = vpop.f32.mrf.mxu0 }
 0x3e9   : > { %8850 = vst [vmem:[#allocation102_spill] sm:$0xff] %v6913_v25  ;;  %8851 = vst [vmem:[#allocation103_spill] sm:$0xff] %v6915_v51 }
 0x3ea   : > { %v6917_v39 = vpop.f32.mrf.mxu1  ;;  %v6919_v30 = vpop.f32.mrf.mxu0 }
 0x3eb   : > { %8852 = vst [vmem:[#allocation104_spill] sm:$0xff] %v6917_v39  ;;  %8853 = vst [vmem:[#allocation105_spill] sm:$0xff] %v6919_v30 }
 0x3ec   : > { %v6921_v41 = vpop.f32.mrf.mxu1  ;;  %v6923_v32 = vpop.f32.mrf.mxu0 }
 0x3ed   : > { %8854 = vst [vmem:[#allocation106_spill] sm:$0xff] %v6921_v41  ;;  %8855 = vst [vmem:[#allocation107_spill] sm:$0xff] %v6923_v32 }
 0x3ee   : > { %v6925_v33 = vpop.f32.mrf.mxu1  ;;  %v6927_v16 = vpop.f32.mrf.mxu0 }
 0x3ef   : > { %8856 = vst [vmem:[#allocation108_spill] sm:$0xff] %v6925_v33  ;;  %8857 = vst [vmem:[#allocation109_spill] sm:$0xff] %v6927_v16 }
 0x3f0   : > { %v6929_v28 = vpop.f32.mrf.mxu1  ;;  %v6931_v31 = vpop.f32.mrf.mxu0 }
 0x3f1   : > { %8858 = vst [vmem:[#allocation110_spill] sm:$0xff] %v6929_v28  ;;  %8859 = vst [vmem:[#allocation111_spill] sm:$0xff] %v6931_v31 }
 0x3f2   : > { %v6933_v24 = vpop.f32.mrf.mxu1  ;;  %v6935_v25 = vpop.f32.mrf.mxu0 }
 0x3f3   : > { %8860 = vst [vmem:[#allocation112_spill] sm:$0xff] %v6933_v24  ;;  %8861 = vst [vmem:[#allocation113_spill] sm:$0xff] %v6935_v25 }
 0x3f4   : > { %v6937_v51 = vpop.f32.mrf.mxu1  ;;  %v6939_v39 = vpop.f32.mrf.mxu0 }
 0x3f5   : > { %8862 = vst [vmem:[#allocation114_spill] sm:$0xff] %v6937_v51  ;;  %8863 = vst [vmem:[#allocation115_spill] sm:$0xff] %v6939_v39 }
 0x3f6   : > { %v6941_v30 = vpop.f32.mrf.mxu1  ;;  %v6943_v41 = vpop.f32.mrf.mxu0 }
 0x3f7   : > { %8864 = vst [vmem:[#allocation116_spill] sm:$0xff] %v6941_v30  ;;  %8865 = vst [vmem:[#allocation117_spill] sm:$0xff] %v6943_v41 }
 0x3f8   : > { %v6945_v32 = vpop.f32.mrf.mxu1  ;;  %v6947_v33 = vpop.f32.mrf.mxu0 }
 0x3f9   : > { %8866 = vst [vmem:[#allocation118_spill] sm:$0xff] %v6945_v32  ;;  %8867 = vst [vmem:[#allocation119_spill] sm:$0xff] %v6947_v33 }
 0x3fa   : > { %v6949_v16 = vpop.f32.mrf.mxu1  ;;  %v6951_v28 = vpop.f32.mrf.mxu0 }
 0x3fb   : > { %8868 = vst [vmem:[#allocation120_spill] sm:$0xff] %v6949_v16  ;;  %8869 = vst [vmem:[#allocation121_spill] sm:$0xff] %v6951_v28 }
 0x3fc   : > { %v6953_v31 = vpop.f32.mrf.mxu1  ;;  %v6955_v24 = vpop.f32.mrf.mxu0 }
 0x3fd   : > { %8870 = vst [vmem:[#allocation122_spill] sm:$0xff] %v6953_v31  ;;  %8871 = vst [vmem:[#allocation123_spill] sm:$0xff] %v6955_v24 }
 0x3fe   : > { %v6957_v25 = vpop.f32.mrf.mxu1  ;;  %v6959_v51 = vpop.f32.mrf.mxu0 }
 0x3ff   : > { %8872 = vst [vmem:[#allocation124_spill] sm:$0xff] %v6957_v25  ;;  %8873 = vst [vmem:[#allocation125_spill] sm:$0xff] %v6959_v51 }
 0x400   : > { %v6961_v39 = vpop.f32.mrf.mxu1  ;;  %v6963_v30 = vpop.f32.mrf.mxu0 }
 0x401   : > { %8874 = vst [vmem:[#allocation126_spill] sm:$0xff] %v6961_v39  ;;  %8875 = vst [vmem:[#allocation127_spill] sm:$0xff] %v6963_v30 }
 0x402   : > { %v6965_v41 = vpop.f32.mrf.mxu1  ;;  %v6967_v32 = vpop.f32.mrf.mxu0 }
 0x403   : > { %8876 = vst [vmem:[#allocation128_spill] sm:$0xff] %v6965_v41  ;;  %8877 = vst [vmem:[#allocation129_spill] sm:$0xff] %v6967_v32 }
 0x404   : > { %v6969_v33 = vpop.f32.mrf.mxu1  ;;  %v6971_v16 = vpop.f32.mrf.mxu0 }
 0x405   : > { %8878 = vst [vmem:[#allocation130_spill] sm:$0xff] %v6969_v33  ;;  %8879 = vst [vmem:[#allocation131_spill] sm:$0xff] %v6971_v16 }
 0x406   : > { %v6973_v28 = vpop.f32.mrf.mxu1  ;;  %v6975_v31 = vpop.f32.mrf.mxu0 }
 0x407   : > { %8880 = vst [vmem:[#allocation132_spill] sm:$0xff] %v6973_v28  ;;  %8881 = vst [vmem:[#allocation133_spill] sm:$0xff] %v6975_v31 }
 0x408   : > { %v6977_v24 = vpop.f32.mrf.mxu1  ;;  %v6979_v25 = vpop.f32.mrf.mxu0 }
 0x409   : > { %8882 = vst [vmem:[#allocation134_spill] sm:$0xff] %v6977_v24  ;;  %8883 = vst [vmem:[#allocation135_spill] sm:$0xff] %v6979_v25 }
 0x40a   : > { %v6981_v51 = vpop.f32.mrf.mxu1  ;;  %v6983_v39 = vpop.f32.mrf.mxu0 }
 0x40b   : > { %8884 = vst [vmem:[#allocation136_spill] sm:$0xff] %v6981_v51  ;;  %8885 = vst [vmem:[#allocation137_spill] sm:$0xff] %v6983_v39 }
 0x40c   : > { %v6985_v30 = vpop.f32.mrf.mxu1  ;;  %v6987_v41 = vpop.f32.mrf.mxu0 }
 0x40d   : > { %8886 = vst [vmem:[#allocation138_spill] sm:$0xff] %v6985_v30  ;;  %8887 = vst [vmem:[#allocation139_spill] sm:$0xff] %v6987_v41 }
 0x40e   : > { %v6989_v32 = vpop.f32.mrf.mxu1  ;;  %v6991_v33 = vpop.f32.mrf.mxu0 }
 0x40f   : > { %8888 = vst [vmem:[#allocation140_spill] sm:$0xff] %v6989_v32  ;;  %8889 = vst [vmem:[#allocation141_spill] sm:$0xff] %v6991_v33 }
 0x410   : > { %v6993_v16 = vpop.f32.mrf.mxu1  ;;  %v6995_v28 = vpop.f32.mrf.mxu0 }
 0x411   : > { %8890 = vst [vmem:[#allocation142_spill] sm:$0xff] %v6993_v16  ;;  %8891 = vst [vmem:[#allocation143_spill] sm:$0xff] %v6995_v28 }
 0x412   : > { %v6997_v31 = vpop.f32.mrf.mxu1  ;;  %v6999_v24 = vpop.f32.mrf.mxu0 }
 0x413   : > { %8892 = vst [vmem:[#allocation144_spill] sm:$0xff] %v6997_v31  ;;  %8893 = vst [vmem:[#allocation145_spill] sm:$0xff] %v6999_v24 }
 0x414   : > { %v7001_v25 = vpop.f32.mrf.mxu1  ;;  %v7003_v51 = vpop.f32.mrf.mxu0 }
 0x415   : > { %8894 = vst [vmem:[#allocation146_spill] sm:$0xff] %v7001_v25  ;;  %8895 = vst [vmem:[#allocation147_spill] sm:$0xff] %v7003_v51 }
 0x416   : > { %v7005_v39 = vpop.f32.mrf.mxu1  ;;  %v7007_v30 = vpop.f32.mrf.mxu0 }
 0x417   : > { %8896 = vst [vmem:[#allocation148_spill] sm:$0xff] %v7005_v39  ;;  %8897 = vst [vmem:[#allocation149_spill] sm:$0xff] %v7007_v30 }
 0x418   : > { %v7009_v41 = vpop.f32.mrf.mxu1  ;;  %v7011_v32 = vpop.f32.mrf.mxu0 }
 0x419   : > { %8898 = vst [vmem:[#allocation150_spill] sm:$0xff] %v7009_v41  ;;  %8899 = vst [vmem:[#allocation151_spill] sm:$0xff] %v7011_v32 }
 0x41a   : > { %v7013_v33 = vpop.f32.mrf.mxu1  ;;  %v7015_v16 = vpop.f32.mrf.mxu0 }
 0x41b   : > { %8900 = vst [vmem:[#allocation152_spill] sm:$0xff] %v7013_v33  ;;  %8901 = vst [vmem:[#allocation153_spill] sm:$0xff] %v7015_v16 }
 0x41c   : > { %v7017_v62 = vpop.f32.mrf.mxu1  ;;  %v7019_v31 = vpop.f32.mrf.mxu0 }
 0x41d   : > { %8902 = vst [vmem:[#allocation154_spill] sm:$0xff] %v7017_v62  ;;  %8903 = vst [vmem:[#allocation155_spill] sm:$0xff] %v7019_v31 }
 0x41e   : > { %v7021_v24 = vpop.f32.mrf.mxu1  ;;  %v7023_v25 = vpop.f32.mrf.mxu0 }
 0x41f   : > { %8904 = vst [vmem:[#allocation156_spill] sm:$0xff] %v7021_v24  ;;  %8905 = vst [vmem:[#allocation157_spill] sm:$0xff] %v7023_v25 }
 0x420   : > { %v7025_v51 = vpop.f32.mrf.mxu1  ;;  %v7027_v39 = vpop.f32.mrf.mxu0 }
 0x421   : > { %8906 = vst [vmem:[#allocation158_spill] sm:$0xff] %v7025_v51  ;;  %8907 = vst [vmem:[#allocation159_spill] sm:$0xff] %v7027_v39 }
 0x422   : > { %v7029_v30 = vpop.f32.mrf.mxu1  ;;  %v7031_v41 = vpop.f32.mrf.mxu0 }
 0x423   : > { %8908 = vst [vmem:[#allocation160_spill] sm:$0xff] %v7029_v30  ;;  %8909 = vst [vmem:[#allocation161_spill] sm:$0xff] %v7031_v41 }
 0x424   : > { %v7033_v48 = vpop.f32.mrf.mxu1  ;;  %v7035_v33 = vpop.f32.mrf.mxu0 }
 0x425   : > { %8910 = vst [vmem:[#allocation162_spill] sm:$0xff] %v7033_v48  ;;  %8911 = vst [vmem:[#allocation163_spill] sm:$0xff] %v7035_v33 }
 0x426   : > { %v7037_v38 = vpop.f32.mrf.mxu1  ;;  %v7039_v62 = vpop.f32.mrf.mxu0 }
 0x427   : > { %8912 = vst [vmem:[#allocation164_spill] sm:$0xff] %v7037_v38  ;;  %8913 = vst [vmem:[#allocation165_spill] sm:$0xff] %v7039_v62 }
 0x428   : > { %v7041_v31 = vpop.f32.mrf.mxu1  ;;  %v7043_v24 = vpop.f32.mrf.mxu0 }
 0x429   : > { %8914 = vst [vmem:[#allocation166_spill] sm:$0xff] %v7041_v31  ;;  %8915 = vst [vmem:[#allocation167_spill] sm:$0xff] %v7043_v24 }
 0x42a   : > { %v7045_v25 = vpop.f32.mrf.mxu1  ;;  %v7047_v40 = vpop.f32.mrf.mxu0 }
 0x42b   : > { %8916 = vst [vmem:[#allocation168_spill] sm:$0xff] %v7045_v25  ;;  %8917 = vst [vmem:[#allocation169_spill] sm:$0xff] %v7047_v40 }
 0x42c   : > { %v7049_v28 = vpop.f32.mrf.mxu1  ;;  %v7051_v16 = vpop.f32.mrf.mxu0 }
 0x42d   : > { %8918 = vst [vmem:[#allocation170_spill] sm:$0xff] %v7049_v28  ;;  %8919 = vst [vmem:[#allocation171_spill] sm:$0xff] %v7051_v16 }
 0x42e   : > { %v7053_v9 = vpop.f32.mrf.mxu1  ;;  %v7055_v48 = vpop.f32.mrf.mxu0 }
 0x42f   : > { %8920 = vst [vmem:[#allocation172_spill] sm:$0xff] %v7053_v9  ;;  %8921 = vst [vmem:[#allocation173_spill] sm:$0xff] %v7055_v48 }
 0x430   : > { %v7057_v33 = vpop.f32.mrf.mxu1  ;;  %v7059_v38 = vpop.f32.mrf.mxu0 }
 0x431   : > { %8922 = vst [vmem:[#allocation174_spill] sm:$0xff] %v7057_v33  ;;  %8923 = vst [vmem:[#allocation175_spill] sm:$0xff] %v7059_v38 }
 0x432   : > { %v7061_v62 = vpop.f32.mrf.mxu1  ;;  %v7063_v49 = vpop.f32.mrf.mxu0 }
 0x433   : > { %8924 = vst [vmem:[#allocation176_spill] sm:$0xff] %v7061_v62  ;;  %8925 = vst [vmem:[#allocation177_spill] sm:$0xff] %v7063_v49 }
 0x434   : > { %v7065_v24 = vpop.f32.mrf.mxu1  ;;  %v7067_v50 = vpop.f32.mrf.mxu0 }
 0x435   : > { %8926 = vst [vmem:[#allocation178_spill] sm:$0xff] %v7065_v24  ;;  %8927 = vst [vmem:[#allocation179_spill] sm:$0xff] %v7067_v50 }
 0x436   : > { %v7069_v40 = vpop.f32.mrf.mxu1  ;;  %v7071_v28 = vpop.f32.mrf.mxu0 }
 0x437   : > { %8928 = vst [vmem:[#allocation180_spill] sm:$0xff] %v7069_v40  ;;  %8929 = vst [vmem:[#allocation181_spill] sm:$0xff] %v7071_v28 }
 0x438   : > { %v7073_v16 = vpop.f32.mrf.mxu1  ;;  %v7075_v9 = vpop.f32.mrf.mxu0 }
 0x439   : > { %8930 = vst [vmem:[#allocation182_spill] sm:$0xff] %v7073_v16  ;;  %8931 = vst [vmem:[#allocation183_spill] sm:$0xff] %v7075_v9 }
 0x43a   : > { %v7077_v48 = vpop.f32.mrf.mxu1  ;;  %v7079_v46 = vpop.f32.mrf.mxu0 }
 0x43b   : > { %8932 = vst [vmem:[#allocation184_spill] sm:$0xff] %v7077_v48  ;;  %8933 = vst [vmem:[#allocation185_spill] sm:$0xff] %v7079_v46 }
 0x43c   : > { %v7081_v38 = vpop.f32.mrf.mxu1  ;;  %v7083_v32 = vpop.f32.mrf.mxu0 }
 0x43d   : > { %8934 = vst [vmem:[#allocation186_spill] sm:$0xff] %v7081_v38  ;;  %8935 = vst [vmem:[#allocation187_spill] sm:$0xff] %v7083_v32 }
 0x43e   : > { %v7085_v49 = vpop.f32.mrf.mxu1  ;;  %v7087_v24 = vpop.f32.mrf.mxu0 }
 0x43f   : > { %8936 = vst [vmem:[#allocation188_spill] sm:$0xff] %v7085_v49  ;;  %8937 = vst [vmem:[#allocation189_spill] sm:$0xff] %v7087_v24 }
 0x440   : > { %v7089_v50 = vpop.f32.mrf.mxu1  ;;  %v7091_v40 = vpop.f32.mrf.mxu0 }
 0x441   : > { %8938 = vst [vmem:[#allocation190_spill] sm:$0xff] %v7089_v50  ;;  %8939 = vst [vmem:[#allocation191_spill] sm:$0xff] %v7091_v40 }
 0x442   : > { %v7093_v28 = vpop.f32.mrf.mxu1  ;;  %v7095_v16 = vpop.f32.mrf.mxu0 }
 0x443   : > { %8940 = vst [vmem:[#allocation192_spill] sm:$0xff] %v7093_v28  ;;  %8941 = vst [vmem:[#allocation193_spill] sm:$0xff] %v7095_v16 }
 0x444   : > { %v7097_v9 = vpop.f32.mrf.mxu1  ;;  %v7099_v48 = vpop.f32.mrf.mxu0 }
 0x445   : > { %8942 = vst [vmem:[#allocation194_spill] sm:$0xff] %v7097_v9  ;;  %8943 = vst [vmem:[#allocation195_spill] sm:$0xff] %v7099_v48  ;;  %v2683_v9 = vmax.f32 %v6839_v5, %v6848_v6  ;;  %v2692_v48 = vmax.f32 %v6852_v8, %v6856_v11 }
 0x446   : > { %v7101_v46 = vpop.f32.mrf.mxu1  ;;  %v7103_v38 = vpop.f32.mrf.mxu0 }
 0x447   : > { %8944 = vst [vmem:[#allocation196_spill] sm:$0xff] %v7101_v46  ;;  %8945 = vst [vmem:[#allocation197_spill] sm:$0xff] %v7103_v38  ;;  %v2701_v38 = vmax.f32 %v6860_v13, %v6867_v15  ;;  %v2684_v47 = vmax.f32 %v2683_v9, %v6841_v20  ;;  %v2710_v15 = vmax.f32 %v6871_v18, %v6875_v34  ;;  %v9082_v18 = vld [vmem:[#allocation140_spill] sm:$0xff] }
 0x448   : > { %v7105_v32 = vpop.f32.mrf.mxu1  ;;  %v7107_v49 = vpop.f32.mrf.mxu0  ;;  %v2665_v9 = vmax.f32 %v6817_v60, %v6827_v63  ;;  %v2693_v13 = vmax.f32 %v2692_v48, %v6854_v10  ;;  %v2613_v63 = vmax.f32 %v2612_v37, %v6763_v45  ;;  %v2576_v45 = vmax.f32 %v2575_v36, %v6709_v21 }
 0x449   : > { %8946 = vst [vmem:[#allocation198_spill] sm:$0xff] %v7105_v32  ;;  %8947 = vst [vmem:[#allocation199_spill] sm:$0xff] %v7107_v49  ;;  %v2685_v8 = vmax.f32 %v2684_v47, %v6850_v7  ;;  %v2711_v55 = vmax.f32 %v2710_v15, %v6873_v26  ;;  %v9063_v7 = vld [vmem:[#allocation155_spill] sm:$0xff] }
 0x44a   : > { %v7109_v24 = vpop.f32.mrf.mxu1  ;;  %v7111_v50 = vpop.f32.mrf.mxu0  ;;  %v2666_v47 = vmax.f32 %v2665_v9, %v6819_v61  ;;  %v2694_v15 = vmax.f32 %v2693_v13, %v6858_v12  ;;  %v2595_v13 = vmax.f32 %v2594_v42, %v6741_v29  ;;  %v8992_v29 = vld [vmem:[#allocation52_spill] sm:$0xff] }
 0x44b   : > { %8948 = vst [vmem:[#allocation200_spill] sm:$0xff] %v7109_v24  ;;  %8949 = vst [vmem:[#allocation201_spill] sm:$0xff] %v7111_v50  ;;  %v2712_v37 = vmax.f32 %v2711_v55, %v6877_v43 }
 0x44c   : > { %v7113_v41 = vpop.f32.mrf.mxu1  ;;  %v7115_v28 = vpop.f32.mrf.mxu0 }
 0x44d   : > { %8950 = vst [vmem:[#allocation202_spill] sm:$0xff] %v7113_v41  ;;  %8951 = vst [vmem:[#allocation203_spill] sm:$0xff] %v7115_v28 }
 0x44e   : > { %v7119_v30 = vpop.f32.mrf.mxu1  ;;  %v7121_v46 = vpop.f32.mrf.mxu0  ;;  %v8987_v21 = vld [vmem:[#allocation197_spill] sm:$0xff] }
 0x44f   : > { %8952 = vst [vmem:[#allocation204_spill] sm:$0xff] %v7119_v30  ;;  %8953 = vst [vmem:[#allocation205_spill] sm:$0xff] %v7121_v46  ;;  %v2702_v30 = vmax.f32 %v2701_v38, %v6862_v14 }
 0x450   : > { %v7127_v56 = vpop.f32.mrf.mxu1  ;;  %v7129_v44 = vpop.f32.mrf.mxu0 }
 0x451   : > { %8954 = vst [vmem:[#allocation206_spill] sm:$0xff] %v7127_v56  ;;  %8955 = vst [vmem:[#allocation207_spill] sm:$0xff] %v7129_v44  ;;  %v2703_v34 = vmax.f32 %v2702_v30, %v6869_v17  ;;  %v2686_v58 = vmax.f32 %v2685_v8, %v7127_v56  ;;  %v2674_v30 = vmax.f32 %v6831_v1, %v6835_v3  ;;  %v9081_v17 = vld [vmem:[#allocation135_spill] sm:$0xff]  ;;  %v9093_v44 = vld [vmem:[#allocation130_spill] sm:$0xff] }
 0x452   : > { %v7134_v6 = vpop.f32.mrf.mxu1  ;;  %v7136_v5 = vpop.f32.mrf.mxu0  ;;  %v2614_v56 = vmax.f32 %v2613_v63, %v7057_v33  ;;  %v2647_v33 = vmax.f32 %v6795_v52, %v6805_v54 }
 0x453   : > { %8956 = vst [vmem:[#allocation208_spill] sm:$0xff] %v7134_v6  ;;  %8957 = vst [vmem:[#allocation209_spill] sm:$0xff] %v7136_v5  ;;  %v2687_v9 = vmax.f32 %v2686_v58, %v7134_v6  ;;  %v2675_v55 = vmax.f32 %v2674_v30, %v6833_v2  ;;  %v9051_v2 = vld [vmem:[#allocation29_spill] sm:$0xff] }
 0x454   : > { %v7146_v20 = vpop.f32.mrf.mxu1  ;;  %v7148_v11 = vpop.f32.mrf.mxu0  ;;  %v2615_v36 = vmax.f32 %v2614_v56, %v7061_v62  ;;  %v2648_v56 = vmax.f32 %v2647_v33, %v6797_v53 }
 0x455   : > { %8958 = vst [vmem:[#allocation210_spill] sm:$0xff] %v7146_v20  ;;  %8959 = vst [vmem:[#allocation211_spill] sm:$0xff] %v7148_v11  ;;  %v2695_v19 = vmax.f32 %v2694_v15, %v7146_v20  ;;  %v9085_v11 = vld [vmem:[#allocation142_spill] sm:$0xff] }
 0x456   : > { %v7152_v38 = vpop.f32.mrf.mxu1  ;;  %v7154_v14 = vpop.f32.mrf.mxu0  ;;  %v2616_v33 = vmax.f32 %v2615_v36, %v7027_v39 }
 0x457   : > { %8960 = vst [vmem:[#allocation212_spill] sm:$0xff] %v7152_v38  ;;  %8961 = vst [vmem:[#allocation213_spill] sm:$0xff] %v7154_v14  ;;  %v2696_v6 = vmax.f32 %v2695_v19, %v7152_v38  ;;  %v9083_v14 = vld [vmem:[#allocation138_spill] sm:$0xff] }
 0x458   : > { %v7164_v48 = vpop.f32.mrf.mxu1  ;;  %v7166_v60 = vpop.f32.mrf.mxu0 }
 0x459   : > { %8962 = vst [vmem:[#allocation214_spill] sm:$0xff] %v7164_v48  ;;  %8963 = vst [vmem:[#allocation215_spill] sm:$0xff] %v7166_v60  ;;  %v2704_v8 = vmax.f32 %v2703_v34, %v7164_v48  ;;  %v2667_v34 = vmax.f32 %v2666_v47, %v6829_v0  ;;  %v9100_v60 = vld [vmem:[#allocation110_spill] sm:$0xff] }
 0x45a   : > { %v7173_v22 = vpop.f32.mrf.mxu1  ;;  %v7175_v35 = vpop.f32.mrf.mxu0 }
 0x45b   : > { %8964 = vst [vmem:[#allocation216_spill] sm:$0xff] %v7173_v22  ;;  %8965 = vst [vmem:[#allocation217_spill] sm:$0xff] %v7175_v35  ;;  %v2705_v27 = vmax.f32 %v2704_v8, %v7173_v22  ;;  %v2596_v8 = vmax.f32 %v2595_v13, %v7041_v31  ;;  %v2668_v42 = vmax.f32 %v2667_v34, %v7105_v32 }
 0x45c   : > { %v7184_v48 = vpop.f32.mrf.mxu1  ;;  %v7186_v63 = vpop.f32.mrf.mxu0  ;;  %v2656_v34 = vmax.f32 %v6809_v57, %v6813_v59  ;;  %v2676_v31 = vmax.f32 %v2675_v55, %v6837_v4  ;;  %v9002_v59 = vld [vmem:[#allocation187_spill] sm:$0xff]  ;;  %v9021_v57 = vld [vmem:[#allocation53_spill] sm:$0xff] }
 0x45d   : > { %8966 = vst [vmem:[#allocation218_spill] sm:$0xff] %v7184_v48  ;;  %8967 = vst [vmem:[#allocation219_spill] sm:$0xff] %v7186_v63  ;;  %v2713_v58 = vmax.f32 %v2712_v37, %v7184_v48  ;;  %v2706_v15 = vmax.f32 %v2705_v27, %v7107_v49  ;;  %v2688_v37 = vmax.f32 %v2687_v9, %v7091_v40  ;;  %v9089_v63 = vld [vmem:[#allocation120_spill] sm:$0xff] }
 0x45e   : > { %v7196_v47 = vpop.f32.mrf.mxu1  ;;  %v7198_v20 = vpop.f32.mrf.mxu0  ;;  %v2577_v27 = vmax.f32 %v2576_v45, %v6719_v23  ;;  %v2597_v9 = vmax.f32 %v2596_v8, %v7045_v25  ;;  %v2669_v45 = vmax.f32 %v2668_v42, %v7109_v24  ;;  %v2677_v32 = vmax.f32 %v2676_v31, %v7113_v41  ;;  %v8976_v8 = vld [vmem:[#allocation48_spill] sm:$0xff]  ;;  %v8977_v42 = vld [vmem:[#allocation46_spill] sm:$0xff]  ;;  %v8978_v25 = vld [vmem:[#allocation57_spill] sm:$0xff] }
 0x45f   : > { %8968 = vst [vmem:[#allocation220_spill] sm:$0xff] %v7196_v47  ;;  %8969 = vst [vmem:[#allocation221_spill] sm:$0xff] %v7198_v20  ;;  %v2714_v22 = vmax.f32 %v2713_v58, %v7196_v47  ;;  %v2707_v30 = vmax.f32 %v2706_v15, %v7111_v50  ;;  %v2689_v40 = vmax.f32 %v2688_v37, %v7095_v16  ;;  %v8980_v31 = vld [vmem:[#allocation160_spill] sm:$0xff]  ;;  %v8984_v41 = vld [vmem:[#allocation151_spill] sm:$0xff] }
 0x460   : > { %v7205_v48 = vpop.f32.mrf.mxu1  ;;  %v7207_v13 = vpop.f32.mrf.mxu0  ;;  %v2578_v58 = vmax.f32 %v2577_v27, %v7025_v51  ;;  %v2629_v51 = vmax.f32 %v8977_v42, %v8976_v8  ;;  %v2649_v24 = vmax.f32 %v2648_v56, %v8978_v25  ;;  %v8985_v16 = vld [vmem:[#allocation190_spill] sm:$0xff]  ;;  %v8988_v23 = vld [vmem:[#allocation183_spill] sm:$0xff] }
 0x461   : > { %8970 = vst [vmem:[#allocation222_spill] sm:$0xff] %v7207_v13  ;;  %2708 = vmax.xlane.f32.xlu1 %v2707_v30  ;;  %v2715_v19 = vmax.f32 %v2714_v22, %v7115_v28  ;;  %v8973_v30 = vld [vmem:[#allocation195_spill] sm:$0xff]  ;;  %v8993_v8 = vld [vmem:[#allocation50_spill] sm:$0xff] }
 0x462   : > { %v7217_v15 = vpop.f32.mrf.mxu1  ;;  %v7219_v62 = vpop.f32.mrf.mxu0  ;;  %v2697_v22 = vmax.f32 %v2696_v6, %v8973_v30  ;;  %v8979_v28 = vld [vmem:[#allocation59_spill] sm:$0xff]  ;;  %v2579_v36 = vmax.f32 %v2578_v58, %v8980_v31  ;;  %v8983_v6 = vld [vmem:[#allocation161_spill] sm:$0xff]  ;;  %v2598_v30 = vmax.f32 %v2597_v9, %v8984_v41  ;;  %v2650_v50 = vmax.f32 %v2649_v24, %v8985_v16  ;;  %v8999_v16 = vld [vmem:[#allocation192_spill] sm:$0xff] }
 0x463   : > { %8971 = vst [vmem:[#allocation223_spill] sm:$0xff] %v7217_v15  ;;  %8972 = vst [vmem:[#allocation224_spill] sm:$0xff] %v7219_v62  ;;  %v2716_v55 = vmax.f32 %v2715_v19, %v7121_v46  ;;  %v2657_v49 = vmax.f32 %v2656_v34, %v8979_v28  ;;  %v2617_v39 = vmax.f32 %v2616_v33, %v8983_v6  ;;  %v8986_v46 = vld [vmem:[#allocation204_spill] sm:$0xff]  ;;  %v8991_v58 = vld [vmem:[#allocation47_spill] sm:$0xff] }
 0x464   : > { %v7226_v38 = vpop.f32.mrf.mxu1  ;;  %v7228_v27 = vpop.f32.mrf.mxu0  ;;  %v2678_v47 = vmax.f32 %v2677_v32, %v8986_v46  ;;  %v2698_v56 = vmax.f32 %v2697_v22, %v8987_v21  ;;  %v2670_v34 = vmax.f32 %v2669_v45, %v8988_v23  ;;  %v2630_v31 = vmax.f32 %v2629_v51, %v8991_v58  ;;  %v8994_v33 = vld [vmem:[#allocation61_spill] sm:$0xff]  ;;  %v8998_v45 = vld [vmem:[#allocation143_spill] sm:$0xff]  ;;  %v9000_v46 = vld [vmem:[#allocation194_spill] sm:$0xff] }
 0x465   : > { %8974 = vst [vmem:[#allocation225_spill] sm:$0xff] %v7226_v38  ;;  %8975 = vst [vmem:[#allocation226_spill] sm:$0xff] %v7228_v27  ;;  %2690 = vmax.xlane.f32.xlu1 %v2689_v40  ;;  %2717 = vmax.xlane.f32.xlu0 %v2716_v55  ;;  %v2638_v25 = vmax.f32 %v8993_v8, %v8992_v29  ;;  %v2658_v6 = vmax.f32 %v2657_v49, %v8994_v33  ;;  %v8997_v9 = vld [vmem:[#allocation153_spill] sm:$0xff]  ;;  %v9015_v28 = vld [vmem:[#allocation175_spill] sm:$0xff] }
 0x466   : > { %v7235_v37 = vpop.f32.mrf.mxu1  ;;  %v7237_v19 = vpop.f32.mrf.mxu0  ;;  %v2599_v22 = vmax.f32 %v2598_v30, %v8997_v9  ;;  %v2580_v41 = vmax.f32 %v2579_v36, %v8998_v45  ;;  %v2651_v23 = vmax.f32 %v2650_v50, %v8999_v16  ;;  %v9001_v51 = vld [vmem:[#allocation185_spill] sm:$0xff]  ;;  %v2679_v29 = vmax.f32 %v2678_v47, %v9002_v59  ;;  %v9008_v30 = vld [vmem:[#allocation51_spill] sm:$0xff]  ;;  %v9012_v47 = vld [vmem:[#allocation182_spill] sm:$0xff] }
 0x467   : > { %8981 = vst [vmem:[#allocation227_spill] sm:$0xff] %v7235_v37  ;;  %8982 = vst [vmem:[#allocation228_spill] sm:$0xff] %v7237_v19  ;;  %v2659_v21 = vmax.f32 %v2658_v6, %v9000_v46  ;;  %v2671_v58 = vmax.f32 %v2670_v34, %v9001_v51  ;;  %v9007_v8 = vld [vmem:[#allocation49_spill] sm:$0xff]  ;;  %v2639_v9 = vmax.f32 %v2638_v25, %v9008_v30  ;;  %v9013_v46 = vld [vmem:[#allocation196_spill] sm:$0xff] }
 0x468   : > { %v7245_v40 = vpop.f32.mrf.mxu1  ;;  %v7247_v55 = vpop.f32.mrf.mxu0  ;;  %v2631_v42 = vmax.f32 %v2630_v31, %v9007_v8  ;;  %v9011_v6 = vld [vmem:[#allocation145_spill] sm:$0xff]  ;;  %v9018_v25 = vld [vmem:[#allocation36_spill] sm:$0xff]  ;;  %v9020_v30 = vld [vmem:[#allocation43_spill] sm:$0xff] }
 0x469   : > { %8989 = vst [vmem:[#allocation229_spill] sm:$0xff] %v7245_v40  ;;  %8990 = vst [vmem:[#allocation230_spill] sm:$0xff] %v7247_v55  ;;  %2699 = vmax.xlane.f32.xlu1 %v2698_v56  ;;  %2618 = vmax.xlane.f32.xlu0 %v2617_v39  ;;  %v9005_v39 = vld [vmem:[#allocation44_spill] sm:$0xff]  ;;  %v9006_v56 = vld [vmem:[#allocation42_spill] sm:$0xff]  ;;  %v2581_v34 = vmax.f32 %v2580_v41, %v9011_v6  ;;  %v2660_v16 = vmax.f32 %v2659_v21, %v9013_v46 }
 0x46a   : > { %v7253_v24 = vpop.f32.mrf.mxu1  ;;  %v7255_v32 = vpop.f32.mrf.mxu0  ;;  %v2620_v33 = vmax.f32 %v9006_v56, %v9005_v39  ;;  %v2632_v45 = vmax.f32 %v2631_v42, %v9012_v47  ;;  %v9014_v59 = vld [vmem:[#allocation189_spill] sm:$0xff]  ;;  %v2652_v56 = vmax.f32 %v2651_v23, %v9015_v28  ;;  %v2640_v53 = vmax.f32 %v2639_v9, %v9021_v57  ;;  %v9025_v23 = vld [vmem:[#allocation186_spill] sm:$0xff]  ;;  %v9027_v46 = vld [vmem:[#allocation179_spill] sm:$0xff] }
 0x46b   : > { %8995 = vst [vmem:[#allocation231_spill] sm:$0xff] %v7253_v24  ;;  %8996 = vst [vmem:[#allocation232_spill] sm:$0xff] %v7255_v32  ;;  %v2680_v51 = vmax.f32 %v2679_v29, %v9014_v59  ;;  %v9024_v29 = vld [vmem:[#allocation184_spill] sm:$0xff]  ;;  %v9026_v47 = vld [vmem:[#allocation177_spill] sm:$0xff]  ;;  %v2661_v59 = vmax.f32 %v2660_v16, %v9027_v46 }
 0x46c   : > { %v7263_v54 = vpop.f32.mrf.mxu1  ;;  %v7265_v49 = vpop.f32.mrf.mxu0  ;;  %v2621_v8 = vmax.f32 %v2620_v33, %v9020_v30  ;;  %v2633_v42 = vmax.f32 %v2632_v45, %v9024_v29  ;;  %v2641_v6 = vmax.f32 %v2640_v53, %v9025_v23  ;;  %v2653_v28 = vmax.f32 %v2652_v56, %v9026_v47  ;;  %v9030_v33 = vld [vmem:[#allocation28_spill] sm:$0xff]  ;;  %v9031_v9 = vld [vmem:[#allocation26_spill] sm:$0xff]  ;;  %v9033_v30 = vld [vmem:[#allocation45_spill] sm:$0xff] }
 0x46d   : > { %9003 = vst [vmem:[#allocation233_spill] sm:$0xff] %v7263_v54  ;;  %9004 = vst [vmem:[#allocation234_spill] sm:$0xff] %v7265_v49  ;;  %2672 = vmax.xlane.f32.xlu1 %v2671_v58  ;;  %2600 = vmax.xlane.f32.xlu0 %v2599_v22  ;;  %v9019_v58 = vld [vmem:[#allocation34_spill] sm:$0xff]  ;;  %v9037_v23 = vld [vmem:[#allocation188_spill] sm:$0xff] }
 0x46e   : > { %v7271_v50 = vpop.f32.mrf.mxu1  ;;  %v7273_v36 = vpop.f32.mrf.mxu0  ;;  %v2602_v22 = vmax.f32 %v9019_v58, %v9018_v25  ;;  %v2622_v57 = vmax.f32 %v2621_v8, %v9033_v30  ;;  %v9036_v53 = vld [vmem:[#allocation178_spill] sm:$0xff]  ;;  %v2642_v16 = vmax.f32 %v2641_v6, %v9037_v23  ;;  %v9038_v29 = vld [vmem:[#allocation181_spill] sm:$0xff]  ;;  %v9039_v47 = vld [vmem:[#allocation167_spill] sm:$0xff] }
 0x46f   : > { %9009 = vst [vmem:[#allocation235_spill] sm:$0xff] %v7271_v50  ;;  %9010 = vst [vmem:[#allocation236_spill] sm:$0xff] %v7273_v36  ;;  %v2662_v46 = vmax.f32 %v2661_v59, %v9038_v29  ;;  %v2634_v4 = vmax.f32 %v2633_v42, %v9039_v47  ;;  %v9043_v8 = vld [vmem:[#allocation37_spill] sm:$0xff]  ;;  %v9047_v6 = vld [vmem:[#allocation180_spill] sm:$0xff] }
 0x470   : > { %v7280_v39 = vpop.f32.mrf.mxu1  ;;  %v7282_v31 = vpop.f32.mrf.mxu0  ;;  %v2623_v56 = vmax.f32 %v2622_v57, %v9036_v53  ;;  %v9046_v57 = vld [vmem:[#allocation170_spill] sm:$0xff]  ;;  %v9048_v59 = vld [vmem:[#allocation169_spill] sm:$0xff]  ;;  %v9049_v42 = vld [vmem:[#allocation171_spill] sm:$0xff] }
 0x471   : > { %9016 = vst [vmem:[#allocation237_spill] sm:$0xff] %v7280_v39  ;;  %9017 = vst [vmem:[#allocation238_spill] sm:$0xff] %v7282_v31  ;;  %2681 = vmax.xlane.f32.xlu1 %v2680_v51  ;;  %2582 = vmax.xlane.f32.xlu0 %v2581_v34  ;;  %v2584_v51 = vmax.f32 %v9031_v9, %v9030_v33  ;;  %v9032_v34 = vld [vmem:[#allocation35_spill] sm:$0xff]  ;;  %v2635_v29 = vmax.f32 %v2634_v4, %v9048_v59  ;;  %v9062_v59 = vld [vmem:[#allocation165_spill] sm:$0xff] }
 0x472   : > { %v7288_v41 = vpop.f32.mrf.mxu1  ;;  %v7290_v21 = vpop.f32.mrf.mxu0  ;;  %v2603_v25 = vmax.f32 %v2602_v22, %v9032_v34  ;;  %v9042_v22 = vld [vmem:[#allocation27_spill] sm:$0xff]  ;;  %v2624_v23 = vmax.f32 %v2623_v56, %v9047_v6  ;;  %v2643_v47 = vmax.f32 %v2642_v16, %v9049_v42  ;;  %v9090_v19 = vld [vmem:[#allocation118_spill] sm:$0xff]  ;;  %v9092_v37 = vld [vmem:[#allocation132_spill] sm:$0xff] }
 0x473   : > { %9022 = vst [vmem:[#allocation239_spill] sm:$0xff] %v7288_v41  ;;  %9023 = vst [vmem:[#allocation240_spill] sm:$0xff] %v7290_v21  ;;  %v2585_v9 = vmax.f32 %v2584_v51, %v9042_v22  ;;  %v9057_v56 = vld [vmem:[#allocation163_spill] sm:$0xff]  ;;  %v2791_v35 = vmax.f32 %v9090_v19, %v9089_v63  ;;  %v9098_v36 = vld [vmem:[#allocation146_spill] sm:$0xff] }
 0x474   : > { %v7296_v52 = vpop.f32.mrf.mxu1  ;;  %v7298_v58 = vpop.f32.mrf.mxu0  ;;  %v2625_v6 = vmax.f32 %v2624_v23, %v9057_v56  ;;  %v9067_v23 = vld [vmem:[#allocation157_spill] sm:$0xff]  ;;  %v9096_v27 = vld [vmem:[#allocation139_spill] sm:$0xff]  ;;  %v9099_v50 = vld [vmem:[#allocation112_spill] sm:$0xff] }
 0x475   : > { %9028 = vst [vmem:[#allocation241_spill] sm:$0xff] %v7296_v52  ;;  %9029 = vst [vmem:[#allocation242_spill] sm:$0xff] %v7298_v58  ;;  %2654 = vmax.xlane.f32.xlu1 %v2653_v28  ;;  %v2604_v28 = vmax.f32 %v2603_v25, %v9043_v8  ;;  %v2586_v1 = vmax.f32 %v2585_v9, %v9051_v2  ;;  %v9054_v25 = vld [vmem:[#allocation162_spill] sm:$0xff]  ;;  %v9055_v8 = vld [vmem:[#allocation172_spill] sm:$0xff] }
 0x476   : > { %v7304_v61 = vpop.f32.mrf.mxu1  ;;  %v7306_v45 = vpop.f32.mrf.mxu0  ;;  %v2626_v2 = vmax.f32 %v2625_v6, %v9062_v59  ;;  %v9072_v6 = vld [vmem:[#allocation149_spill] sm:$0xff]  ;;  %v9105_v38 = vld [vmem:[#allocation119_spill] sm:$0xff] }
 0x477   : > { %9034 = vst [vmem:[#allocation243_spill] sm:$0xff] %v7304_v61  ;;  %9035 = vst [vmem:[#allocation244_spill] sm:$0xff] %v7306_v45  ;;  %v2605_v53 = vmax.f32 %v2604_v28, %v9046_v57  ;;  %v2587_v22 = vmax.f32 %v2586_v1, %v9054_v25  ;;  %v9056_v28 = vld [vmem:[#allocation173_spill] sm:$0xff]  ;;  %v9125_v61 = vld [vmem:[#allocation94_spill] sm:$0xff] }
 0x478   : > { %v7312_v0 = vpop.f32.mrf.mxu1  ;;  %v7314_v33 = vpop.f32.mrf.mxu0  ;;  %v2644_v57 = vmax.f32 %v2643_v47, %v9056_v28  ;;  %v9108_v15 = vld [vmem:[#allocation129_spill] sm:$0xff] }
 0x479   : > { %9040 = vst [vmem:[#allocation245_spill] sm:$0xff] %v7312_v0  ;;  %9041 = vst [vmem:[#allocation246_spill] sm:$0xff] %v7314_v33  ;;  %2663 = vmax.xlane.f32.xlu1 %v2662_v46  ;;  %v2606_v12 = vmax.f32 %v2605_v53, %v9055_v8 }
 0x47a   : > { %v7318_v34 = vpop.f32.mrf.mxu1  ;;  %v7320_v30 = vpop.f32.mrf.mxu0 }
 0x47b   : > { %9044 = vst [vmem:[#allocation247_spill] sm:$0xff] %v7318_v34  ;;  %9045 = vst [vmem:[#allocation248_spill] sm:$0xff] %v7320_v30  ;;  %v2607_v10 = vmax.f32 %v2606_v12, %v9063_v7  ;;  %v9075_v7 = vld [vmem:[#allocation134_spill] sm:$0xff] }
 0x47c   : > { %v7326_v3 = vpop.f32.mrf.mxu1  ;;  %v7329_v51 = vpop.f32.mrf.mxu0 }
 0x47d   : > { %9050 = vst [vmem:[#allocation249_spill] sm:$0xff] %v7326_v3  ;;  %2636 = vmax.xlane.f32.xlu1 %v2635_v29  ;;  %9052 = vst [vmem:[#allocation250_spill] sm:$0xff] %v7329_v51  ;;  %v9061_v29 = vld [vmem:[#allocation164_spill] sm:$0xff]  ;;  %v2608_v25 = vmax.f32 %v2607_v10, %v9067_v23 }
 0x47e   : > { %v7331_v46 = vpop.f32.mrf.mxu1  ;;  %v7339_v16 = vpop.f32.mrf.mxu0  ;;  %v2588_v9 = vmax.f32 %v2587_v22, %v9061_v29 }
 0x47f   : > { %9053 = vst [vmem:[#allocation251_spill] sm:$0xff] %v7331_v46  ;;  %9059 = vst [vmem:[#allocation253_spill] sm:$0xff] %v7339_v16 }
 0x480   : > { %v7337_v4 = vpop.f32.mrf.mxu1  ;;  %v7348_v53 = vpop.f32.mrf.mxu0 }
 0x481   : > { %9058 = vst [vmem:[#allocation252_spill] sm:$0xff] %v7337_v4  ;;  %2645 = vmax.xlane.f32.xlu1 %v2644_v57  ;;  %9065 = vst [vmem:[#allocation256_spill] sm:$0xff] %v7348_v53  ;;  %v9068_v57 = vld [vmem:[#allocation147_spill] sm:$0xff] }
 0x482   : > { %v7341_v42 = vpop.f32.mrf.mxu1  ;;  %v2589_v8 = vmax.f32 %v2588_v9, %v9068_v57  ;;  %v7356_v28 = vpop.f32.mrf.mxu0  ;;  %v9078_v9 = vld [vmem:[#allocation128_spill] sm:$0xff]  ;;  %v9079_v57 = vld [vmem:[#allocation126_spill] sm:$0xff] }
 0x483   : > { %9060 = vst [vmem:[#allocation254_spill] sm:$0xff] %v7341_v42  ;;  %9070 = vst [vmem:[#allocation259_spill] sm:$0xff] %v7356_v28  ;;  %v2809_v23 = vmax.f32 %v9079_v57, %v9078_v9  ;;  %v9091_v9 = vld [vmem:[#allocation127_spill] sm:$0xff] }
 0x484   : > { %v7346_v1 = vpop.f32.mrf.mxu1  ;;  %v2590_v12 = vmax.f32 %v2589_v8, %v9072_v6  ;;  %v7365_v43 = vpop.f32.mrf.mxu0  ;;  %v2836_v8 = vmax.f32 %v9083_v14, %v9082_v18  ;;  %v9084_v6 = vld [vmem:[#allocation144_spill] sm:$0xff]  ;;  %v9095_v18 = vld [vmem:[#allocation137_spill] sm:$0xff] }
 0x485   : > { %9064 = vst [vmem:[#allocation255_spill] sm:$0xff] %v7346_v1  ;;  %2627 = vmax.xlane.f32.xlu1 %v2626_v2  ;;  %v9074_v2 = vld [vmem:[#allocation136_spill] sm:$0xff]  ;;  %9076 = vst [vmem:[#allocation262_spill] sm:$0xff] %v7365_v43  ;;  %v2845_v20 = vmax.f32 %v9085_v11, %v9084_v6  ;;  %v2810_v57 = vmax.f32 %v2809_v23, %v9091_v9  ;;  %v9104_v9 = vld [vmem:[#allocation154_spill] sm:$0xff] }
 0x486   : > { %v7350_v47 = vpop.f32.mrf.mxu1  ;;  %v2827_v59 = vmax.f32 %v9075_v7, %v9074_v2  ;;  %v7378_v5 = vpop.f32.mrf.mxu0  ;;  %v9088_v2 = vld [vmem:[#allocation150_spill] sm:$0xff]  ;;  %v2837_v6 = vmax.f32 %v2836_v8, %v9096_v27  ;;  %v9097_v11 = vld [vmem:[#allocation148_spill] sm:$0xff] }
 0x487   : > { %9066 = vst [vmem:[#allocation257_spill] sm:$0xff] %v7350_v47  ;;  %9086 = vst [vmem:[#allocation265_spill] sm:$0xff] %v7378_v5  ;;  %v2846_v7 = vmax.f32 %v2845_v20, %v9088_v2  ;;  %v2854_v62 = vmax.f32 %v9098_v36, %v9097_v11  ;;  %v2773_v20 = vmax.f32 %v9100_v60, %v9099_v50  ;;  %v9103_v23 = vld [vmem:[#allocation152_spill] sm:$0xff]  ;;  %v9107_v8 = vld [vmem:[#allocation122_spill] sm:$0xff] }
 0x488   : > { %v7354_v56 = vpop.f32.mrf.mxu1  ;;  %v2828_v26 = vmax.f32 %v2827_v59, %v9081_v17  ;;  %v2818_v59 = vmax.f32 %v9093_v44, %v9092_v37  ;;  %v7396_v2 = vpop.f32.mrf.mxu0  ;;  %v2811_v11 = vmax.f32 %v2810_v57, %v9108_v15  ;;  %v9109_v36 = vld [vmem:[#allocation131_spill] sm:$0xff]  ;;  %v9111_v50 = vld [vmem:[#allocation141_spill] sm:$0xff]  ;;  %v9117_v57 = vld [vmem:[#allocation156_spill] sm:$0xff] }
 0x489   : > { %9069 = vst [vmem:[#allocation258_spill] sm:$0xff] %v7354_v56  ;;  %2609 = vmax.xlane.f32.xlu1 %v2608_v25  ;;  %9101 = vst [vmem:[#allocation268_spill] sm:$0xff] %v7396_v2  ;;  %v2847_v19 = vmax.f32 %v2846_v7, %v9103_v23  ;;  %v2855_v37 = vmax.f32 %v2854_v62, %v9104_v9  ;;  %v2838_v45 = vmax.f32 %v2837_v6, %v9111_v50  ;;  %v9112_v7 = vld [vmem:[#allocation104_spill] sm:$0xff]  ;;  %v9113_v23 = vld [vmem:[#allocation102_spill] sm:$0xff] }
 0x48a   : > { %v7358_v22 = vpop.f32.mrf.mxu1  ;;  %v2829_v14 = vmax.f32 %v2828_v26, %v9095_v18  ;;  %v2792_v26 = vmax.f32 %v2791_v35, %v9105_v38  ;;  %v9106_v18 = vld [vmem:[#allocation124_spill] sm:$0xff]  ;;  %v2819_v49 = vmax.f32 %v2818_v59, %v9109_v36  ;;  %v2755_v62 = vmax.f32 %v9113_v23, %v9112_v7  ;;  %v9114_v9 = vld [vmem:[#allocation111_spill] sm:$0xff]  ;;  %v9120_v23 = vld [vmem:[#allocation121_spill] sm:$0xff] }
 0x48b   : > { %9071 = vst [vmem:[#allocation260_spill] sm:$0xff] %v7358_v22  ;;  %v2800_v27 = vmax.f32 %v9107_v8, %v9106_v18  ;;  %v2812_v35 = vmax.f32 %v2811_v11, %v7354_v56  ;;  %v2856_v15 = vmax.f32 %v2855_v37, %v9117_v57  ;;  %v9122_v11 = vld [vmem:[#allocation133_spill] sm:$0xff]  ;;  %v9124_v38 = vld [vmem:[#allocation96_spill] sm:$0xff] }
 0x48c   : > { %v7361_v29 = vpop.f32.mrf.mxu1  ;;  %v2793_v7 = vmax.f32 %v2792_v26, %v9120_v23  ;;  %v2820_v56 = vmax.f32 %v2819_v49, %v9122_v11  ;;  %v2737_v37 = vmax.f32 %v9125_v61, %v9124_v38  ;;  %v9134_v38 = vld [vmem:[#allocation88_spill] sm:$0xff] }
 0x48d   : > { %9073 = vst [vmem:[#allocation261_spill] sm:$0xff] %v7361_v29  ;;  %2591 = vmax.xlane.f32.xlu1 %v2590_v12 }
 0x48e   : > { %v7367_v10 = vpop.f32.mrf.mxu1  ;;  %v2821_v26 = vmax.f32 %v2820_v56, %v7361_v29  ;;  %v9133_v56 = vld [vmem:[#allocation125_spill] sm:$0xff] }
 0x48f   : > { %9077 = vst [vmem:[#allocation263_spill] sm:$0xff] %v7367_v10 }
 0x490   : > { %v7371_v25 = vpop.f32.mrf.mxu1 }
 0x491   : > { %9080 = vst [vmem:[#allocation264_spill] sm:$0xff] %v7371_v25  ;;  %v2830_v44 = vmax.f32 %v2829_v14, %v7371_v25  ;;  %v2774_v14 = vmax.f32 %v2773_v20, %v9114_v9  ;;  %v7416_v25 = vpop.f32.mrf.mxu0  ;;  %v9121_v20 = vld [vmem:[#allocation123_spill] sm:$0xff] }
 0x492   : > { %v7380_v12 = vpop.f32.mrf.mxu1  ;;  %9115 = vst [vmem:[#allocation271_spill] sm:$0xff] %v7416_v25  ;;  %v2801_v9 = vmax.f32 %v2800_v27, %v9121_v20  ;;  %v9136_v20 = vld [vmem:[#allocation95_spill] sm:$0xff] }
 0x493   : > { %9087 = vst [vmem:[#allocation266_spill] sm:$0xff] %v7380_v12  ;;  %v2831_v59 = vmax.f32 %v2830_v44, %v7380_v12  ;;  %v2794_v12 = vmax.f32 %v2793_v7, %v7337_v4  ;;  %v7439_v27 = vpop.f32.mrf.mxu0  ;;  %v9131_v7 = vld [vmem:[#allocation113_spill] sm:$0xff] }
 0x494   : > { %v7388_v17 = vpop.f32.mrf.mxu1  ;;  %9127 = vst [vmem:[#allocation121_spill] sm:$0xff] %v7439_v27  ;;  %v2775_v4 = vmax.f32 %v2774_v14, %v9131_v7  ;;  %v2802_v29 = vmax.f32 %v2801_v9, %v9133_v56  ;;  %v2822_v9 = vmax.f32 %v2821_v26, %v7367_v10 }
 0x495   : > { %9094 = vst [vmem:[#allocation267_spill] sm:$0xff] %v7388_v17  ;;  %v2839_v8 = vmax.f32 %v2838_v45, %v7388_v17  ;;  %v9126_v17 = vld [vmem:[#allocation103_spill] sm:$0xff] }
 0x496   : > { %v7398_v63 = vpop.f32.mrf.mxu1 }
 0x497   : > { %9102 = vst [vmem:[#allocation269_spill] sm:$0xff] %v7398_v63 }
 0x498   : > { %v7408_v60 = vpop.f32.mrf.mxu1 }
 0x499   : > { %9110 = vst [vmem:[#allocation270_spill] sm:$0xff] %v7408_v60  ;;  %v2848_v32 = vmax.f32 %v2847_v19, %v7408_v60  ;;  %v9118_v19 = vld [vmem:[#allocation116_spill] sm:$0xff]  ;;  %v9119_v60 = vld [vmem:[#allocation114_spill] sm:$0xff] }
 0x49a   : > { %v7418_v18 = vpop.f32.mrf.mxu1  ;;  %v2782_v50 = vmax.f32 %v9119_v60, %v9118_v19  ;;  %v2840_v60 = vmax.f32 %v2839_v8, %v7398_v63  ;;  %v2738_v8 = vmax.f32 %v2737_v37, %v9136_v20  ;;  %v7459_v63 = vpop.f32.mrf.mxu0 }
 0x49b   : > { %9116 = vst [vmem:[#allocation272_spill] sm:$0xff] %v7418_v18  ;;  %v2849_v6 = vmax.f32 %v2848_v32, %v7418_v18  ;;  %v2756_v32 = vmax.f32 %v2755_v62, %v9126_v17  ;;  %v2813_v18 = vmax.f32 %v2812_v35, %v7358_v22  ;;  %v9130_v62 = vld [vmem:[#allocation106_spill] sm:$0xff]  ;;  %v9132_v35 = vld [vmem:[#allocation115_spill] sm:$0xff] }
 0x49c   : > { %v7429_v36 = vpop.f32.mrf.mxu1  ;;  %v2783_v22 = vmax.f32 %v2782_v50, %v9132_v35  ;;  %v9135_v17 = vld [vmem:[#allocation86_spill] sm:$0xff]  ;;  %v2841_v37 = vmax.f32 %v2840_v60, %v7365_v43 }
 0x49d   : > { %9123 = vst [vmem:[#allocation156_spill] sm:$0xff] %v7429_v36  ;;  %v2857_v44 = vmax.f32 %v2856_v15, %v7429_v36  ;;  %v2850_v45 = vmax.f32 %v2849_v6, %v7396_v2  ;;  %v2832_v6 = vmax.f32 %v2831_v59, %v7348_v53  ;;  %v9129_v2 = vld [vmem:[#allocation108_spill] sm:$0xff]  ;;  %v2719_v19 = vmax.f32 %v9135_v17, %v9134_v38 }
 0x49e   : > { %v7441_v49 = vpop.f32.mrf.mxu1  ;;  %v2764_v36 = vmax.f32 %v9130_v62, %v9129_v2  ;;  %v2795_v59 = vmax.f32 %v2794_v12, %v7341_v42  ;;  %v2803_v53 = vmax.f32 %v2802_v29, %v7346_v1  ;;  %9137 = vst [vmem:[#allocation108_spill] sm:$0xff] %v7459_v63  ;;  %v2814_v50 = vmax.f32 %v2813_v18, %v7314_v33  ;;  %v9141_v12 = vld [vmem:[#allocation107_spill] sm:$0xff]  ;;  %v9142_v29 = vld [vmem:[#allocation117_spill] sm:$0xff]  ;;  %v9144_v33 = vld [vmem:[#allocation92_spill] sm:$0xff] }
 0x49f   : > { %9128 = vst [vmem:[#allocation133_spill] sm:$0xff] %v7441_v49  ;;  %v2858_v61 = vmax.f32 %v2857_v44, %v7441_v49  ;;  %v2851_v15 = vmax.f32 %v2850_v45, %v7416_v25  ;;  %v2776_v45 = vmax.f32 %v2775_v4, %v7312_v0  ;;  %v2833_v14 = vmax.f32 %v2832_v6, %v7356_v28  ;;  %v9140_v4 = vld [vmem:[#allocation105_spill] sm:$0xff]  ;;  %v9143_v49 = vld [vmem:[#allocation87_spill] sm:$0xff] }
 0x4a0   : > { %v2757_v0 = vmax.f32 %v2756_v32, %v9140_v4  ;;  %v2765_v42 = vmax.f32 %v2764_v36, %v9141_v12  ;;  %v2784_v1 = vmax.f32 %v2783_v22, %v9142_v29  ;;  %v2720_v17 = vmax.f32 %v2719_v19, %v9143_v49  ;;  %v9145_v19 = vld [vmem:[#allocation90_spill] sm:$0xff] }
 0x4a1   : > { %2852 = vmax.xlane.f32.xlu0 %v2851_v15  ;;  %v2859_v44 = vmax.f32 %v2858_v61, %v7439_v27  ;;  %v9138_v15 = vld [vmem:[#allocation100_spill] sm:$0xff]  ;;  %v9139_v61 = vld [vmem:[#allocation98_spill] sm:$0xff]  ;;  %v2777_v26 = vmax.f32 %v2776_v45, %v7318_v34  ;;  %v2796_v60 = vmax.f32 %v2795_v59, %v7282_v31  ;;  %v2815_v32 = vmax.f32 %v2814_v50, %v7320_v30  ;;  %v9148_v45 = vld [vmem:[#allocation109_spill] sm:$0xff] }
 0x4a2   : > { %v2746_v27 = vmax.f32 %v9139_v61, %v9138_v15  ;;  %v2758_v18 = vmax.f32 %v2757_v0, %v7280_v39  ;;  %v2785_v6 = vmax.f32 %v2784_v1, %v7326_v3  ;;  %v2842_v36 = vmax.f32 %v2841_v37, %v7378_v5  ;;  %v9147_v0 = vld [vmem:[#allocation99_spill] sm:$0xff]  ;;  %v9149_v3 = vld [vmem:[#allocation89_spill] sm:$0xff] }
 0x4a3   : > { %v2860_v25 = vmax.f32 %v2859_v44, %v7459_v63  ;;  %v2804_v44 = vmax.f32 %v2803_v53, %v7350_v47  ;;  %v2823_v22 = vmax.f32 %v2822_v9, %v7329_v51  ;;  %v2766_v34 = vmax.f32 %v2765_v42, %v9148_v45  ;;  %v9151_v31 = vld [vmem:[#allocation101_spill] sm:$0xff] }
 0x4a4   : > { %v2747_v39 = vmax.f32 %v2746_v27, %v9147_v0  ;;  %v2759_v53 = vmax.f32 %v2758_v18, %v7288_v41  ;;  %v2778_v50 = vmax.f32 %v2777_v26, %v7247_v55  ;;  %v2786_v9 = vmax.f32 %v2785_v6, %v7331_v46  ;;  %v9155_v55 = vld [vmem:[#allocation234_spill] sm:$0xff]  ;;  %v9156_v41 = vld [vmem:[#allocation93_spill] sm:$0xff]  ;;  %v9167_v46 = vld [vmem:[#allocation228_spill] sm:$0xff] }
 0x4a5   : > { %2834 = vmax.xlane.f32.xlu0 %v2833_v14  ;;  %2861 = vmax.xlane.f32.xlu1 %v2860_v25  ;;  %v2728_v14 = vmax.f32 %v9145_v19, %v9144_v33  ;;  %v9146_v25 = vld [vmem:[#allocation97_spill] sm:$0xff]  ;;  %v2767_v59 = vmax.f32 %v2766_v34, %v7296_v52  ;;  %v2797_v37 = vmax.f32 %v2796_v60, %v7290_v21  ;;  %v9152_v60 = vld [vmem:[#allocation243_spill] sm:$0xff]  ;;  %v9154_v52 = vld [vmem:[#allocation244_spill] sm:$0xff] }
 0x4a6   : > { %v2739_v10 = vmax.f32 %v2738_v8, %v9146_v25  ;;  %v2824_v8 = vmax.f32 %v2823_v22, %v7339_v16  ;;  %v2805_v27 = vmax.f32 %v2804_v44, %v7298_v58  ;;  %v2721_v42 = vmax.f32 %v2720_v17, %v9149_v3  ;;  %v9168_v58 = vld [vmem:[#allocation219_spill] sm:$0xff]  ;;  %v9198_v16 = vld [vmem:[#allocation66_spill] sm:$0xff] }
 0x4a7   : > { %v2760_v6 = vmax.f32 %v2759_v53, %v7207_v13  ;;  %v2768_v22 = vmax.f32 %v2767_v59, %v9152_v60  ;;  %v9161_v13 = vld [vmem:[#allocation224_spill] sm:$0xff] }
 0x4a8   : > { %v2740_v1 = vmax.f32 %v2739_v10, %v7245_v40  ;;  %v2748_v10 = vmax.f32 %v2747_v39, %v9151_v31  ;;  %v2722_v34 = vmax.f32 %v2721_v42, %v7205_v48  ;;  %v9153_v40 = vld [vmem:[#allocation232_spill] sm:$0xff]  ;;  %v2806_v17 = vmax.f32 %v2805_v27, %v9154_v52  ;;  %v9158_v42 = vld [vmem:[#allocation225_spill] sm:$0xff] }
 0x4a9   : > { %2816 = vmax.xlane.f32.xlu0 %v2815_v32  ;;  %2843 = vmax.xlane.f32.xlu1 %v2842_v36  ;;  %v9150_v32 = vld [vmem:[#allocation91_spill] sm:$0xff]  ;;  %v2779_v44 = vmax.f32 %v2778_v50, %v9153_v40  ;;  %v2761_v59 = vmax.f32 %v2760_v6, %v9161_v13  ;;  %v9162_v60 = vld [vmem:[#allocation236_spill] sm:$0xff]  ;;  %v9163_v40 = vld [vmem:[#allocation226_spill] sm:$0xff] }
 0x4aa   : > { %v2729_v36 = vmax.f32 %v2728_v14, %v9150_v32  ;;  %v2741_v18 = vmax.f32 %v2740_v1, %v7253_v24  ;;  %v2749_v26 = vmax.f32 %v2748_v10, %v7263_v54  ;;  %v2787_v14 = vmax.f32 %v2786_v9, %v9155_v55  ;;  %v9159_v24 = vld [vmem:[#allocation215_spill] sm:$0xff]  ;;  %v9166_v55 = vld [vmem:[#allocation217_spill] sm:$0xff] }
 0x4ab   : > { %v9160_v54 = vld [vmem:[#allocation235_spill] sm:$0xff]  ;;  %v2769_v27 = vmax.f32 %v2768_v22, %v9163_v40  ;;  %v9183_v40 = vld [vmem:[#allocation84_spill] sm:$0xff] }
 0x4ac   : > { %v2730_v39 = vmax.f32 %v2729_v36, %v9156_v41  ;;  %v2742_v10 = vmax.f32 %v2741_v18, %v9159_v24  ;;  %v2750_v53 = vmax.f32 %v2749_v26, %v9160_v54  ;;  %v2788_v50 = vmax.f32 %v2787_v14, %v9162_v60  ;;  %v9164_v9 = vld [vmem:[#allocation207_spill] sm:$0xff]  ;;  %v9169_v26 = vld [vmem:[#allocation209_spill] sm:$0xff] }
 0x4ad   : > { %2798 = vmax.xlane.f32.xlu0 %v2797_v37  ;;  %2825 = vmax.xlane.f32.xlu1 %v2824_v8  ;;  %v9157_v37 = vld [vmem:[#allocation223_spill] sm:$0xff]  ;;  %v9170_v24 = vld [vmem:[#allocation221_spill] sm:$0xff] }
 0x4ae   : > { %v2723_v8 = vmax.f32 %v2722_v34, %v9157_v37  ;;  %v2731_v1 = vmax.f32 %v2730_v39, %v9158_v42  ;;  %v2743_v34 = vmax.f32 %v2742_v10, %v9166_v55  ;;  %v2770_v39 = vmax.f32 %v2769_v27, %v9167_v46  ;;  %v9171_v54 = vld [vmem:[#allocation211_spill] sm:$0xff]  ;;  %v9177_v27 = vld [vmem:[#allocation78_spill] sm:$0xff]  ;;  %v9184_v46 = vld [vmem:[#allocation81_spill] sm:$0xff] }
 0x4af   : > { %v2751_v18 = vmax.f32 %v2750_v53, %v9168_v58  ;;  %v9182_v58 = vld [vmem:[#allocation80_spill] sm:$0xff] }
 0x4b0   : > { %v2724_v36 = vmax.f32 %v2723_v8, %v9164_v9 }
 0x4b1   : > { %2780 = vmax.xlane.f32.xlu0 %v2779_v44  ;;  %2807 = vmax.xlane.f32.xlu1 %v2806_v17  ;;  %v9165_v44 = vld [vmem:[#allocation227_spill] sm:$0xff]  ;;  %v2752_v14 = vmax.f32 %v2751_v18, %v9170_v24 }
 0x4b2   : > { %v2732_v17 = vmax.f32 %v2731_v1, %v9165_v44  ;;  %v2725_v6 = vmax.f32 %v2724_v36, %v9169_v26 }
 0x4b4   : > { %v2733_v22 = vmax.f32 %v2732_v17, %v9171_v54  ;;  %v9179_v17 = vld [vmem:[#allocation82_spill] sm:$0xff] }
 0x4b5   : > { %2762 = vmax.xlane.f32.xlu0 %v2761_v59  ;;  %2789 = vmax.xlane.f32.xlu1 %v2788_v50  ;;  %v9172_v59 = vld [vmem:[#allocation213_spill] sm:$0xff] }
 0x4b6   : > { %v2734_v8 = vmax.f32 %v2733_v22, %v9172_v59 }
 0x4b9   : > { %2744 = vmax.xlane.f32.xlu0 %v2743_v34  ;;  %2771 = vmax.xlane.f32.xlu1 %v2770_v39  ;;  %v9178_v34 = vld [vmem:[#allocation79_spill] sm:$0xff] }
 0x4bd   : > { %2726 = vmax.xlane.f32.xlu0 %v2725_v6  ;;  %2753 = vmax.xlane.f32.xlu1 %v2752_v14  ;;  %v9181_v14 = vld [vmem:[#allocation83_spill] sm:$0xff] }
 0x4c1   : > { %2735 = vmax.xlane.f32.xlu1 %v2734_v8 }
 0x4ea   : > { %v7521_v1 = vpop.xlane.xlu1 %2708 }
 0x4eb   : > { %9173 = vst [vmem:[#allocation106_spill] sm:$0xff] %v7521_v1  ;;  %v2975_v36 = vsub.f32 %v9177_v27, %v7521_v1  ;;  %v2977_v39 = vsub.f32 %v9178_v34, %v7521_v1  ;;  %v2976_v55 = vsub.f32 %v9182_v58, %v7521_v1  ;;  %v2978_v34 = vsub.f32 %v9184_v46, %v7521_v1  ;;  %v9189_v46 = vld [vmem:[#allocation75_spill] sm:$0xff] }
 0x4ed   : > { %v3343_v8 = vmul.f32 1.442695, %v2975_v36  ;;  %v3347_v24 = vmul.f32 1.442695, %v2977_v39  ;;  %v9187_v36 = vld [vmem:[#allocation70_spill] sm:$0xff] }
 0x4ee   : > { %v7523_v10 = vpop.xlane.xlu1 %2690  ;;  %v7527_v53 = vpop.xlane.xlu0 %2717  ;;  %v3349_v47 = vmul.f32 1.442695, %v2978_v34  ;;  %v9193_v34 = vld [vmem:[#allocation73_spill] sm:$0xff] }
 0x4ef   : > { %9174 = vst [vmem:[#allocation113_spill] sm:$0xff] %v7523_v10  ;;  %9176 = vst [vmem:[#allocation125_spill] sm:$0xff] %v7527_v53  ;;  %v2983_v18 = vsub.f32 %v9179_v17, %v7527_v53  ;;  %v2985_v22 = vsub.f32 %v9181_v14, %v7527_v53  ;;  %v2984_v13 = vsub.f32 %v9183_v40, %v7527_v53  ;;  %v9185_v17 = vld [vmem:[#allocation85_spill] sm:$0xff]  ;;  %4939 = vpow2.f32 %v3343_v8  ;;  %v9188_v40 = vld [vmem:[#allocation74_spill] sm:$0xff] }
 0x4f0   : > { %v2986_v21 = vsub.f32 %v9185_v17, %v7527_v53  ;;  %v3345_v14 = vmul.f32 1.442695, %v2976_v55  ;;  %4941 = vpow2.f32 %v3347_v24  ;;  %v2959_v58 = vsub.f32 %v9187_v36, %v7523_v10  ;;  %v9190_v8 = vld [vmem:[#allocation72_spill] sm:$0xff] }
 0x4f1   : > { %v3359_v27 = vmul.f32 1.442695, %v2983_v18  ;;  %v3363_v60 = vmul.f32 1.442695, %v2985_v22  ;;  %v3361_v39 = vmul.f32 1.442695, %v2984_v13  ;;  %v2960_v17 = vsub.f32 %v9190_v8, %v7523_v10 }
 0x4f2   : > { %v7525_v50 = vpop.xlane.xlu1 %2699  ;;  %v3365_v51 = vmul.f32 1.442695, %v2986_v21  ;;  %v3311_v55 = vmul.f32 1.442695, %v2959_v58  ;;  %v9191_v24 = vld [vmem:[#allocation76_spill] sm:$0xff]  ;;  %v9194_v21 = vld [vmem:[#allocation77_spill] sm:$0xff] }
 0x4f3   : > { %9175 = vst [vmem:[#allocation115_spill] sm:$0xff] %v7525_v50  ;;  %4943 = vpow2.f32 %v3359_v27  ;;  %v2967_v18 = vsub.f32 %v9188_v40, %v7525_v50  ;;  %v2969_v22 = vsub.f32 %v9189_v46, %v7525_v50  ;;  %v2968_v36 = vsub.f32 %v9191_v24, %v7525_v50  ;;  %v9195_v46 = vld [vmem:[#allocation71_spill] sm:$0xff] }
 0x4f4   : > { %4945 = vpow2.f32 %v3363_v60  ;;  %v2962_v60 = vsub.f32 %v9193_v34, %v7523_v10  ;;  %v2961_v8 = vsub.f32 %v9195_v46, %v7523_v10  ;;  %v3313_v58 = vmul.f32 1.442695, %v2960_v17 }
 0x4f5   : > { %4947 = vpow2.f32 %v3345_v14  ;;  %v3327_v13 = vmul.f32 1.442695, %v2967_v18  ;;  %v3331_v40 = vmul.f32 1.442695, %v2969_v22  ;;  %v2970_v14 = vsub.f32 %v9194_v21, %v7525_v50 }
 0x4f6   : > { %v7535_v6 = vpop.xlane.xlu1 %2672  ;;  %4949 = vpow2.f32 %v3361_v39  ;;  %v3329_v39 = vmul.f32 1.442695, %v2968_v36  ;;  %v3317_v24 = vmul.f32 1.442695, %v2962_v60  ;;  %v3315_v30 = vmul.f32 1.442695, %v2961_v8 }
 0x4f7   : > { %9180 = vst [vmem:[#allocation88_spill] sm:$0xff] %v7535_v6  ;;  %4951 = vpow2.f32 %v3349_v47  ;;  %v3333_v18 = vmul.f32 1.442695, %v2970_v14  ;;  %v9200_v60 = vld [vmem:[#allocation64_spill] sm:$0xff] }
 0x4f8   : > { %4953 = vpow2.f32 %v3365_v51  ;;  %v9197_v51 = vld [vmem:[#allocation62_spill] sm:$0xff] }
 0x4f9   : > { %4955 = vpow2.f32 %v3311_v55  ;;  %v2943_v22 = vsub.f32 %v9197_v51, %v7535_v6  ;;  %v9199_v55 = vld [vmem:[#allocation67_spill] sm:$0xff] }
 0x4fa   : > { %v7547_v52 = vpop.xlane.xlu1 %2681  ;;  %4957 = vpow2.f32 %v3327_v13 }
 0x4fb   : > { %9186 = vst [vmem:[#allocation95_spill] sm:$0xff] %v7547_v52  ;;  %4959 = vpow2.f32 %v3331_v40  ;;  %v2951_v46 = vsub.f32 %v9198_v16, %v7547_v52  ;;  %v2953_v36 = vsub.f32 %v9199_v55, %v7547_v52  ;;  %v2944_v40 = vsub.f32 %v9200_v60, %v7535_v6 }
 0x4fc   : > { %4961 = vpow2.f32 %v3313_v58  ;;  %v4940_v34 = vpop.eup %4939  ;;  %v3279_v8 = vmul.f32 1.442695, %v2943_v22  ;;  %v9201_v58 = vld [vmem:[#allocation68_spill] sm:$0xff]  ;;  %v9205_v22 = vld [vmem:[#allocation63_spill] sm:$0xff] }
 0x4fd   : > { %4963 = vpow2.f32 %v3329_v39  ;;  %v4942_v21 = vpop.eup %4941  ;;  %v2952_v39 = vsub.f32 %v9201_v58, %v7547_v52  ;;  %v3295_v43 = vmul.f32 1.442695, %v2951_v46  ;;  %v2945_v50 = vsub.f32 %v9205_v22, %v7535_v6 }
 0x4fe   : > { %v7559_v27 = vpop.xlane.xlu1 %2654  ;;  %4965 = vpow2.f32 %v3317_v24  ;;  %v9203_v24 = vld [vmem:[#allocation65_spill] sm:$0xff]  ;;  %v3281_v58 = vmul.f32 1.442695, %v2944_v40 }
 0x4ff   : > { %9192 = vst [vmem:[#allocation100_spill] sm:$0xff] %v7559_v27  ;;  %4967 = vpow2.f32 %v3333_v18  ;;  %v2946_v5 = vsub.f32 %v9203_v24, %v7535_v6  ;;  %v3299_v18 = vmul.f32 1.442695, %v2953_v36  ;;  %v3297_v46 = vmul.f32 1.442695, %v2952_v39  ;;  %v9206_v24 = vld [vmem:[#allocation54_spill] sm:$0xff] }
 0x500   : > { %v4944_v17 = vpop.eup %4943  ;;  %4969 = vpow2.f32 %v3315_v30  ;;  %v9204_v30 = vld [vmem:[#allocation69_spill] sm:$0xff]  ;;  %v2927_v1 = vsub.f32 %v9206_v24, %v7559_v27  ;;  %v9212_v24 = vld [vmem:[#allocation50_spill] sm:$0xff] }
 0x501   : > { %v4946_v13 = vpop.eup %4945  ;;  %v3687_v28 = vpack.c.bf16 %v4944_v17, %v4940_v34  ;;  %v2954_v10 = vsub.f32 %v9204_v30, %v7547_v52  ;;  %4971 = vpow2.f32 %v3279_v8  ;;  %v3285_v36 = vmul.f32 1.442695, %v2946_v5 }
 0x502   : > { %v7567_v47 = vpop.xlane.xlu1 %2663  ;;  %v4948_v14 = vpop.eup %4947  ;;  %v3689_v49 = vpack.c.bf16 %v4946_v13, %v4942_v21  ;;  %4973 = vpow2.f32 %v3295_v43  ;;  %v3283_v13 = vmul.f32 1.442695, %v2945_v50 }
 0x503   : > { %9196 = vst [vmem:[#allocation98_spill] sm:$0xff] %v7567_v47  ;;  %v4950_v51 = vpop.eup %4949  ;;  %4975 = vpow2.f32 %v3299_v18  ;;  %v3301_v22 = vmul.f32 1.442695, %v2954_v10  ;;  %v9211_v18 = vld [vmem:[#allocation46_spill] sm:$0xff] }
 0x504   : > { %v4952_v55 = vpop.eup %4951  ;;  %v3688_v63 = vpack.c.bf16 %v4950_v51, %v4948_v14  ;;  %v9207_v51 = vld [vmem:[#allocation55_spill] sm:$0xff]  ;;  %4977 = vpow2.f32 %v3281_v58 }
 0x505   : > { %v4954_v60 = vpop.eup %4953  ;;  %v2929_v30 = vsub.f32 %v9207_v51, %v7559_v27  ;;  %4979 = vpow2.f32 %v3297_v46 }
 0x506   : > { %v7579_v16 = vpop.xlane.xlu1 %2636  ;;  %3983 = vmatprep.subr.bf16.mxu1 %v3688_v63  ;;  %v3690_v34 = vpack.c.bf16 %v4954_v60, %v4952_v55  ;;  %v4956_v17 = vpop.eup %4955  ;;  %v9208_v63 = vld [vmem:[#allocation58_spill] sm:$0xff]  ;;  %v3247_v55 = vmul.f32 1.442695, %v2927_v1  ;;  %4981 = vpow2.f32 %v3285_v36  ;;  %v9214_v36 = vld [vmem:[#allocation60_spill] sm:$0xff] }
 0x507   : > { %9202 = vst [vmem:[#allocation105_spill] sm:$0xff] %v7579_v16  ;;  %3984 = vmatpush1.bf16.xpose.msra.mxu1 %v3687_v28  ;;  %v4958_v14 = vpop.eup %4957  ;;  %v2935_v40 = vsub.f32 %v9208_v63, %v7567_v47  ;;  %v9210_v28 = vld [vmem:[#allocation59_spill] sm:$0xff]  ;;  %v2911_v60 = vsub.f32 %v9211_v18, %v7579_v16  ;;  %v3251_v50 = vmul.f32 1.442695, %v2929_v30  ;;  %4983 = vpow2.f32 %v3301_v22  ;;  %v9215_v22 = vld [vmem:[#allocation57_spill] sm:$0xff] }
 0x508   : > { %4064 = vmatprep.subr.bf16.mxu0 %v3690_v34  ;;  %v4960_v21 = vpop.eup %4959  ;;  %v2937_v5 = vsub.f32 %v9210_v28, %v7567_v47  ;;  %4985 = vpow2.f32 %v3283_v13  ;;  %v3679_v63 = vpack.c.bf16 %v4958_v14, %v4956_v17  ;;  %v9213_v28 = vld [vmem:[#allocation56_spill] sm:$0xff]  ;;  %v2936_v18 = vsub.f32 %v9214_v36, %v7567_v47  ;;  %v9216_v14 = vld [vmem:[#allocation61_spill] sm:$0xff] }
 0x509   : > { %4065 = vmatpush1.bf16.xpose.msra.mxu0 %v3689_v49  ;;  %v4962_v43 = vpop.eup %4961  ;;  %v3263_v58 = vmul.f32 1.442695, %v2935_v40  ;;  %v2928_v46 = vsub.f32 %v9213_v28, %v7559_v27  ;;  %4987 = vpow2.f32 %v3247_v55  ;;  %v3215_v30 = vmul.f32 1.442695, %v2911_v60  ;;  %v9218_v60 = vld [vmem:[#allocation52_spill] sm:$0xff] }
 0x50a   : > { %v7593_v8 = vpop.xlane.xlu1 %2645  ;;  %v4964_v39 = vpop.eup %4963  ;;  %v3267_v1 = vmul.f32 1.442695, %v2937_v5  ;;  %4989 = vpow2.f32 %v3251_v50  ;;  %v2938_v13 = vsub.f32 %v9216_v14, %v7567_v47  ;;  %v9217_v5 = vld [vmem:[#allocation48_spill] sm:$0xff]  ;;  %v3265_v55 = vmul.f32 1.442695, %v2936_v18  ;;  %v9220_v50 = vld [vmem:[#allocation49_spill] sm:$0xff] }
 0x50b   : > { %9209 = vst [vmem:[#allocation107_spill] sm:$0xff] %v7593_v8  ;;  %v4966_v10 = vpop.eup %4965  ;;  %v3680_v34 = vpack.c.bf16 %v4964_v39, %v4962_v43  ;;  %v2919_v49 = vsub.f32 %v9212_v24, %v7593_v8  ;;  %v2930_v39 = vsub.f32 %v9215_v22, %v7559_v27  ;;  %4991 = vpow2.f32 %v3263_v58  ;;  %v9224_v22 = vld [vmem:[#allocation44_spill] sm:$0xff] }
 0x50c   : > { %v4968_v51 = vpop.eup %4967  ;;  %v3249_v40 = vmul.f32 1.442695, %v2928_v46  ;;  %4993 = vpow2.f32 %v3267_v1  ;;  %v2914_v24 = vsub.f32 %v9220_v50, %v7579_v16  ;;  %v3269_v58 = vmul.f32 1.442695, %v2938_v13  ;;  %v9223_v1 = vld [vmem:[#allocation51_spill] sm:$0xff] }
 0x50d   : > { %v4970_v6 = vpop.eup %4969  ;;  %3985 = vmatprep.subr.bf16.mxu1 %v3680_v34  ;;  %v3682_v52 = vpack.c.bf16 %v4968_v51, %v4966_v10  ;;  %v3231_v17 = vmul.f32 1.442695, %v2919_v49  ;;  %v2912_v10 = vsub.f32 %v9217_v5, %v7579_v16  ;;  %4995 = vpow2.f32 %v3215_v30  ;;  %v7617_v51 = vpop.xlane.xlu0 %2618 }
 0x50e   : > { %v3681_v43 = vpack.c.bf16 %v4960_v21, %v4970_v6  ;;  %v2920_v6 = vsub.f32 %v9218_v60, %v7593_v8  ;;  %v4972_v21 = vpop.eup %4971  ;;  %v7613_v34 = vpop.xlane.xlu1 %2627  ;;  %9221 = vst [vmem:[#allocation92_spill] sm:$0xff] %v7617_v51  ;;  %v2921_v36 = vsub.f32 %v9223_v1, %v7593_v8  ;;  %v3221_v5 = vmul.f32 1.442695, %v2914_v24  ;;  %v9226_v1 = vld [vmem:[#allocation45_spill] sm:$0xff] }
 0x50f   : > { %3986 = vmatpush1.bf16.xpose.msra.mxu1 %v3679_v63  ;;  %4066 = vmatprep.subr.bf16.mxu0 %v3682_v52  ;;  %9219 = vst [vmem:[#allocation117_spill] sm:$0xff] %v7613_v34  ;;  %v3253_v52 = vmul.f32 1.442695, %v2930_v39  ;;  %v4974_v49 = vpop.eup %4973  ;;  %4997 = vpow2.f32 %v3231_v17  ;;  %v9222_v63 = vld [vmem:[#allocation53_spill] sm:$0xff]  ;;  %v3217_v18 = vmul.f32 1.442695, %v2912_v10  ;;  %v2904_v39 = vsub.f32 %v9224_v22, %v7613_v34 }
 0x510   : > { %v2922_v28 = vsub.f32 %v9222_v63, %v7593_v8  ;;  %v4976_v46 = vpop.eup %4975  ;;  %4999 = vpow2.f32 %v3249_v40  ;;  %v9225_v17 = vld [vmem:[#allocation40_spill] sm:$0xff]  ;;  %v2906_v40 = vsub.f32 %v9226_v1, %v7613_v34  ;;  %v3235_v8 = vmul.f32 1.442695, %v2921_v36 }
 0x511   : > { %4067 = vmatpush1.bf16.xpose.msra.mxu0 %v3681_v43  ;;  %v4978_v30 = vpop.eup %4977  ;;  %5001 = vpow2.f32 %v3265_v55  ;;  %v3233_v43 = vmul.f32 1.442695, %v2920_v6  ;;  %v2896_v13 = vsub.f32 %v9225_v17, %v7617_v51  ;;  %v9227_v55 = vld [vmem:[#allocation47_spill] sm:$0xff]  ;;  %v3671_v27 = vpack.c.bf16 %v4974_v49, %v4972_v21  ;;  %v9228_v17 = vld [vmem:[#allocation41_spill] sm:$0xff]  ;;  %v7637_v21 = vpop.xlane.xlu0 %2600  ;;  %v9232_v49 = vld [vmem:[#allocation42_spill] sm:$0xff] }
 0x512   : > { %v4980_v14 = vpop.eup %4979  ;;  %5003 = vpow2.f32 %v3253_v52  ;;  %v3237_v63 = vmul.f32 1.442695, %v2922_v28  ;;  %v2913_v6 = vsub.f32 %v9227_v55, %v7579_v16  ;;  %v3201_v24 = vmul.f32 1.442695, %v2904_v39  ;;  %9231 = vst [vmem:[#allocation99_spill] sm:$0xff] %v7637_v21 }
 0x513   : > { %v4982_v60 = vpop.eup %4981  ;;  %v3672_v50 = vpack.c.bf16 %v4980_v14, %v4978_v30  ;;  %5005 = vpow2.f32 %v3269_v58  ;;  %v2898_v30 = vsub.f32 %v9228_v17, %v7617_v51  ;;  %v9229_v58 = vld [vmem:[#allocation38_spill] sm:$0xff]  ;;  %v7635_v14 = vpop.xlane.xlu1 %2609  ;;  %v3185_v55 = vmul.f32 1.442695, %v2896_v13 }
 0x514   : > { %v4984_v10 = vpop.eup %4983  ;;  %5007 = vpow2.f32 %v3217_v18  ;;  %v2895_v28 = vsub.f32 %v9229_v58, %v7617_v51  ;;  %9230 = vst [vmem:[#allocation97_spill] sm:$0xff] %v7635_v14  ;;  %v2903_v18 = vsub.f32 %v9232_v49, %v7613_v34 }
 0x515   : > { %v4986_v22 = vpop.eup %4985  ;;  %3987 = vmatprep.subr.bf16.mxu1 %v3672_v50  ;;  %v3674_v52 = vpack.c.bf16 %v4984_v10, %v4982_v60  ;;  %5009 = vpow2.f32 %v3233_v43  ;;  %v3205_v43 = vmul.f32 1.442695, %v2906_v40  ;;  %v3219_v60 = vmul.f32 1.442695, %v2913_v6  ;;  %v9233_v50 = vld [vmem:[#allocation43_spill] sm:$0xff] }
 0x516   : > { %v3673_v1 = vpack.c.bf16 %v4976_v46, %v4986_v22  ;;  %5011 = vpow2.f32 %v3221_v5  ;;  %v4988_v36 = vpop.eup %4987  ;;  %v2905_v10 = vsub.f32 %v9233_v50, %v7613_v34  ;;  %v3189_v46 = vmul.f32 1.442695, %v2898_v30  ;;  %v9234_v5 = vld [vmem:[#allocation36_spill] sm:$0xff] }
 0x517   : > { %3988 = vmatpush1.bf16.xpose.msra.mxu1 %v3671_v27  ;;  %4068 = vmatprep.subr.bf16.mxu0 %v3674_v52  ;;  %5013 = vpow2.f32 %v3237_v63  ;;  %v4990_v39 = vpop.eup %4989  ;;  %v2888_v13 = vsub.f32 %v9234_v5, %v7635_v14  ;;  %v3183_v17 = vmul.f32 1.442695, %v2895_v28  ;;  %v9235_v52 = vld [vmem:[#allocation32_spill] sm:$0xff]  ;;  %v3199_v6 = vmul.f32 1.442695, %v2903_v18 }
 0x518   : > { %5015 = vpow2.f32 %v3235_v8  ;;  %v4992_v27 = vpop.eup %4991  ;;  %v2880_v63 = vsub.f32 %v9235_v52, %v7637_v21  ;;  %v9236_v8 = vld [vmem:[#allocation37_spill] sm:$0xff]  ;;  %v3203_v49 = vmul.f32 1.442695, %v2905_v10 }
 0x519   : > { %4069 = vmatpush1.bf16.xpose.msra.mxu0 %v3673_v1  ;;  %5017 = vpow2.f32 %v3201_v24  ;;  %v4994_v22 = vpop.eup %4993  ;;  %v2890_v58 = vsub.f32 %v9236_v8, %v7635_v14  ;;  %v9237_v24 = vld [vmem:[#allocation39_spill] sm:$0xff]  ;;  %v3169_v28 = vmul.f32 1.442695, %v2888_v13  ;;  %v3663_v10 = vpack.c.bf16 %v4992_v27, %v4988_v36 }
 0x51a   : > { %5019 = vpow2.f32 %v3185_v55  ;;  %v7647_v40 = vpop.eup %4995  ;;  %v2897_v30 = vsub.f32 %v9237_v24, %v7617_v51  ;;  %v9238_v55 = vld [vmem:[#allocation33_spill] sm:$0xff]  ;;  %v3153_v34 = vmul.f32 1.442695, %v2880_v63  ;;  %v9239_v24 = vld [vmem:[#allocation34_spill] sm:$0xff]  ;;  %v9242_v27 = vld [vmem:[#allocation31_spill] sm:$0xff] }
 0x51b   : > { %5021 = vpow2.f32 %v3205_v43  ;;  %v2882_v5 = vsub.f32 %v9238_v55, %v7637_v21  ;;  %v3173_v16 = vmul.f32 1.442695, %v2890_v58  ;;  %v3665_v58 = vpack.c.bf16 %v4994_v22, %v4990_v39  ;;  %v7665_v22 = vpop.xlane.xlu1 %2591 }
 0x51c   : > { %v4998_v1 = vpop.eup %4997  ;;  %5023 = vpow2.f32 %v3219_v60  ;;  %v3187_v47 = vmul.f32 1.442695, %v2897_v30  ;;  %v2887_v60 = vsub.f32 %v9239_v24, %v7635_v14  ;;  %v7663_v24 = vpop.xlane.xlu0 %2582  ;;  %9244 = vst [vmem:[#allocation89_spill] sm:$0xff] %v7665_v22 }
 0x51d   : > { %v5000_v50 = vpop.eup %4999  ;;  %5025 = vpow2.f32 %v3189_v46  ;;  %v9240_v46 = vld [vmem:[#allocation30_spill] sm:$0xff]  ;;  %9243 = vst [vmem:[#allocation109_spill] sm:$0xff] %v7663_v24 }
 0x51e   : > { %v5002_v52 = vpop.eup %5001  ;;  %5027 = vpow2.f32 %v3183_v17  ;;  %v2879_v13 = vsub.f32 %v9240_v46, %v7637_v21  ;;  %v3157_v17 = vmul.f32 1.442695, %v2882_v5 }
 0x51f   : > { %v5004_v18 = vpop.eup %5003  ;;  %5029 = vpow2.f32 %v3199_v6  ;;  %v3664_v43 = vpack.c.bf16 %v5002_v52, %v5000_v50  ;;  %v9241_v6 = vld [vmem:[#allocation35_spill] sm:$0xff]  ;;  %v2881_v52 = vsub.f32 %v9242_v27, %v7637_v21 }
 0x520   : > { %v5006_v8 = vpop.eup %5005  ;;  %5031 = vpow2.f32 %v3203_v49  ;;  %v2889_v50 = vsub.f32 %v9241_v6, %v7635_v14  ;;  %v3151_v5 = vmul.f32 1.442695, %v2879_v13 }
 0x521   : > { %v5008_v51 = vpop.eup %5007  ;;  %3989 = vmatprep.subr.bf16.mxu1 %v3664_v43  ;;  %v3666_v55 = vpack.c.bf16 %v5006_v8, %v5004_v18  ;;  %5033 = vpow2.f32 %v3169_v28  ;;  %v3167_v43 = vmul.f32 1.442695, %v2887_v60 }
 0x522   : > { %v5010_v63 = vpop.eup %5009  ;;  %3990 = vmatpush1.bf16.xpose.msra.mxu1 %v3663_v10  ;;  %5035 = vpow2.f32 %v3153_v34  ;;  %v3171_v34 = vmul.f32 1.442695, %v2889_v50  ;;  %v9245_v10 = vld [vmem:[#allocation22_spill] sm:$0xff] }
 0x523   : > { %v5012_v30 = vpop.eup %5011  ;;  %4070 = vmatprep.subr.bf16.mxu0 %v3666_v55  ;;  %v3656_v49 = vpack.c.bf16 %v5010_v63, %v5008_v51  ;;  %5037 = vpow2.f32 %v3173_v16  ;;  %v3655_v51 = vpack.c.bf16 %v4998_v1, %v7647_v40  ;;  %v2863_v46 = vsub.f32 %v9245_v10, %v7663_v24  ;;  %v9248_v1 = vld [vmem:[#allocation24_spill] sm:$0xff]  ;;  %v9252_v10 = vld [vmem:[#allocation23_spill] sm:$0xff] }
 0x524   : > { %v5014_v36 = vpop.eup %5013  ;;  %5039 = vpow2.f32 %v3187_v47  ;;  %4071 = vmatpush1.bf16.xpose.msra.mxu0 %v3665_v58  ;;  %v3155_v47 = vmul.f32 1.442695, %v2881_v52  ;;  %v9247_v58 = vld [vmem:[#allocation27_spill] sm:$0xff] }
 0x525   : > { %v5016_v28 = vpop.eup %5015  ;;  %3991 = vmatprep.subr.bf16.mxu1 %v3656_v49  ;;  %v3658_v18 = vpack.c.bf16 %v5014_v36, %v5012_v30  ;;  %5041 = vpow2.f32 %v3157_v17  ;;  %v9246_v17 = vld [vmem:[#allocation26_spill] sm:$0xff]  ;;  %v2873_v30 = vsub.f32 %v9247_v58, %v7665_v22  ;;  %v2864_v36 = vsub.f32 %v9248_v1, %v7663_v24 }
 0x526   : > { %v5018_v8 = vpop.eup %5017  ;;  %5043 = vpow2.f32 %v3167_v43  ;;  %v2871_v63 = vsub.f32 %v9246_v17, %v7665_v22  ;;  %v3119_v52 = vmul.f32 1.442695, %v2863_v46  ;;  %v9249_v43 = vld [vmem:[#allocation28_spill] sm:$0xff] }
 0x527   : > { %v5020_v39 = vpop.eup %5019  ;;  %4072 = vmatprep.subr.bf16.mxu0 %v3658_v18  ;;  %5045 = vpow2.f32 %v3151_v5  ;;  %v2872_v5 = vsub.f32 %v9249_v43, %v7665_v22  ;;  %v3121_v46 = vmul.f32 1.442695, %v2864_v36 }
 0x528   : > { %v5022_v16 = vpop.eup %5021  ;;  %v3648_v13 = vpack.c.bf16 %v5018_v8, %v5020_v39  ;;  %5047 = vpow2.f32 %v3171_v34  ;;  %v9250_v8 = vld [vmem:[#allocation25_spill] sm:$0xff] }
 0x529   : > { %v5024_v60 = vpop.eup %5023  ;;  %5049 = vpow2.f32 %v3155_v47  ;;  %v2866_v34 = vsub.f32 %v9250_v8, %v7663_v24  ;;  %v3137_v58 = vmul.f32 1.442695, %v2872_v5 }
 0x52a   : > { %v5026_v55 = vpop.eup %5025  ;;  %3992 = vmatpush1.bf16.xpose.msra.mxu1 %v3655_v51  ;;  %v3657_v6 = vpack.c.bf16 %v5016_v28, %v5024_v60  ;;  %v3135_v28 = vmul.f32 1.442695, %v2871_v63  ;;  %v3139_v51 = vmul.f32 1.442695, %v2873_v30  ;;  %5051 = vpow2.f32 %v3119_v52  ;;  %v7684_v36 = vpop.xlane.xlu0 %2852 }
 0x52b   : > { %v5028_v50 = vpop.eup %5027  ;;  %3993 = vmatprep.subr.bf16.mxu1 %v3648_v13  ;;  %v3650_v49 = vpack.c.bf16 %v5022_v16, %v5026_v55  ;;  %v9251_v16 = vld [vmem:[#allocation29_spill] sm:$0xff]  ;;  %v2865_v13 = vsub.f32 %v9252_v10, %v7663_v24  ;;  %v3125_v1 = vmul.f32 1.442695, %v2866_v34  ;;  %9253 = vst [vmem:[#allocation101_spill] sm:$0xff] %v7684_v36 }
 0x52c   : > { %v5030_v40 = vpop.eup %5029  ;;  %4073 = vmatpush1.bf16.xpose.msra.mxu0 %v3657_v6  ;;  %v2874_v47 = vsub.f32 %v9251_v16, %v7665_v22  ;;  %5053 = vpow2.f32 %v3135_v28  ;;  %v4894_v16 = vld [vmem:[#allocation3 + $0x3c] ss:$184 sps:$4 sm:$0xff]  }
 0x52d   : > { %v5032_v27 = vpop.eup %5031  ;;  %4074 = vmatprep.subr.bf16.mxu0 %v3650_v49  ;;  %v3647_v55 = vpack.c.bf16 %v5030_v40, %v5028_v50  ;;  %5055 = vpow2.f32 %v3139_v51  ;;  %v3123_v8 = vmul.f32 1.442695, %v2865_v13  ;;  %4096 = vmatprep.mubr.bf16.mxu0 %v4894_v16 }
 0x52e   : > { %v5034_v18 = vpop.eup %5033  ;;  %v3141_v43 = vmul.f32 1.442695, %v2874_v47  ;;  %5057 = vpow2.f32 %v3121_v46  ;;  %v7688_v28 = vpop.xlane.xlu0 %2834 }
 0x52f   : > { %v5036_v39 = vpop.eup %5035  ;;  %5059 = vpow2.f32 %v3137_v58  ;;  %9255 = vst [vmem:[#allocation223_spill] sm:$0xff] %v7688_v28 }
 0x530   : > { %v5038_v60 = vpop.eup %5037  ;;  %v3640_v6 = vpack.c.bf16 %v5034_v18, %v5036_v39  ;;  %5061 = vpow2.f32 %v3125_v1  ;;  %v7686_v18 = vpop.xlane.xlu1 %2861 }
 0x531   : > { %v5040_v17 = vpop.eup %5039  ;;  %5063 = vpow2.f32 %v3141_v43  ;;  %9254 = vst [vmem:[#allocation93_spill] sm:$0xff] %v7686_v18 }
 0x532   : > { %v5042_v49 = vpop.eup %5041  ;;  %3994 = vmatpush1.bf16.xpose.msra.mxu1 %v3647_v55  ;;  %v3649_v63 = vpack.c.bf16 %v5032_v27, %v5040_v17  ;;  %5065 = vpow2.f32 %v3123_v8  ;;  %v7692_v46 = vpop.xlane.xlu0 %2816  ;;  %v9257_v8 = vld [vmem:[#allocation142_spill] sm:$0xff] }
 0x533   : > { %3995 = vmatprep.subr.bf16.mxu1 %v3640_v6  ;;  %v3642_v30 = vpack.c.bf16 %v5038_v60, %v5042_v49  ;;  %v5044_v10 = vpop.eup %5043  ;;  %v3103_v16 = vsub.f32 %v9257_v8, %v7684_v36 }
 0x534   : > { %4075 = vmatpush1.bf16.xpose.msra.mxu0 %v3649_v63  ;;  %v5046_v50 = vpop.eup %5045  ;;  %v7690_v60 = vpop.xlane.xlu1 %2843 }
 0x535   : > { %4076 = vmatprep.subr.bf16.mxu0 %v3642_v30  ;;  %v5048_v40 = vpop.eup %5047  ;;  %v3639_v27 = vpack.c.bf16 %v5044_v10, %v5046_v50  ;;  %9256 = vst [vmem:[#allocation225_spill] sm:$0xff] %v7690_v60  ;;  %v9258_v10 = vld [vmem:[#allocation150_spill] sm:$0xff] }
 0x536   : > { %v5050_v52 = vpop.eup %5049  ;;  %v7696_v43 = vpop.xlane.xlu0 %2798  ;;  %v3105_v50 = vsub.f32 %v9258_v10, %v7684_v36  ;;  %v9265_v10 = vld [vmem:[#allocation152_spill] sm:$0xff] }
 0x537   : > { %v3641_v5 = vpack.c.bf16 %v5048_v40, %v5050_v52  ;;  %v5052_v34 = vpop.eup %5051 }
 0x538   : > { %v7694_v30 = vpop.xlane.xlu1 %2825 }
 0x539   : > { %v5054_v39 = vpop.eup %5053 }
 0x53a   : > { %3996 = vmatpush1.bf16.xpose.msra.mxu1 %v3639_v27  ;;  %v5056_v51 = vpop.eup %5055  ;;  %v3631_v58 = vpack.c.bf16 %v5054_v39, %v5052_v34  ;;  %v9259_v27 = vld [vmem:[#allocation146_spill] sm:$0xff] }
 0x53b   : > { %v5058_v47 = vpop.eup %5057  ;;  %v3111_v52 = vsub.f32 %v9259_v27, %v7686_v18  ;;  %v7708_v34 = vld [vmem:[#allocation3 + $0x60] sm:$0xff]  ;;  %v3106_v27 = vsub.f32 %v9265_v10, %v7684_v36 }
 0x53c   : > { %4077 = vmatpush1.bf16.xpose.msra.mxu0 %v3641_v5  ;;  %v5060_v13 = vpop.eup %5059  ;;  %v7702_v40 = vpop.xlane.xlu1 %2807  ;;  %v7706_v5 = vld [vmem:[#allocation3] sm:$0xff]  ;;  %9261 = vst [vmem:[#allocation227_spill] sm:$0xff] %v7708_v34 }
 0x53d   : > { %v5062_v55 = vpop.eup %5061  ;;  %v3632_v17 = vpack.c.bf16 %v5060_v13, %v5058_v47  ;;  %9260 = vst [vmem:[#allocation207_spill] sm:$0xff] %v7706_v5  ;;  %v9262_v39 = vld [vmem:[#allocation154_spill] sm:$0xff]  ;;  %v7712_v47 = vpop.xlane.xlu0 %2780  ;;  %v3599_v13 = vmul.f32 1.442695, %v3103_v16  ;;  %v3615_v8 = vmul.f32 1.442695, %v3111_v52  ;;  %v3114_v16 = vsub.f32 %v9117_v57, %v7686_v18 }
 0x53e   : > { %v5064_v6 = vpop.eup %5063  ;;  %v9267_v52 = vld [vmem:[#allocation135_spill] sm:$0xff]  ;;  %v9268_v10 = vld [vmem:[#allocation126_spill] sm:$0xff] }
 0x53f   : > { %v5066_v49 = vpop.eup %5065  ;;  %3997 = vmatprep.subr.bf16.mxu1 %v3632_v17  ;;  %v3634_v63 = vpack.c.bf16 %v5064_v6, %v5062_v55  ;;  %v9263_v55 = vld [vmem:[#allocation144_spill] sm:$0xff]  ;;  %v3603_v6 = vmul.f32 1.442695, %v3105_v50  ;;  %5067 = vpow2.f32 %v3599_v13  ;;  %v3089_v21 = vsub.f32 %v9267_v52, %v7688_v28  ;;  %v9269_v13 = vld [vmem:[#allocation127_spill] sm:$0xff]  ;;  %v9272_v52 = vld [vmem:[#allocation118_spill] sm:$0xff] }
 0x540   : > { %v3633_v1 = vpack.c.bf16 %v5056_v51, %v5066_v49  ;;  %v3113_v51 = vsub.f32 %v9262_v39, %v7686_v18  ;;  %v3104_v17 = vsub.f32 %v9263_v55, %v7684_v36  ;;  %v7724_v24 = vpop.xlane.xlu1 %2789  ;;  %v9266_v55 = vld [vmem:[#allocation134_spill] sm:$0xff]  ;;  %v3071_v36 = vsub.f32 %v9268_v10, %v7692_v46 }
 0x541   : > { %4078 = vmatprep.subr.bf16.mxu0 %v3634_v63  ;;  %5069 = vpow2.f32 %v3603_v6  ;;  %v7730_v63 = vpop.xlane.xlu0 %2762  ;;  %v3621_v57 = vmul.f32 1.442695, %v3114_v16  ;;  %v3055_v16 = vsub.f32 %v9272_v52, %v7696_v43  ;;  %v9276_v52 = vld [vmem:[#allocation122_spill] sm:$0xff] }
 0x542   : > { %3998 = vmatpush1.bf16.xpose.msra.mxu1 %v3631_v58  ;;  %v9264_v58 = vld [vmem:[#allocation148_spill] sm:$0xff]  ;;  %v3619_v39 = vmul.f32 1.442695, %v3113_v51  ;;  %v3601_v50 = vmul.f32 1.442695, %v3104_v17  ;;  %5071 = vpow2.f32 %v3615_v8  ;;  %v3073_v17 = vsub.f32 %v9269_v13, %v7692_v46  ;;  %v9271_v8 = vld [vmem:[#allocation139_spill] sm:$0xff] }
 0x543   : > { %v3112_v49 = vsub.f32 %v9264_v58, %v7686_v18  ;;  %v3087_v58 = vsub.f32 %v9266_v55, %v7688_v28  ;;  %v3605_v51 = vmul.f32 1.442695, %v3106_v27  ;;  %v3097_v27 = vsub.f32 %v9271_v8, %v7690_v60 }
 0x544   : > { %4079 = vmatpush1.bf16.xpose.msra.mxu0 %v3633_v1  ;;  %v4678_v1 = vcombine.high %v7706_v5, %v7708_v34  ;;  %5073 = vpow2.f32 %v3619_v39  ;;  %v7740_v18 = vpop.xlane.xlu1 %2771  ;;  %v3535_v39 = vmul.f32 1.442695, %v3071_v36  ;;  %v3503_v8 = vmul.f32 1.442695, %v3055_v16 }
 0x545   : > { %v3617_v22 = vmul.f32 1.442695, %v3112_v49  ;;  %5075 = vpow2.f32 %v3601_v50  ;;  %v3567_v6 = vmul.f32 1.442695, %v3087_v58  ;;  %v3571_v49 = vmul.f32 1.442695, %v3089_v21  ;;  %v7746_v10 = vpop.xlane.xlu0 %2744 }
 0x546   : > { %4015 = vmatprep.mubr.bf16.mxu1 %v4678_v1  ;;  %v9270_v1 = vld [vmem:[#allocation138_spill] sm:$0xff]  ;;  %v3539_v50 = vmul.f32 1.442695, %v3073_v17  ;;  %v9273_v58 = vld [vmem:[#allocation119_spill] sm:$0xff]  ;;  %v3587_v14 = vmul.f32 1.442695, %v3097_v27  ;;  %v3063_v34 = vsub.f32 %v9276_v52, %v7702_v40 }
 0x547   : > { %v3095_v55 = vsub.f32 %v9270_v1, %v7690_v60  ;;  %5077 = vpow2.f32 %v3617_v22  ;;  %v3057_v13 = vsub.f32 %v9273_v58, %v7696_v43  ;;  %v9274_v22 = vld [vmem:[#allocation130_spill] sm:$0xff]  ;;  %v9278_v27 = vld [vmem:[#allocation140_spill] sm:$0xff]  ;;  %v9279_v52 = vld [vmem:[#allocation137_spill] sm:$0xff] }
 0x548   : > { %5079 = vpow2.f32 %v3605_v51  ;;  %v3079_v21 = vsub.f32 %v9274_v22, %v7694_v30  ;;  %v9275_v51 = vld [vmem:[#allocation131_spill] sm:$0xff]  ;;  %v3090_v5 = vsub.f32 %v9279_v52, %v7688_v28 }
 0x549   : > { %5081 = vpow2.f32 %v3621_v57  ;;  %v3583_v1 = vmul.f32 1.442695, %v3095_v55  ;;  %v3081_v36 = vsub.f32 %v9275_v51, %v7694_v30  ;;  %v7756_v57 = vpop.xlane.xlu1 %2753  ;;  %v3507_v17 = vmul.f32 1.442695, %v3057_v13  ;;  %v9280_v13 = vld [vmem:[#allocation141_spill] sm:$0xff] }
 0x54a   : > { %5083 = vpow2.f32 %v3567_v6  ;;  %v9277_v6 = vld [vmem:[#allocation136_spill] sm:$0xff]  ;;  %v3551_v22 = vmul.f32 1.442695, %v3079_v21  ;;  %v3096_v51 = vsub.f32 %v9278_v27, %v7690_v60 }
 0x54b   : > { %5085 = vpow2.f32 %v3571_v49  ;;  %v3088_v55 = vsub.f32 %v9277_v6, %v7688_v28  ;;  %v7760_v49 = vpop.xlane.xlu0 %2726  ;;  %v3555_v16 = vmul.f32 1.442695, %v3081_v36  ;;  %v3098_v6 = vsub.f32 %v9280_v13, %v7690_v60 }
 0x54c   : > { %5087 = vpow2.f32 %v3535_v39  ;;  %v5068_v58 = vpop.eup %5067  ;;  %v3585_v36 = vmul.f32 1.442695, %v3096_v51  ;;  %v3573_v13 = vmul.f32 1.442695, %v3090_v5 }
 0x54d   : > { %5089 = vpow2.f32 %v3539_v50  ;;  %v3519_v50 = vmul.f32 1.442695, %v3063_v34  ;;  %v3569_v21 = vmul.f32 1.442695, %v3088_v55  ;;  %v7772_v27 = vpop.xlane.xlu1 %2735  ;;  %v3589_v55 = vmul.f32 1.442695, %v3098_v6 }
 0x54e   : > { %5091 = vpow2.f32 %v3583_v1  ;;  %v5070_v39 = vpop.eup %5069  ;;  %v2995_v1 = vsub.f32 %v7205_v48, %v7760_v49  ;;  %v2998_v48 = vsub.f32 %v9169_v26, %v7760_v49  ;;  %v3003_v51 = vsub.f32 %v9158_v42, %v7772_v27 }
 0x54f   : > { %5093 = vpow2.f32 %v3587_v14  ;;  %v5072_v53 = vpop.eup %5071  ;;  %v2996_v14 = vsub.f32 %v9157_v37, %v7760_v49  ;;  %v3006_v42 = vsub.f32 %v9172_v59, %v7772_v27  ;;  %v9283_v59 = vld [vmem:[#allocation129_spill] sm:$0xff] }
 0x550   : > { %5095 = vpow2.f32 %v3503_v8  ;;  %v3751_v34 = vpack.c.bf16 %v5072_v53, %v5068_v58  ;;  %v2997_v8 = vsub.f32 %v9164_v9, %v7760_v49  ;;  %v3383_v37 = vmul.f32 1.442695, %v2995_v1  ;;  %v9282_v1 = vld [vmem:[#allocation132_spill] sm:$0xff] }
 0x551   : > { %v5074_v32 = vpop.eup %5073  ;;  %5097 = vpow2.f32 %v3507_v17  ;;  %v3385_v58 = vmul.f32 1.442695, %v2996_v14  ;;  %v3004_v9 = vsub.f32 %v9165_v44, %v7772_v27  ;;  %v3399_v44 = vmul.f32 1.442695, %v3003_v51  ;;  %v9285_v51 = vld [vmem:[#allocation124_spill] sm:$0xff] }
 0x552   : > { %v5076_v19 = vpop.eup %5075  ;;  %5099 = vpow2.f32 %v3551_v22  ;;  %v3753_v60 = vpack.c.bf16 %v5074_v32, %v5070_v39  ;;  %v3005_v32 = vsub.f32 %v9171_v54, %v7772_v27  ;;  %v3389_v39 = vmul.f32 1.442695, %v2998_v48  ;;  %v9284_v48 = vld [vmem:[#allocation120_spill] sm:$0xff] }
 0x553   : > { %5101 = vpow2.f32 %v3555_v16  ;;  %v9281_v16 = vld [vmem:[#allocation128_spill] sm:$0xff]  ;;  %v3401_v54 = vmul.f32 1.442695, %v3004_v9 }
 0x554   : > { %v5078_v52 = vpop.eup %5077  ;;  %5103 = vpow2.f32 %v3519_v50  ;;  %v3072_v50 = vsub.f32 %v9281_v16, %v7692_v46 }
 0x555   : > { %v5080_v17 = vpop.eup %5079  ;;  %v3752_v28 = vpack.c.bf16 %v5078_v52, %v5076_v19  ;;  %5105 = vpow2.f32 %v3569_v21  ;;  %v3387_v19 = vmul.f32 1.442695, %v2997_v8  ;;  %v3080_v21 = vsub.f32 %v9282_v1, %v7694_v30 }
 0x556   : > { %v5082_v22 = vpop.eup %5081  ;;  %5107 = vpow2.f32 %v3585_v36  ;;  %v3403_v36 = vmul.f32 1.442695, %v3005_v32  ;;  %v3074_v52 = vsub.f32 %v9283_v59, %v7692_v46  ;;  %v3082_v8 = vsub.f32 %v9122_v11, %v7694_v30 }
 0x557   : > { %3999 = vmatprep.subr.bf16.mxu1 %v3752_v28  ;;  %v3754_v53 = vpack.c.bf16 %v5082_v22, %v5080_v17  ;;  %v7782_v5 = vpop.eup %5083  ;;  %5109 = vpow2.f32 %v3573_v13  ;;  %v3537_v17 = vmul.f32 1.442695, %v3072_v50  ;;  %v3058_v11 = vsub.f32 %v9120_v23, %v7696_v43 }
 0x558   : > { %4000 = vmatpush2.bf16.xpose.msra.mxu1 %v3751_v34  ;;  %v7786_v26 = vpop.eup %5085  ;;  %5111 = vpow2.f32 %v3589_v55  ;;  %v3056_v55 = vsub.f32 %v9284_v48, %v7696_v43  ;;  %v3541_v9 = vmul.f32 1.442695, %v3074_v52  ;;  %v3557_v32 = vmul.f32 1.442695, %v3082_v8  ;;  %v9288_v52 = vld [vmem:[#allocation112_spill] sm:$0xff] }
 0x559   : > { %4080 = vmatprep.subr.bf16.mxu0 %v3754_v53  ;;  %v7790_v28 = vpop.eup %5087  ;;  %5113 = vpow2.f32 %v3383_v37  ;;  %v3553_v37 = vmul.f32 1.442695, %v3080_v21  ;;  %v3064_v53 = vsub.f32 %v9285_v51, %v7702_v40  ;;  %v9287_v21 = vld [vmem:[#allocation116_spill] sm:$0xff]  ;;  %v3509_v59 = vmul.f32 1.442695, %v3058_v11 }
 0x55a   : > { %4081 = vmatpush2.bf16.xpose.msra.mxu0 %v3753_v60  ;;  %v7794_v6 = vpop.eup %5089  ;;  %5115 = vpow2.f32 %v3385_v58  ;;  %v3405_v60 = vmul.f32 1.442695, %v3006_v42  ;;  %v3505_v50 = vmul.f32 1.442695, %v3056_v55  ;;  %v3048_v23 = vsub.f32 %v9287_v21, %v7724_v24 }
 0x55b   : > { %v5092_v14 = vpop.eup %5091  ;;  %5117 = vpow2.f32 %v3387_v19  ;;  %v3521_v1 = vmul.f32 1.442695, %v3064_v53 }
 0x55c   : > { %v7800_v34 = vpop.eup %5093  ;;  %5119 = vpow2.f32 %v3389_v39  ;;  %v3066_v39 = vsub.f32 %v9133_v56, %v7702_v40  ;;  %v3489_v21 = vmul.f32 1.442695, %v3048_v23 }
 0x55d   : > { %v7804_v13 = vpop.eup %5095  ;;  %5121 = vpow2.f32 %v3399_v44  ;;  %v9286_v44 = vld [vmem:[#allocation123_spill] sm:$0xff] }
 0x55e   : > { %v7808_v22 = vpop.eup %5097  ;;  %5123 = vpow2.f32 %v3401_v54  ;;  %v3065_v16 = vsub.f32 %v9286_v44, %v7702_v40  ;;  %v3525_v48 = vmul.f32 1.442695, %v3066_v39  ;;  %v3743_v44 = vpack.c.bf16 %v5092_v14, %v7782_v5 }
 0x55f   : > { %v7812_v58 = vpop.eup %5099  ;;  %5125 = vpow2.f32 %v3403_v36 }
 0x560   : > { %v7816_v19 = vpop.eup %5101  ;;  %5127 = vpow2.f32 %v3405_v60  ;;  %v3040_v60 = vsub.f32 %v9288_v52, %v7712_v47  ;;  %v3523_v53 = vmul.f32 1.442695, %v3065_v16  ;;  %v3745_v16 = vpack.c.bf16 %v7800_v34, %v7786_v26 }
 0x561   : > { %v7820_v42 = vpop.eup %5103  ;;  %5129 = vpow2.f32 %v3537_v17  ;;  %v3050_v17 = vsub.f32 %v9142_v29, %v7724_v24  ;;  %v9290_v29 = vld [vmem:[#allocation111_spill] sm:$0xff]  ;;  %v3049_v52 = vsub.f32 %v9132_v35, %v7724_v24  ;;  %v3032_v34 = vsub.f32 %v9129_v2, %v7740_v18 }
 0x562   : > { %v5106_v54 = vpop.eup %5105  ;;  %5131 = vpow2.f32 %v3553_v37  ;;  %v9289_v37 = vld [vmem:[#allocation110_spill] sm:$0xff]  ;;  %v3473_v5 = vmul.f32 1.442695, %v3040_v60  ;;  %v3034_v35 = vsub.f32 %v9148_v45, %v7740_v18 }
 0x563   : > { %v5108_v36 = vpop.eup %5107  ;;  %5133 = vpow2.f32 %v3541_v9  ;;  %v3039_v51 = vsub.f32 %v9289_v37, %v7712_v47  ;;  %v3493_v23 = vmul.f32 1.442695, %v3050_v17 }
 0x564   : > { %v5110_v56 = vpop.eup %5109  ;;  %v3744_v8 = vpack.c.bf16 %v5108_v36, %v5106_v54  ;;  %5135 = vpow2.f32 %v3557_v32  ;;  %v3042_v32 = vsub.f32 %v9131_v7, %v7712_v47  ;;  %v3041_v54 = vsub.f32 %v9290_v29, %v7712_v47 }
 0x565   : > { %v5112_v55 = vpop.eup %5111  ;;  %5137 = vpow2.f32 %v3505_v50  ;;  %v9291_v50 = vld [vmem:[#allocation114_spill] sm:$0xff]  ;;  %v3471_v36 = vmul.f32 1.442695, %v3039_v51  ;;  %v3031_v29 = vsub.f32 %v9130_v62, %v7740_v18 }
 0x566   : > { %v7833_v9 = vpop.eup %5113  ;;  %4001 = vmatprep.subr.bf16.mxu1 %v3744_v8  ;;  %v3746_v11 = vpack.c.bf16 %v5112_v55, %v5110_v56  ;;  %5139 = vpow2.f32 %v3521_v1  ;;  %v3047_v1 = vsub.f32 %v9291_v50, %v7724_v24  ;;  %v3477_v26 = vmul.f32 1.442695, %v3042_v32  ;;  %v9292_v8 = vld [vmem:[#allocation104_spill] sm:$0xff]  ;;  %v9293_v51 = vld [vmem:[#allocation102_spill] sm:$0xff] }
 0x567   : > { %v7837_v39 = vpop.eup %5115  ;;  %4002 = vmatpush2.bf16.xpose.msra.mxu1 %v3743_v44  ;;  %5141 = vpow2.f32 %v3509_v59  ;;  %v3475_v60 = vmul.f32 1.442695, %v3041_v54  ;;  %v3023_v2 = vsub.f32 %v9293_v51, %v7730_v63  ;;  %v3461_v50 = vmul.f32 1.442695, %v3034_v35 }
 0x568   : > { %v7843_v14 = vpop.eup %5117  ;;  %4082 = vmatprep.subr.bf16.mxu0 %v3746_v11  ;;  %5143 = vpow2.f32 %v3525_v48  ;;  %v3024_v48 = vsub.f32 %v9292_v8, %v7730_v63  ;;  %v3487_v55 = vmul.f32 1.442695, %v3047_v1  ;;  %v3457_v11 = vmul.f32 1.442695, %v3032_v34 }
 0x569   : > { %v7847_v7 = vpop.eup %5119  ;;  %5145 = vpow2.f32 %v3523_v53  ;;  %4083 = vmatpush2.bf16.xpose.msra.mxu0 %v3745_v16  ;;  %v3491_v53 = vmul.f32 1.442695, %v3049_v52  ;;  %v3033_v16 = vsub.f32 %v9141_v12, %v7740_v18  ;;  %v3439_v52 = vmul.f32 1.442695, %v3023_v2 }
 0x56a   : > { %v7851_v56 = vpop.eup %5121  ;;  %5147 = vpow2.f32 %v3489_v21  ;;  %v3026_v21 = vsub.f32 %v9140_v4, %v7730_v63  ;;  %v3441_v54 = vmul.f32 1.442695, %v3024_v48  ;;  %v3735_v4 = vpack.c.bf16 %v7812_v58, %v7790_v28 }
 0x56b   : > { %v7855_v59 = vpop.eup %5123  ;;  %5149 = vpow2.f32 %v3473_v5  ;;  %v3455_v8 = vmul.f32 1.442695, %v3031_v29  ;;  %v3737_v48 = vpack.c.bf16 %v7816_v19, %v7794_v6  ;;  %v3459_v28 = vmul.f32 1.442695, %v3033_v16 }
 0x56c   : > { %v7859_v17 = vpop.eup %5125  ;;  %5151 = vpow2.f32 %v3493_v23  ;;  %v9294_v23 = vld [vmem:[#allocation103_spill] sm:$0xff]  ;;  %v3445_v34 = vmul.f32 1.442695, %v3026_v21  ;;  %v3018_v2 = vsub.f32 %v9151_v31, %v7756_v57  ;;  %v3700_v6 = vpack.c.bf16 %v7855_v59, %v7837_v39  ;;  %v4917_v39 = vld [vmem:[#allocation3 + $0x30] ss:$232 sps:$4 sm:$0xff]  }
 0x56d   : > { %v7863_v37 = vpop.eup %5127  ;;  %5153 = vpow2.f32 %v3471_v36  ;;  %v3025_v36 = vsub.f32 %v9294_v23, %v7730_v63  ;;  %v3701_v31 = vpack.c.bf16 %v7859_v17, %v7843_v14  ;;  %v4925_v59 = vld [vmem:[#allocation3 + $0x9c] ss:$-8 sps:$4 sm:$0xff]   ;;  %v4926_v14 = vld [vmem:[#allocation3 + $0x80] ss:$-24 sps:$4 sm:$0xff]  }
 0x56e   : > { %v5130_v44 = vpop.eup %5129  ;;  %5155 = vpow2.f32 %v3477_v26  ;;  %v3702_v19 = vpack.c.bf16 %v7863_v37, %v7847_v7  ;;  %v4920_v7 = vld [vmem:[#allocation3 + $0xb8] ss:$-120 sps:$4 sm:$0xff]   ;;  %v4928_v37 = vld [vmem:[#allocation3 + $0x84] ss:$-24 sps:$4 sm:$0xff]  }
 0x56f   : > { %v5132_v32 = vpop.eup %5131  ;;  %5157 = vpow2.f32 %v3475_v60  ;;  %v3016_v60 = vsub.f32 %v9138_v15, %v7756_v57  ;;  %v3010_v15 = vsub.f32 %v9146_v25, %v7746_v10  ;;  %v9296_v25 = vld [vmem:[#allocation94_spill] sm:$0xff]  ;;  %v3443_v23 = vmul.f32 1.442695, %v3025_v36 }
 0x570   : > { %v5134_v45 = vpop.eup %5133  ;;  %5159 = vpow2.f32 %v3487_v55  ;;  %v3736_v5 = vpack.c.bf16 %v5132_v32, %v5130_v44  ;;  %v9295_v55 = vld [vmem:[#allocation96_spill] sm:$0xff]  ;;  %v3699_v44 = vpack.c.bf16 %v7851_v56, %v7833_v9  ;;  %v4934_v17 = vld [vmem:[#allocation3 + $0xa4] ss:$-72 sps:$4 sm:$0xff]  }
 0x571   : > { %v5136_v1 = vpop.eup %5135  ;;  %5161 = vpow2.f32 %v3491_v53  ;;  %v3008_v35 = vsub.f32 %v9295_v55, %v7746_v10  ;;  %v3425_v32 = vmul.f32 1.442695, %v3016_v60  ;;  %v3413_v60 = vmul.f32 1.442695, %v3010_v15  ;;  %v9298_v15 = vld [vmem:[#allocation90_spill] sm:$0xff] }
 0x572   : > { %v5138_v26 = vpop.eup %5137  ;;  %4003 = vmatprep.subr.bf16.mxu1 %v3736_v5  ;;  %v3738_v62 = vpack.c.bf16 %v5136_v1, %v5134_v45  ;;  %5163 = vpow2.f32 %v3457_v11  ;;  %v2992_v5 = vsub.f32 %v9134_v38, %v7760_v49  ;;  %v3009_v55 = vsub.f32 %v9136_v20, %v7746_v10  ;;  %v4923_v9 = vld [vmem:[#allocation3 + $0x98] ss:$-8 sps:$4 sm:$0xff]   ;;  %v4931_v56 = vld [vmem:[#allocation3 + $0xdc] ss:$-136 sps:$4 sm:$0xff]  }
 0x573   : > { %v5140_v12 = vpop.eup %5139  ;;  %4004 = vmatpush2.bf16.xpose.msra.mxu1 %v3735_v4  ;;  %5165 = vpow2.f32 %v3441_v54  ;;  %v3007_v54 = vsub.f32 %v9296_v25, %v7746_v10  ;;  %v3409_v45 = vmul.f32 1.442695, %v3008_v35  ;;  %v3015_v4 = vsub.f32 %v9139_v61, %v7756_v57 }
 0x574   : > { %v5142_v51 = vpop.eup %5141  ;;  %4084 = vmatprep.subr.bf16.mxu0 %v3738_v62  ;;  %v3728_v58 = vpack.c.bf16 %v5140_v12, %v5138_v26  ;;  %5167 = vpow2.f32 %v3461_v50  ;;  %v3429_v50 = vmul.f32 1.442695, %v3018_v2  ;;  %v3000_v62 = vsub.f32 %v9144_v33, %v7772_v27 }
 0x575   : > { %v5144_v53 = vpop.eup %5143  ;;  %4085 = vmatpush2.bf16.xpose.msra.mxu0 %v3737_v48  ;;  %5169 = vpow2.f32 %v3445_v34  ;;  %v3407_v38 = vmul.f32 1.442695, %v3007_v54  ;;  %v3377_v48 = vmul.f32 1.442695, %v2992_v5  ;;  %v3423_v35 = vmul.f32 1.442695, %v3015_v4 }
 0x576   : > { %v5146_v11 = vpop.eup %5145  ;;  %4005 = vmatprep.subr.bf16.mxu1 %v3728_v58  ;;  %v3730_v21 = vpack.c.bf16 %v5144_v53, %v5142_v51  ;;  %5171 = vpow2.f32 %v3439_v52  ;;  %v3727_v52 = vpack.c.bf16 %v7820_v42, %v7804_v13  ;;  %v3002_v13 = vsub.f32 %v9156_v41, %v7772_v27  ;;  %v9297_v41 = vld [vmem:[#allocation86_spill] sm:$0xff]  ;;  %v9301_v5 = vld [vmem:[#allocation220_spill] sm:$0xff] }
 0x577   : > { %v5148_v29 = vpop.eup %5147  ;;  %5173 = vpow2.f32 %v3455_v8  ;;  %v3017_v8 = vsub.f32 %v9147_v0, %v7756_v57  ;;  %v3729_v36 = vpack.c.bf16 %v5146_v11, %v7808_v22  ;;  %v2994_v22 = vsub.f32 %v9149_v3, %v7760_v49  ;;  %v9299_v3 = vld [vmem:[#allocation91_spill] sm:$0xff] }
 0x578   : > { %v5150_v16 = vpop.eup %5149  ;;  %4086 = vmatprep.subr.bf16.mxu0 %v3730_v21  ;;  %5175 = vpow2.f32 %v3459_v28  ;;  %v3393_v51 = vmul.f32 1.442695, %v3000_v62  ;;  %v2991_v58 = vsub.f32 %v9297_v41, %v7760_v49  ;;  %v2999_v20 = vsub.f32 %v9298_v15, %v7772_v27  ;;  %v9303_v62 = vld [vmem:[#allocation216_spill] sm:$0xff]  ;;  %v9308_v41 = vld [vmem:[#allocation199_spill] sm:$0xff] }
 0x579   : > { %v5152_v1 = vpop.eup %5151  ;;  %v3720_v34 = vpack.c.bf16 %v5148_v29, %v5150_v16  ;;  %5177 = vpow2.f32 %v3425_v32  ;;  %v3427_v2 = vmul.f32 1.442695, %v3017_v8  ;;  %v3397_v11 = vmul.f32 1.442695, %v3002_v13  ;;  %v9300_v16 = vld [vmem:[#allocation125_spill] sm:$0xff] }
 0x57a   : > { %v5154_v26 = vpop.eup %5153  ;;  %5179 = vpow2.f32 %v3409_v45  ;;  %v3411_v32 = vmul.f32 1.442695, %v3009_v55  ;;  %v3001_v29 = vsub.f32 %v9299_v3, %v7772_v27  ;;  %v3381_v54 = vmul.f32 1.442695, %v2994_v22 }
 0x57b   : > { %v5156_v12 = vpop.eup %5155  ;;  %4006 = vmatpush2.bf16.xpose.msra.mxu1 %v3727_v52  ;;  %5181 = vpow2.f32 %v3429_v50  ;;  %v2988_v50 = vsub.f32 %v9301_v5, %v9300_v16  ;;  %v9302_v52 = vld [vmem:[#allocation106_spill] sm:$0xff] }
 0x57c   : > { %v5158_v61 = vpop.eup %5157  ;;  %4007 = vmatprep.subr.bf16.mxu1 %v3720_v34  ;;  %v3722_v42 = vpack.c.bf16 %v5152_v1, %v5156_v12  ;;  %5183 = vpow2.f32 %v3443_v23  ;;  %v3375_v23 = vmul.f32 1.442695, %v2991_v58  ;;  %v2980_v34 = vsub.f32 %v9303_v62, %v9302_v52 }
 0x57d   : > { %v5160_v33 = vpop.eup %5159  ;;  %4087 = vmatpush2.bf16.xpose.msra.mxu0 %v3729_v36  ;;  %5185 = vpow2.f32 %v3413_v60  ;;  %v3391_v12 = vmul.f32 1.442695, %v2999_v20  ;;  %v9305_v36 = vld [vmem:[#allocation87_spill] sm:$0xff]  ;;  %v3395_v13 = vmul.f32 1.442695, %v3001_v29  ;;  %v2981_v58 = vsub.f32 %v9308_v41, %v9302_v52 }
 0x57e   : > { %v5162_v0 = vpop.eup %5161  ;;  %4088 = vmatprep.subr.bf16.mxu0 %v3722_v42  ;;  %5187 = vpow2.f32 %v3407_v38  ;;  %v3719_v25 = vpack.c.bf16 %v5160_v33, %v5154_v26  ;;  %v9304_v26 = vld [vmem:[#allocation205_spill] sm:$0xff]  ;;  %v9310_v20 = vld [vmem:[#allocation203_spill] sm:$0xff] }
 0x57f   : > { %v5164_v28 = vpop.eup %5163  ;;  %5189 = vpow2.f32 %v3377_v48  ;;  %v3721_v4 = vpack.c.bf16 %v5162_v0, %v5158_v61  ;;  %v2990_v38 = vsub.f32 %v9304_v26, %v9300_v16  ;;  %v2993_v48 = vsub.f32 %v9305_v36, %v7760_v49  ;;  %v9306_v33 = vld [vmem:[#allocation201_spill] sm:$0xff]  ;;  %v9307_v0 = vld [vmem:[#allocation214_spill] sm:$0xff] }
 0x580   : > { %v5166_v53 = vpop.eup %5165  ;;  %5191 = vpow2.f32 %v3423_v35  ;;  %v3369_v61 = vmul.f32 1.442695, %v2988_v50  ;;  %v2982_v55 = vsub.f32 %v9306_v33, %v9302_v52  ;;  %v2979_v22 = vsub.f32 %v9307_v0, %v9302_v52  ;;  %v9309_v49 = vld [vmem:[#allocation218_spill] sm:$0xff]  ;;  %v9314_v52 = vld [vmem:[#allocation208_spill] sm:$0xff] }
 0x581   : > { %v5168_v21 = vpop.eup %5167  ;;  %5193 = vpow2.f32 %v3393_v51  ;;  %v3712_v45 = vpack.c.bf16 %v5164_v28, %v5166_v53  ;;  %v3353_v51 = vmul.f32 1.442695, %v2980_v34  ;;  %v3373_v53 = vmul.f32 1.442695, %v2990_v38 }
 0x582   : > { %v5170_v1 = vpop.eup %5169  ;;  %5195 = vpow2.f32 %v3427_v2  ;;  %v2987_v2 = vsub.f32 %v9309_v49, %v9300_v16  ;;  %v3355_v0 = vmul.f32 1.442695, %v2981_v58  ;;  %v9319_v49 = vld [vmem:[#allocation191_spill] sm:$0xff]  ;;  %v9322_v58 = vld [vmem:[#allocation204_spill] sm:$0xff] }
 0x583   : > { %4008 = vmatpush2.bf16.xpose.msra.mxu1 %v3719_v25  ;;  %v5172_v60 = vpop.eup %5171  ;;  %5197 = vpow2.f32 %v3397_v11  ;;  %v3714_v27 = vpack.c.bf16 %v5168_v21, %v5170_v1  ;;  %v2989_v11 = vsub.f32 %v9310_v20, %v9300_v16  ;;  %v3379_v21 = vmul.f32 1.442695, %v2993_v48  ;;  %v9316_v48 = vld [vmem:[#allocation193_spill] sm:$0xff] }
 0x584   : > { %4009 = vmatprep.subr.bf16.mxu1 %v3712_v45  ;;  %v5174_v8 = vpop.eup %5173  ;;  %5199 = vpow2.f32 %v3411_v32  ;;  %v3357_v25 = vmul.f32 1.442695, %v2982_v55  ;;  %v9312_v45 = vld [vmem:[#allocation212_spill] sm:$0xff]  ;;  %v3351_v1 = vmul.f32 1.442695, %v2979_v22  ;;  %v9318_v22 = vld [vmem:[#allocation210_spill] sm:$0xff] }
 0x585   : > { %4089 = vmatpush2.bf16.xpose.msra.mxu0 %v3721_v4  ;;  %v5176_v42 = vpop.eup %5175  ;;  %5201 = vpow2.f32 %v3381_v54  ;;  %v3711_v32 = vpack.c.bf16 %v5174_v8, %v5172_v60  ;;  %v9311_v54 = vld [vmem:[#allocation115_spill] sm:$0xff]  ;;  %v9313_v4 = vld [vmem:[#allocation113_spill] sm:$0xff]  ;;  %v3367_v16 = vmul.f32 1.442695, %v2987_v2  ;;  %v3371_v38 = vmul.f32 1.442695, %v2989_v11 }
 0x586   : > { %4090 = vmatprep.subr.bf16.mxu0 %v3714_v27  ;;  %v5178_v35 = vpop.eup %5177  ;;  %5203 = vpow2.f32 %v3375_v23  ;;  %v2972_v5 = vsub.f32 %v9312_v45, %v9311_v54  ;;  %v2964_v62 = vsub.f32 %v9314_v52, %v9313_v4  ;;  %v9315_v60 = vld [vmem:[#allocation197_spill] sm:$0xff]  ;;  %v2965_v2 = vsub.f32 %v9319_v49, %v9313_v4 }
 0x587   : > { %v5180_v28 = vpop.eup %5179  ;;  %5205 = vpow2.f32 %v3391_v12  ;;  %v2974_v27 = vsub.f32 %v9315_v60, %v9311_v54 }
 0x588   : > { %v5182_v15 = vpop.eup %5181  ;;  %5207 = vpow2.f32 %v3395_v13  ;;  %v3704_v29 = vpack.c.bf16 %v5178_v35, %v5180_v28  ;;  %v3337_v36 = vmul.f32 1.442695, %v2972_v5  ;;  %v2966_v13 = vsub.f32 %v9316_v48, %v9313_v4 }
 0x589   : > { %v5184_v3 = vpop.eup %5183  ;;  %5209 = vpow2.f32 %v3369_v61  ;;  %v9317_v61 = vld [vmem:[#allocation206_spill] sm:$0xff]  ;;  %v3321_v55 = vmul.f32 1.442695, %v2964_v62  ;;  %v3341_v28 = vmul.f32 1.442695, %v2974_v27  ;;  %v9325_v62 = vld [vmem:[#allocation189_spill] sm:$0xff] }
 0x58a   : > { %v5186_v50 = vpop.eup %5185  ;;  %v3713_v23 = vpack.c.bf16 %v5176_v42, %v5184_v3  ;;  %5211 = vpow2.f32 %v3353_v51  ;;  %v2963_v33 = vsub.f32 %v9317_v61, %v9313_v4  ;;  %v2971_v51 = vsub.f32 %v9318_v22, %v9311_v54  ;;  %v9321_v3 = vld [vmem:[#allocation95_spill] sm:$0xff] }
 0x58b   : > { %4010 = vmatpush2.bf16.xpose.msra.mxu1 %v3711_v32  ;;  %v5188_v34 = vpop.eup %5187  ;;  %v3706_v12 = vpack.c.bf16 %v5182_v15, %v5186_v50  ;;  %5213 = vpow2.f32 %v3373_v53  ;;  %v9320_v53 = vld [vmem:[#allocation195_spill] sm:$0xff]  ;;  %v3325_v32 = vmul.f32 1.442695, %v2966_v13  ;;  %v9323_v50 = vld [vmem:[#allocation88_spill] sm:$0xff]  ;;  %v3323_v61 = vmul.f32 1.442695, %v2965_v2 }
 0x58c   : > { %4011 = vmatprep.subr.bf16.mxu1 %v3704_v29  ;;  %v5190_v26 = vpop.eup %5189  ;;  %5215 = vpow2.f32 %v3379_v21  ;;  %v2973_v15 = vsub.f32 %v9320_v53, %v9311_v54  ;;  %v2956_v29 = vsub.f32 %v9322_v58, %v9321_v3  ;;  %v3319_v45 = vmul.f32 1.442695, %v2963_v33  ;;  %v9328_v33 = vld [vmem:[#allocation202_spill] sm:$0xff]  ;;  %v9329_v22 = vld [vmem:[#allocation183_spill] sm:$0xff]  ;;  %v9332_v2 = vld [vmem:[#allocation196_spill] sm:$0xff] }
 0x58d   : > { %4091 = vmatpush2.bf16.xpose.msra.mxu0 %v3713_v23  ;;  %v5192_v8 = vpop.eup %5191  ;;  %5217 = vpow2.f32 %v3357_v25  ;;  %v3335_v52 = vmul.f32 1.442695, %v2971_v51  ;;  %v2949_v51 = vsub.f32 %v9329_v22, %v9323_v50  ;;  %v9339_v22 = vld [vmem:[#allocation175_spill] sm:$0xff] }
 0x58e   : > { %4092 = vmatprep.subr.bf16.mxu0 %v3706_v12  ;;  %v5194_v42 = vpop.eup %5193  ;;  %5219 = vpow2.f32 %v3351_v1  ;;  %v3703_v20 = vpack.c.bf16 %v5192_v8, %v5188_v34  ;;  %v9324_v1 = vld [vmem:[#allocation200_spill] sm:$0xff]  ;;  %v2958_v34 = vsub.f32 %v9325_v62, %v9321_v3  ;;  %v3339_v12 = vmul.f32 1.442695, %v2973_v15 }
 0x58f   : > { %v5196_v35 = vpop.eup %5195  ;;  %5221 = vpow2.f32 %v3367_v16  ;;  %v3696_v21 = vpack.c.bf16 %v5194_v42, %v5190_v26  ;;  %v2948_v23 = vsub.f32 %v9324_v1, %v9323_v50  ;;  %v3305_v27 = vmul.f32 1.442695, %v2956_v29  ;;  %v9326_v26 = vld [vmem:[#allocation185_spill] sm:$0xff] }
 0x590   : > { %v5198_v41 = vpop.eup %5197  ;;  %5223 = vpow2.f32 %v3371_v38  ;;  %v2950_v38 = vsub.f32 %v9326_v26, %v9323_v50 }
 0x591   : > { %v5200_v11 = vpop.eup %5199  ;;  %5225 = vpow2.f32 %v3337_v36  ;;  %v9327_v36 = vld [vmem:[#allocation198_spill] sm:$0xff]  ;;  %v3289_v13 = vmul.f32 1.442695, %v2948_v23  ;;  %v9335_v23 = vld [vmem:[#allocation181_spill] sm:$0xff] }
 0x592   : > { %v5202_v25 = vpop.eup %5201  ;;  %v3705_v5 = vpack.c.bf16 %v5196_v35, %v5200_v11  ;;  %5227 = vpow2.f32 %v3321_v55  ;;  %v2947_v48 = vsub.f32 %v9327_v36, %v9323_v50  ;;  %v2955_v55 = vsub.f32 %v9328_v33, %v9321_v3  ;;  %v9331_v11 = vld [vmem:[#allocation98_spill] sm:$0xff] }
 0x593   : > { %4012 = vmatpush2.bf16.xpose.msra.mxu1 %v3703_v20  ;;  %v5204_v4 = vpop.eup %5203  ;;  %v3698_v54 = vpack.c.bf16 %v5198_v41, %v5202_v25  ;;  %5229 = vpow2.f32 %v3341_v28  ;;  %v3309_v35 = vmul.f32 1.442695, %v2958_v34  ;;  %v9330_v28 = vld [vmem:[#allocation187_spill] sm:$0xff]  ;;  %v3293_v20 = vmul.f32 1.442695, %v2950_v38  ;;  %v9333_v25 = vld [vmem:[#allocation100_spill] sm:$0xff] }
 0x594   : > { %4013 = vmatprep.subr.bf16.mxu1 %v3696_v21  ;;  %v5206_v16 = vpop.eup %5205  ;;  %5231 = vpow2.f32 %v3355_v0  ;;  %v2957_v41 = vsub.f32 %v9330_v28, %v9321_v3  ;;  %v2940_v21 = vsub.f32 %v9332_v2, %v9331_v11  ;;  %v3287_v58 = vmul.f32 1.442695, %v2947_v48  ;;  %v9337_v38 = vld [vmem:[#allocation190_spill] sm:$0xff]  ;;  %v9341_v2 = vld [vmem:[#allocation207_spill] sm:$0xff] }
 0x595   : > { %4093 = vmatpush2.bf16.xpose.msra.mxu0 %v3705_v5  ;;  %v5208_v60 = vpop.eup %5207  ;;  %5233 = vpow2.f32 %v3325_v32  ;;  %v3695_v49 = vpack.c.bf16 %v5206_v16, %v5204_v4  ;;  %v3303_v1 = vmul.f32 1.442695, %v2955_v55  ;;  %v2942_v4 = vsub.f32 %v9335_v23, %v9331_v11  ;;  %v4892_v55 = vld [vmem:[#allocation3 + $0x38] ss:$184 sps:$4 sm:$0xff]  }
 0x596   : > { %4094 = vmatprep.subr.bf16.mxu0 %v3698_v54  ;;  %v5210_v8 = vpop.eup %5209  ;;  %5235 = vpow2.f32 %v3319_v45  ;;  %v9334_v45 = vld [vmem:[#allocation192_spill] sm:$0xff]  ;;  %v7978_v54 = vld [vmem:[#allocation3 + $0x20] sm:$0xff]  ;;  %v3307_v34 = vmul.f32 1.442695, %v2957_v41  ;;  %v2933_v28 = vsub.f32 %v9339_v22, %v9333_v25  ;;  %v9340_v41 = vld [vmem:[#allocation179_spill] sm:$0xff] }
 0x597   : > { %v5212_v42 = vpop.eup %5211  ;;  %5237 = vpow2.f32 %v3335_v52  ;;  %v2932_v5 = vsub.f32 %v9334_v45, %v9333_v25  ;;  %v7976_v52 = vld [vmem:[#allocation3 + $0x100] sm:$0xff]  ;;  %v9345_v45 = vld [vmem:[#allocation188_spill] sm:$0xff]  ;;  %v9346_v23 = vld [vmem:[#allocation105_spill] sm:$0xff] }
 0x598   : > { %v5214_v0 = vpop.eup %5213  ;;  %5239 = vpow2.f32 %v3339_v12  ;;  %v3692_v15 = vpack.c.bf16 %v5210_v8, %v5212_v42  ;;  %v3273_v12 = vmul.f32 1.442695, %v2940_v21  ;;  %v2931_v8 = vsub.f32 %v9337_v38, %v9333_v25  ;;  %v9342_v21 = vld [vmem:[#allocation227_spill] sm:$0xff] }
 0x599   : > { %v5216_v53 = vpop.eup %5215  ;;  %5241 = vpow2.f32 %v3305_v27  ;;  %v3257_v36 = vmul.f32 1.442695, %v2932_v5  ;;  %v4686_v48 = vcombine.high %v7976_v52, %v7978_v54  ;;  %v3291_v42 = vmul.f32 1.442695, %v2949_v51 }
 0x59a   : > { %v5218_v32 = vpop.eup %5217  ;;  %v3697_v29 = vpack.c.bf16 %v5208_v60, %v5216_v53  ;;  %5243 = vpow2.f32 %v3289_v13  ;;  %v9336_v60 = vld [vmem:[#allocation177_spill] sm:$0xff]  ;;  %v9343_v51 = vcombine.low %v9341_v2, %v9342_v21 }
 0x59b   : > { %4014 = vmatpush2.bf16.xpose.msra.mxu1 %v3695_v49  ;;  %v5220_v50 = vpop.eup %5219  ;;  %v3694_v3 = vpack.c.bf16 %v5214_v0, %v5218_v32  ;;  %5245 = vpow2.f32 %v3309_v35  ;;  %v2934_v27 = vsub.f32 %v9336_v60, %v9333_v25  ;;  %v3277_v35 = vmul.f32 1.442695, %v2942_v4 }
 0x59c   : > { %4145 = vmatprep.subr.bf16.mxu1 %v3692_v15  ;;  %v5222_v62 = vpop.eup %5221  ;;  %5247 = vpow2.f32 %v3323_v61  ;;  %v9338_v61 = vld [vmem:[#allocation194_spill] sm:$0xff]  ;;  %v2941_v49 = vsub.f32 %v9340_v41, %v9331_v11  ;;  %v3259_v41 = vmul.f32 1.442695, %v2933_v28  ;;  %v9353_v28 = vld [vmem:[#allocation117_spill] sm:$0xff] }
 0x59d   : > { %4095 = vmatpush2.bf16.xpose.msra.mxu0 %v3697_v29  ;;  %v5224_v16 = vpop.eup %5223  ;;  %5249 = vpow2.f32 %v3293_v20  ;;  %v2939_v33 = vsub.f32 %v9338_v61, %v9331_v11  ;;  %v3691_v53 = vpack.c.bf16 %v5222_v62, %v5220_v50  ;;  %v4897_v15 = vld [vmem:[#allocation3 + $0xe4] ss:$-208 sps:$4 sm:$0xff]   ;;  %v9344_v29 = vld [vmem:[#allocation107_spill] sm:$0xff] }
 0x59e   : > { %4226 = vmatprep.subr.bf16.mxu0 %v3694_v3  ;;  %v5226_v26 = vpop.eup %5225  ;;  %5251 = vpow2.f32 %v3287_v58  ;;  %v3261_v58 = vmul.f32 1.442695, %v2934_v27  ;;  %v2924_v5 = vsub.f32 %v9345_v45, %v9344_v29  ;;  %v3255_v3 = vmul.f32 1.442695, %v2931_v8  ;;  %v9347_v11 = vld [vmem:[#allocation184_spill] sm:$0xff]  ;;  %v9349_v8 = vld [vmem:[#allocation169_spill] sm:$0xff] }
 0x59f   : > { %v5228_v13 = vpop.eup %5227  ;;  %5253 = vpow2.f32 %v3303_v1  ;;  %v2916_v50 = vsub.f32 %v9347_v11, %v9346_v23  ;;  %v3271_v62 = vmul.f32 1.442695, %v2939_v33  ;;  %v8007_v61 = vld [vmem:[#allocation3 + $0xe8] sm:$0xff] }
 0x5a0   : > { %v5230_v0 = vpop.eup %5229  ;;  %5255 = vpow2.f32 %v3307_v34  ;;  %v3684_v32 = vpack.c.bf16 %v5226_v26, %v5228_v13  ;;  %v3275_v26 = vmul.f32 1.442695, %v2941_v49  ;;  %v3241_v38 = vmul.f32 1.442695, %v2924_v5  ;;  %v8005_v13 = vld [vmem:[#allocation3 + $0x88] sm:$0xff]  ;;  %v9351_v49 = vld [vmem:[#allocation186_spill] sm:$0xff] }
 0x5a1   : > { %v5232_v20 = vpop.eup %5231  ;;  %5257 = vpow2.f32 %v3273_v12  ;;  %v9348_v12 = vld [vmem:[#allocation173_spill] sm:$0xff]  ;;  %v9354_v5 = vld [vmem:[#allocation180_spill] sm:$0xff] }
 0x5a2   : > { %4016 = vmatmul.mubr.bf16.vlgmr.msra.gmra.mxu1 %v9343_v51  ;;  %v5234_v1 = vpop.eup %5233  ;;  %v3693_v25 = vpack.c.bf16 %v5224_v16, %v5232_v20  ;;  %5259 = vpow2.f32 %v3257_v36  ;;  %v2926_v60 = vsub.f32 %v9348_v12, %v9344_v29  ;;  %v2918_v36 = vsub.f32 %v9349_v8, %v9346_v23  ;;  %v4895_v20 = vld [vmem:[#allocation3 + $0xe0] ss:$-208 sps:$4 sm:$0xff]  }
 0x5a3   : > { %4146 = vmatpush1.bf16.xpose.msra.mxu1 %v3691_v53  ;;  %4025 = vmatprep.mubr.bf16.mxu1 %v4686_v48  ;;  %v5236_v4 = vpop.eup %5235  ;;  %v3686_v34 = vpack.c.bf16 %v5230_v0, %v5234_v1  ;;  %5261 = vpow2.f32 %v3277_v35  ;;  %v4685_v48 = vcombine.low %v7976_v52, %v7978_v54  ;;  %v3225_v35 = vmul.f32 1.442695, %v2916_v50  ;;  %v4900_v0 = vld [vmem:[#allocation3 + $0xc4] ss:$16 sps:$4 sm:$0xff]   ;;  %v9352_v54 = vld [vmem:[#allocation171_spill] sm:$0xff] }
 0x5a4   : > { %4097 = vmatmul.mubr.bf16.vlgmr.msra.gmra.mxu0 %v4892_v55  ;;  %4147 = vmatprep.subr.bf16.mxu1 %v3684_v32  ;;  %v5238_v27 = vpop.eup %5237  ;;  %5263 = vpow2.f32 %v3291_v42  ;;  %v9350_v42 = vld [vmem:[#allocation182_spill] sm:$0xff]  ;;  %v2923_v53 = vsub.f32 %v9351_v49, %v9344_v29  ;;  %v2925_v2 = vsub.f32 %v9352_v54, %v9344_v29  ;;  %v4696_v51 = vcombine.high %v8005_v13, %v8007_v61  ;;  %v9355_v50 = vld [vmem:[#allocation92_spill] sm:$0xff] }
 0x5a5   : > { %4227 = vmatpush1.bf16.xpose.msra.mxu0 %v3693_v25  ;;  %4106 = vmatprep.mubr.bf16.mxu0 %v4897_v15  ;;  %v5240_v16 = vpop.eup %5239  ;;  %5265 = vpow2.f32 %v3261_v58  ;;  %v2915_v55 = vsub.f32 %v9350_v42, %v9346_v23  ;;  %v3245_v15 = vmul.f32 1.442695, %v2926_v60  ;;  %v3683_v21 = vpack.c.bf16 %v5238_v27, %v5236_v4  ;;  %v9357_v60 = vld [vmem:[#allocation165_spill] sm:$0xff] }
 0x5a6   : > { %4228 = vmatprep.subr.bf16.mxu0 %v3686_v34  ;;  %v5242_v33 = vpop.eup %5241  ;;  %5267 = vpow2.f32 %v3255_v3  ;;  %v3229_v45 = vmul.f32 1.442695, %v2918_v36  ;;  %v2908_v1 = vsub.f32 %v9354_v5, %v9353_v28  ;;  %v3239_v34 = vmul.f32 1.442695, %v2923_v53  ;;  %v4903_v53 = vld [vmem:[#allocation3 + $0xb4] ss:$24 sps:$4 sm:$0xff]  }
 0x5a7   : > { %v5244_v22 = vpop.eup %5243  ;;  %5269 = vpow2.f32 %v3271_v62  ;;  %v3223_v25 = vmul.f32 1.442695, %v2915_v55  ;;  %v9356_v62 = vld [vmem:[#allocation176_spill] sm:$0xff]  ;;  %v2910_v27 = vsub.f32 %v9357_v60, %v9353_v28 }
 0x5a8   : > { %v5246_v52 = vpop.eup %5245  ;;  %5271 = vpow2.f32 %v3275_v26  ;;  %v3676_v58 = vpack.c.bf16 %v5242_v33, %v5244_v22  ;;  %v2900_v29 = vsub.f32 %v9356_v62, %v9355_v50  ;;  %v9359_v33 = vld [vmem:[#allocation161_spill] sm:$0xff]  ;;  %v4898_v55 = vld [vmem:[#allocation3 + $0xc0] ss:$16 sps:$4 sm:$0xff]  }
 0x5a9   : > { %v5248_v32 = vpop.eup %5247  ;;  %5273 = vpow2.f32 %v3241_v38  ;;  %v9358_v38 = vld [vmem:[#allocation167_spill] sm:$0xff]  ;;  %v2902_v42 = vsub.f32 %v9359_v33, %v9355_v50  ;;  %v3213_v54 = vmul.f32 1.442695, %v2910_v27  ;;  %v4906_v5 = vld [vmem:[#allocation3 + $0x74] ss:$-88 sps:$4 sm:$0xff]  }
 0x5aa   : > { %4026 = vmatmul.mubr.bf16.gmra.mxu1 %v4685_v48  ;;  %v5250_v3 = vpop.eup %5249  ;;  %v3685_v11 = vpack.c.bf16 %v5240_v16, %v5248_v32  ;;  %5275 = vpow2.f32 %v3225_v35  ;;  %v2917_v8 = vsub.f32 %v9358_v38, %v9346_v23  ;;  %v3243_v16 = vmul.f32 1.442695, %v2925_v2  ;;  %v9363_v32 = vld [vmem:[#allocation163_spill] sm:$0xff] }
 0x5ab   : > { %4148 = vmatpush1.bf16.xpose.msra.mxu1 %v3683_v21  ;;  %4035 = vmatprep.mubr.bf16.mxu1 %v4900_v0  ;;  %v5252_v4 = vpop.eup %5251  ;;  %v3678_v12 = vpack.c.bf16 %v5246_v52, %v5250_v3  ;;  %5277 = vpow2.f32 %v3245_v15  ;;  %v3209_v48 = vmul.f32 1.442695, %v2908_v1  ;;  %v9360_v0 = vld [vmem:[#allocation174_spill] sm:$0xff]  ;;  %v3193_v23 = vmul.f32 1.442695, %v2900_v29 }
 0x5ac   : > { %4149 = vmatprep.subr.bf16.mxu1 %v3676_v58  ;;  %4107 = vmatmul.mubr.bf16.gmra.mxu0 %v4895_v20  ;;  %v5254_v26 = vpop.eup %5253  ;;  %5279 = vpow2.f32 %v3259_v41  ;;  %v2899_v22 = vsub.f32 %v9360_v0, %v9355_v50  ;;  %v9361_v41 = vld [vmem:[#allocation159_spill] sm:$0xff]  ;;  %v9362_v20 = vld [vmem:[#allocation178_spill] sm:$0xff]  ;;  %v4695_v2 = vcombine.low %v8005_v13, %v8007_v61  ;;  %v2909_v58 = vsub.f32 %v9363_v32, %v9353_v28 }
 0x5ad   : > { %4229 = vmatpush1.bf16.xpose.msra.mxu0 %v3685_v11  ;;  %4116 = vmatprep.mubr.bf16.mxu0 %v4696_v51  ;;  %v5256_v36 = vpop.eup %5255  ;;  %5281 = vpow2.f32 %v3229_v45  ;;  %v2901_v49 = vsub.f32 %v9361_v41, %v9355_v50  ;;  %v2907_v52 = vsub.f32 %v9362_v20, %v9353_v28  ;;  %v3227_v51 = vmul.f32 1.442695, %v2917_v8  ;;  %v9364_v11 = vld [vmem:[#allocation97_spill] sm:$0xff]  ;;  %v9365_v50 = vld [vmem:[#allocation172_spill] sm:$0xff]  ;;  %v9366_v61 = vld [vmem:[#allocation99_spill] sm:$0xff] }
 0x5ae   : > { %4230 = vmatprep.subr.bf16.mxu0 %v3678_v12  ;;  %v5258_v35 = vpop.eup %5257  ;;  %5283 = vpow2.f32 %v3223_v25  ;;  %v3675_v45 = vpack.c.bf16 %v5254_v26, %v5252_v4  ;;  %v3197_v25 = vmul.f32 1.442695, %v2902_v42  ;;  %v2892_v62 = vsub.f32 %v9365_v50, %v9364_v11  ;;  %v9367_v12 = vld [vmem:[#allocation168_spill] sm:$0xff]  ;;  %v9368_v26 = vld [vmem:[#allocation157_spill] sm:$0xff]  ;;  %v8043_v8 = vld [vmem:[#allocation3 + $0x8] sm:$0xff] }
 0x5af   : > { %v5260_v15 = vpop.eup %5259  ;;  %5285 = vpow2.f32 %v3239_v34  ;;  %v3191_v34 = vmul.f32 1.442695, %v2899_v22  ;;  %v2884_v60 = vsub.f32 %v9367_v12, %v9366_v61  ;;  %v3207_v4 = vmul.f32 1.442695, %v2907_v52  ;;  %v9369_v42 = vld [vmem:[#allocation153_spill] sm:$0xff]  ;;  %v8047_v0 = vld [vmem:[#allocation3 + $0x48] sm:$0xff] }
 0x5b0   : > { %v5262_v21 = vpop.eup %5261  ;;  %5287 = vpow2.f32 %v3243_v16  ;;  %v3668_v3 = vpack.c.bf16 %v5258_v35, %v5260_v15  ;;  %v2894_v38 = vsub.f32 %v9368_v26, %v9364_v11  ;;  %v3177_v33 = vmul.f32 1.442695, %v2892_v62  ;;  %v4901_v35 = vld [vmem:[#allocation3 + $0xb0] ss:$24 sps:$4 sm:$0xff]   ;;  %v9370_v41 = vld [vmem:[#allocation166_spill] sm:$0xff] }
 0x5b1   : > { %v5264_v1 = vpop.eup %5263  ;;  %5289 = vpow2.f32 %v3209_v48  ;;  %v3211_v48 = vmul.f32 1.442695, %v2909_v58  ;;  %v4710_v15 = vcombine.high %v8043_v8, %v8043_v8  ;;  %v3195_v52 = vmul.f32 1.442695, %v2901_v49  ;;  %v9372_v58 = vld [vmem:[#allocation155_spill] sm:$0xff]  ;;  %v9373_v49 = vld [vmem:[#allocation89_spill] sm:$0xff] }
 0x5b2   : > { %4036 = vmatmul.mubr.bf16.gmra.mxu1 %v4898_v55  ;;  %v5266_v29 = vpop.eup %5265  ;;  %v3677_v13 = vpack.c.bf16 %v5256_v36, %v5264_v1  ;;  %5291 = vpow2.f32 %v3193_v23  ;;  %v2886_v55 = vsub.f32 %v9369_v42, %v9366_v61  ;;  %v2883_v23 = vsub.f32 %v9370_v41, %v9366_v61  ;;  %v9374_v62 = vld [vmem:[#allocation164_spill] sm:$0xff] }
 0x5b3   : > { %4150 = vmatpush1.bf16.xpose.msra.mxu1 %v3675_v45  ;;  %4045 = vmatprep.mubr.bf16.mxu1 %v4903_v53  ;;  %v5268_v28 = vpop.eup %5267  ;;  %v3670_v27 = vpack.c.bf16 %v5262_v21, %v5266_v29  ;;  %5293 = vpow2.f32 %v3213_v54  ;;  %v3161_v53 = vmul.f32 1.442695, %v2884_v60  ;;  %v9371_v54 = vld [vmem:[#allocation170_spill] sm:$0xff]  ;;  %v3181_v21 = vmul.f32 1.442695, %v2894_v38  ;;  %v9375_v60 = vld [vmem:[#allocation109_spill] sm:$0xff] }
 0x5b4   : > { %4151 = vmatprep.subr.bf16.mxu1 %v3668_v3  ;;  %4117 = vmatmul.mubr.bf16.gmra.mxu0 %v4695_v2  ;;  %v5270_v16 = vpop.eup %5269  ;;  %5295 = vpow2.f32 %v3227_v51  ;;  %v2891_v2 = vsub.f32 %v9371_v54, %v9364_v11  ;;  %v4904_v51 = vld [vmem:[#allocation3 + $0x70] ss:$-88 sps:$4 sm:$0xff]   ;;  %v2893_v45 = vsub.f32 %v9372_v58, %v9364_v11  ;;  %v4712_v1 = vcombine.high %v8047_v0, %v8047_v0 }
 0x5b5   : > { %4231 = vmatpush1.bf16.xpose.msra.mxu0 %v3677_v13  ;;  %4126 = vmatprep.mubr.bf16.mxu0 %v4906_v5  ;;  %v5272_v36 = vpop.eup %5271  ;;  %5297 = vpow2.f32 %v3197_v25  ;;  %v3667_v5 = vpack.c.bf16 %v5270_v16, %v5268_v28  ;;  %v3165_v50 = vmul.f32 1.442695, %v2886_v55  ;;  %v2876_v29 = vsub.f32 %v9374_v62, %v9373_v49  ;;  %v9377_v38 = vld [vmem:[#allocation149_spill] sm:$0xff] }
 0x5b6   : > { %4232 = vmatprep.subr.bf16.mxu0 %v3670_v27  ;;  %v5274_v22 = vpop.eup %5273  ;;  %5299 = vpow2.f32 %v3191_v34  ;;  %v3159_v13 = vmul.f32 1.442695, %v2883_v23  ;;  %v3175_v27 = vmul.f32 1.442695, %v2891_v2  ;;  %v2878_v16 = vsub.f32 %v9377_v38, %v9373_v49  ;;  %v9381_v2 = vld [vmem:[#allocation162_spill] sm:$0xff] }
 0x5b7   : > { %v5276_v20 = vpop.eup %5275  ;;  %5301 = vpow2.f32 %v3207_v4  ;;  %v9376_v4 = vld [vmem:[#allocation160_spill] sm:$0xff]  ;;  %v4709_v23 = vcombine.low %v8043_v8, %v8043_v8  ;;  %v9382_v8 = vld [vmem:[#allocation147_spill] sm:$0xff] }
 0x5b8   : > { %v5278_v32 = vpop.eup %5277  ;;  %5303 = vpow2.f32 %v3211_v48  ;;  %v3660_v25 = vpack.c.bf16 %v5274_v22, %v5276_v20  ;;  %v2868_v11 = vsub.f32 %v9376_v4, %v9375_v60  ;;  %v9379_v22 = vld [vmem:[#allocation145_spill] sm:$0xff] }
 0x5b9   : > { %v5280_v3 = vpop.eup %5279  ;;  %5305 = vpow2.f32 %v3177_v33  ;;  %v9378_v33 = vld [vmem:[#allocation151_spill] sm:$0xff]  ;;  %v2870_v41 = vsub.f32 %v9379_v22, %v9375_v60 }
 0x5ba   : > { %4046 = vmatmul.mubr.bf16.gmra.mxu1 %v4901_v35  ;;  %v5282_v34 = vpop.eup %5281  ;;  %v3669_v12 = vpack.c.bf16 %v5272_v36, %v5280_v3  ;;  %5307 = vpow2.f32 %v3161_v53  ;;  %v2885_v42 = vsub.f32 %v9378_v33, %v9366_v61  ;;  %v3179_v36 = vmul.f32 1.442695, %v2893_v45  ;;  %v4913_v61 = vld [vmem:[#allocation3 + $0x114] ss:$-24 sps:$4 sm:$0xff]  }
 0x5bb   : > { %4152 = vmatpush1.bf16.xpose.msra.mxu1 %v3667_v5  ;;  %4055 = vmatprep.mubr.bf16.mxu1 %v4710_v15  ;;  %v5284_v28 = vpop.eup %5283  ;;  %v3662_v26 = vpack.c.bf16 %v5278_v32, %v5282_v34  ;;  %5309 = vpow2.f32 %v3181_v21  ;;  %v3145_v35 = vmul.f32 1.442695, %v2876_v29  ;;  %v9380_v15 = vld [vmem:[#allocation158_spill] sm:$0xff]  ;;  %v2875_v21 = vsub.f32 %v9381_v2, %v9373_v49  ;;  %v4916_v3 = vld [vmem:[#allocation3 + $0x2c] ss:$80 sps:$4 sm:$0xff]  }
 0x5bc   : > { %4153 = vmatprep.subr.bf16.mxu1 %v3660_v25  ;;  %4127 = vmatmul.mubr.bf16.gmra.mxu0 %v4904_v51  ;;  %v5286_v48 = vpop.eup %5285  ;;  %5311 = vpow2.f32 %v3195_v52  ;;  %v2867_v20 = vsub.f32 %v9380_v15, %v9375_v60  ;;  %v3129_v52 = vmul.f32 1.442695, %v2868_v11  ;;  %v3149_v51 = vmul.f32 1.442695, %v2878_v16  ;;  %v9383_v29 = vld [vmem:[#allocation93_spill] sm:$0xff]  ;;  %v9387_v16 = vld [vmem:[#allocation108_spill] sm:$0xff] }
 0x5bd   : > { %4233 = vmatpush1.bf16.xpose.msra.mxu0 %v3669_v12  ;;  %4136 = vmatprep.mubr.bf16.mxu0 %v4712_v1  ;;  %v5288_v55 = vpop.eup %5287  ;;  %5313 = vpow2.f32 %v3165_v50  ;;  %v4711_v32 = vcombine.low %v8047_v0, %v8047_v0  ;;  %v3163_v45 = vmul.f32 1.442695, %v2885_v42  ;;  %v2877_v5 = vsub.f32 %v9382_v8, %v9373_v49  ;;  %v9384_v34 = vld [vmem:[#allocation133_spill] sm:$0xff]  ;;  %v9388_v42 = vld [vmem:[#allocation143_spill] sm:$0xff]  ;;  %v9390_v15 = vld [vmem:[#allocation270_spill] sm:$0xff] }
 0x5be   : > { %4234 = vmatprep.subr.bf16.mxu0 %v3662_v26  ;;  %v5290_v53 = vpop.eup %5289  ;;  %5315 = vpow2.f32 %v3159_v13  ;;  %v3659_v1 = vpack.c.bf16 %v5286_v48, %v5284_v28  ;;  %v3133_v62 = vmul.f32 1.442695, %v2870_v41  ;;  %v3116_v13 = vsub.f32 %v9384_v34, %v9383_v29  ;;  %v9385_v11 = vld [vmem:[#allocation101_spill] sm:$0xff]  ;;  %v9389_v41 = vld [vmem:[#allocation271_spill] sm:$0xff] }
 0x5bf   : > { %v5292_v54 = vpop.eup %5291  ;;  %5317 = vpow2.f32 %v3175_v27  ;;  %v3127_v4 = vmul.f32 1.442695, %v2867_v20  ;;  %v9386_v27 = vld [vmem:[#allocation272_spill] sm:$0xff]  ;;  %v3143_v28 = vmul.f32 1.442695, %v2875_v21  ;;  %v3118_v48 = vsub.f32 %v9387_v16, %v9383_v29 }
 0x5c0   : > { %v5294_v58 = vpop.eup %5293  ;;  %5319 = vpow2.f32 %v3179_v36  ;;  %v3652_v50 = vpack.c.bf16 %v5290_v53, %v5292_v54  ;;  %v3108_v26 = vsub.f32 %v9386_v27, %v9385_v11  ;;  %v2869_v36 = vsub.f32 %v9388_v42, %v9375_v60  ;;  %v9391_v60 = vld [vmem:[#allocation156_spill] sm:$0xff] }
 0x5c1   : > { %v5296_v25 = vpop.eup %5295  ;;  %5321 = vpow2.f32 %v3145_v35  ;;  %v3625_v22 = vmul.f32 1.442695, %v3116_v13  ;;  %v3107_v20 = vsub.f32 %v9390_v15, %v9385_v11  ;;  %v3115_v54 = vsub.f32 %v9391_v60, %v9383_v29  ;;  %v9398_v16 = vld [vmem:[#allocation268_spill] sm:$0xff] }
 0x5c2   : > { %4056 = vmatmul.mubr.bf16.gmra.mxu1 %v4709_v23  ;;  %v5298_v12 = vpop.eup %5297  ;;  %v3661_v0 = vpack.c.bf16 %v5288_v55, %v5296_v25  ;;  %5323 = vpow2.f32 %v3129_v52  ;;  %v3147_v55 = vmul.f32 1.442695, %v2877_v5  ;;  %v3110_v23 = vsub.f32 %v9389_v41, %v9385_v11  ;;  %v9394_v25 = vld [vmem:[#allocation269_spill] sm:$0xff]  ;;  %v9400_v41 = vld [vmem:[#allocation264_spill] sm:$0xff] }
 0x5c3   : > { %4154 = vmatpush1.bf16.xpose.msra.mxu1 %v3659_v1  ;;  %4177 = vmatprep.mubr.bf16.mxu1 %v4913_v61  ;;  %v5300_v49 = vpop.eup %5299  ;;  %v3654_v38 = vpack.c.bf16 %v5294_v58, %v5298_v12  ;;  %5325 = vpow2.f32 %v3149_v51  ;;  %v3609_v52 = vmul.f32 1.442695, %v3108_v26  ;;  %v3629_v2 = vmul.f32 1.442695, %v3118_v48  ;;  %v9395_v12 = vld [vmem:[#allocation223_spill] sm:$0xff] }
 0x5c4   : > { %4155 = vmatprep.subr.bf16.mxu1 %v3652_v50  ;;  %4137 = vmatmul.mubr.bf16.gmra.mxu0 %v4711_v32  ;;  %v5302_v33 = vpop.eup %5301  ;;  %5327 = vpow2.f32 %v3163_v45  ;;  %v3131_v51 = vmul.f32 1.442695, %v2869_v36  ;;  %v9392_v32 = vld [vmem:[#allocation121_spill] sm:$0xff]  ;;  %v3613_v1 = vmul.f32 1.442695, %v3110_v23  ;;  %v3109_v48 = vsub.f32 %v9398_v16, %v9385_v11  ;;  %v9407_v16 = vld [vmem:[#allocation248_spill] sm:$0xff] }
 0x5c5   : > { %4235 = vmatpush1.bf16.xpose.msra.mxu0 %v3661_v0  ;;  %4258 = vmatprep.mubr.bf16.mxu0 %v4916_v3  ;;  %v5304_v35 = vpop.eup %5303  ;;  %5329 = vpow2.f32 %v3133_v62  ;;  %v3117_v58 = vsub.f32 %v9392_v32, %v9383_v29  ;;  %v3651_v45 = vpack.c.bf16 %v5302_v33, %v5300_v49  ;;  %v9393_v3 = vld [vmem:[#allocation225_spill] sm:$0xff]  ;;  %v3607_v34 = vmul.f32 1.442695, %v3107_v20  ;;  %v9401_v20 = vld [vmem:[#allocation267_spill] sm:$0xff] }
 0x5c6   : > { %4236 = vmatprep.subr.bf16.mxu0 %v3654_v38  ;;  %v5306_v53 = vpop.eup %5305  ;;  %5331 = vpow2.f32 %v3127_v4  ;;  %v3100_v50 = vsub.f32 %v9394_v25, %v9393_v3  ;;  %v9396_v4 = vld [vmem:[#allocation266_spill] sm:$0xff]  ;;  %v3623_v26 = vmul.f32 1.442695, %v3115_v54  ;;  %v9397_v49 = vld [vmem:[#allocation265_spill] sm:$0xff]  ;;  %v3091_v23 = vsub.f32 %v9400_v41, %v9395_v12 }
 0x5c7   : > { %v5308_v61 = vpop.eup %5307  ;;  %5333 = vpow2.f32 %v3143_v28  ;;  %v3092_v0 = vsub.f32 %v9396_v4, %v9395_v12  ;;  %v3102_v28 = vsub.f32 %v9397_v49, %v9393_v3  ;;  %v3627_v33 = vmul.f32 1.442695, %v3117_v58  ;;  %v9402_v54 = vld [vmem:[#allocation262_spill] sm:$0xff]  ;;  %v9405_v4 = vld [vmem:[#allocation253_spill] sm:$0xff] }
 0x5c8   : > { %v5310_v21 = vpop.eup %5309  ;;  %5335 = vpow2.f32 %v3147_v55  ;;  %v3644_v5 = vpack.c.bf16 %v5306_v53, %v5308_v61  ;;  %v3593_v36 = vmul.f32 1.442695, %v3100_v50  ;;  %v9399_v55 = vld [vmem:[#allocation259_spill] sm:$0xff]  ;;  %v3099_v11 = vsub.f32 %v9401_v20, %v9393_v3  ;;  %v9404_v50 = vld [vmem:[#allocation260_spill] sm:$0xff] }
 0x5c9   : > { %v5312_v8 = vpop.eup %5311  ;;  %5337 = vpow2.f32 %v3625_v22  ;;  %v3577_v53 = vmul.f32 1.442695, %v3092_v0  ;;  %v3611_v60 = vmul.f32 1.442695, %v3109_v48  ;;  %v3086_v0 = vsub.f32 %v9405_v4, %v7694_v30 }
 0x5ca   : > { %v5314_v62 = vpop.eup %5313  ;;  %v3653_v13 = vpack.c.bf16 %v5304_v35, %v5312_v8  ;;  %5339 = vpow2.f32 %v3609_v52  ;;  %v3094_v35 = vsub.f32 %v9399_v55, %v9395_v12  ;;  %v3597_v52 = vmul.f32 1.442695, %v3102_v28 }
 0x5cb   : > { %4156 = vmatpush1.bf16.xpose.msra.mxu1 %v3651_v45  ;;  %v5316_v27 = vpop.eup %5315  ;;  %v3646_v29 = vpack.c.bf16 %v5310_v21, %v5314_v62  ;;  %5341 = vpow2.f32 %v3629_v2  ;;  %v3101_v2 = vsub.f32 %v9402_v54, %v9393_v3  ;;  %v9403_v45 = vld [vmem:[#allocation263_spill] sm:$0xff]  ;;  %v3076_v62 = vsub.f32 %v9404_v50, %v7692_v46  ;;  %v9411_v54 = vld [vmem:[#allocation257_spill] sm:$0xff] }
 0x5cc   : > { %4157 = vmatprep.subr.bf16.mxu1 %v3644_v5  ;;  %v5318_v38 = vpop.eup %5317  ;;  %5343 = vpow2.f32 %v3131_v51  ;;  %v3581_v58 = vmul.f32 1.442695, %v3094_v35  ;;  %v3084_v8 = vsub.f32 %v9403_v45, %v7694_v30  ;;  %v3078_v48 = vsub.f32 %v9407_v16, %v7692_v46  ;;  %v9417_v16 = vld [vmem:[#allocation255_spill] sm:$0xff] }
 0x5cd   : > { %4237 = vmatpush1.bf16.xpose.msra.mxu0 %v3653_v13  ;;  %v5320_v42 = vpop.eup %5319  ;;  %5345 = vpow2.f32 %v3613_v1  ;;  %v3643_v21 = vpack.c.bf16 %v5318_v38, %v5316_v27  ;;  %v3575_v1 = vmul.f32 1.442695, %v3091_v23  ;;  %v3591_v13 = vmul.f32 1.442695, %v3099_v11 }
 0x5ce   : > { %4238 = vmatprep.subr.bf16.mxu0 %v3646_v29  ;;  %v5322_v22 = vpop.eup %5321  ;;  %5347 = vpow2.f32 %v3607_v34  ;;  %v3595_v49 = vmul.f32 1.442695, %v3101_v2  ;;  %v3561_v38 = vmul.f32 1.442695, %v3084_v8  ;;  %v3545_v55 = vmul.f32 1.442695, %v3076_v62 }
 0x5cf   : > { %v5324_v15 = vpop.eup %5323  ;;  %5349 = vpow2.f32 %v3623_v26  ;;  %v9406_v26 = vld [vmem:[#allocation256_spill] sm:$0xff]  ;;  %v3565_v41 = vmul.f32 1.442695, %v3086_v0  ;;  %v3068_v2 = vsub.f32 %v9411_v54, %v7702_v40  ;;  %v9414_v62 = vld [vmem:[#allocation246_spill] sm:$0xff] }
 0x5d0   : > { %v5326_v61 = vpop.eup %5325  ;;  %5351 = vpow2.f32 %v3627_v33  ;;  %v3636_v32 = vpack.c.bf16 %v5322_v22, %v5324_v15  ;;  %v3093_v29 = vsub.f32 %v9406_v26, %v9395_v12  ;;  %v9409_v22 = vld [vmem:[#allocation261_spill] sm:$0xff]  ;;  %v9410_v15 = vld [vmem:[#allocation250_spill] sm:$0xff]  ;;  %v9415_v0 = vld [vmem:[#allocation240_spill] sm:$0xff] }
 0x5d1   : > { %v5328_v51 = vpop.eup %5327  ;;  %5353 = vpow2.f32 %v3593_v36  ;;  %v3083_v12 = vsub.f32 %v9409_v22, %v7694_v30  ;;  %v3085_v20 = vsub.f32 %v9410_v15, %v7694_v30  ;;  %v3529_v4 = vmul.f32 1.442695, %v3068_v2  ;;  %v9421_v2 = vld [vmem:[#allocation236_spill] sm:$0xff] }
 0x5d2   : > { %v5330_v5 = vpop.eup %5329  ;;  %v3645_v25 = vpack.c.bf16 %v5320_v42, %v5328_v51  ;;  %5355 = vpow2.f32 %v3577_v53  ;;  %v9408_v42 = vld [vmem:[#allocation258_spill] sm:$0xff]  ;;  %v3579_v53 = vmul.f32 1.442695, %v3093_v29  ;;  %v9416_v29 = vld [vmem:[#allocation252_spill] sm:$0xff] }
 0x5d3   : > { %4158 = vmatpush1.bf16.xpose.msra.mxu1 %v3643_v21  ;;  %v5332_v34 = vpop.eup %5331  ;;  %v3638_v3 = vpack.c.bf16 %v5326_v61, %v5330_v5  ;;  %5357 = vpow2.f32 %v3597_v52  ;;  %v3075_v36 = vsub.f32 %v9408_v42, %v7692_v46  ;;  %v3559_v5 = vmul.f32 1.442695, %v3083_v12 }
 0x5d4   : > { %4159 = vmatprep.subr.bf16.mxu1 %v3636_v32  ;;  %v5334_v27 = vpop.eup %5333  ;;  %5359 = vpow2.f32 %v3611_v60  ;;  %v3549_v60 = vmul.f32 1.442695, %v3078_v48 }
 0x5d5   : > { %4239 = vmatpush1.bf16.xpose.msra.mxu0 %v3645_v25  ;;  %v5336_v28 = vpop.eup %5335  ;;  %5361 = vpow2.f32 %v3581_v58  ;;  %v3635_v11 = vpack.c.bf16 %v5334_v27, %v5332_v34  ;;  %v3543_v51 = vmul.f32 1.442695, %v3075_v36  ;;  %v9412_v58 = vld [vmem:[#allocation254_spill] sm:$0xff]  ;;  %v3077_v34 = vsub.f32 %v9414_v62, %v7692_v46 }
 0x5d6   : > { %4240 = vmatprep.subr.bf16.mxu0 %v3638_v3  ;;  %v5338_v33 = vpop.eup %5337  ;;  %5363 = vpow2.f32 %v3575_v1  ;;  %v3060_v45 = vsub.f32 %v9412_v58, %v7696_v43  ;;  %v9413_v1 = vld [vmem:[#allocation244_spill] sm:$0xff]  ;;  %v3062_v27 = vsub.f32 %v9415_v0, %v7696_v43  ;;  %v3067_v46 = vsub.f32 %v9417_v16, %v7702_v40  ;;  %v9418_v36 = vld [vmem:[#allocation242_spill] sm:$0xff] }
 0x5d7   : > { %v5340_v35 = vpop.eup %5339  ;;  %5365 = vpow2.f32 %v3591_v13  ;;  %v3070_v25 = vsub.f32 %v9413_v1, %v7702_v40  ;;  %v3563_v13 = vmul.f32 1.442695, %v3085_v20  ;;  %v3547_v42 = vmul.f32 1.442695, %v3077_v34 }
 0x5d8   : > { %v5342_v23 = vpop.eup %5341  ;;  %5367 = vpow2.f32 %v3595_v49  ;;  %v3756_v61 = vpack.c.bf16 %v5338_v33, %v5340_v35  ;;  %v3059_v49 = vsub.f32 %v9416_v29, %v7696_v43  ;;  %v3527_v54 = vmul.f32 1.442695, %v3067_v46  ;;  %v9427_v46 = vld [vmem:[#allocation243_spill] sm:$0xff] }
 0x5d9   : > { %v5344_v52 = vpop.eup %5343  ;;  %5369 = vpow2.f32 %v3561_v38  ;;  %v3533_v48 = vmul.f32 1.442695, %v3070_v25 }
 0x5da   : > { %v5346_v21 = vpop.eup %5345  ;;  %v3637_v32 = vpack.c.bf16 %v5336_v28, %v5344_v52  ;;  %5371 = vpow2.f32 %v3545_v55  ;;  %v3513_v28 = vmul.f32 1.442695, %v3060_v45  ;;  %v3069_v55 = vsub.f32 %v9418_v36, %v7702_v40  ;;  %v9420_v52 = vld [vmem:[#allocation247_spill] sm:$0xff] }
 0x5db   : > { %4160 = vmatpush1.bf16.xpose.msra.mxu1 %v3635_v11  ;;  %v5348_v8 = vpop.eup %5347  ;;  %v3758_v30 = vpack.c.bf16 %v5342_v23, %v5346_v21  ;;  %5373 = vpow2.f32 %v3565_v41  ;;  %v3517_v41 = vmul.f32 1.442695, %v3062_v27  ;;  %v9419_v23 = vld [vmem:[#allocation251_spill] sm:$0xff]  ;;  %v3511_v20 = vmul.f32 1.442695, %v3059_v49 }
 0x5dc   : > { %4161 = vmatprep.subr.bf16.mxu1 %v3756_v61  ;;  %v5350_v50 = vpop.eup %5349  ;;  %5375 = vpow2.f32 %v3579_v53  ;;  %v3052_v53 = vsub.f32 %v9419_v23, %v7724_v24  ;;  %v3044_v61 = vsub.f32 %v9420_v52, %v7712_v47  ;;  %v3054_v21 = vsub.f32 %v9421_v2, %v7724_v24  ;;  %v9432_v2 = vld [vmem:[#allocation237_spill] sm:$0xff] }
 0x5dd   : > { %4241 = vmatpush1.bf16.xpose.msra.mxu0 %v3637_v32  ;;  %v5352_v3 = vpop.eup %5351  ;;  %5377 = vpow2.f32 %v3549_v60  ;;  %v3755_v35 = vpack.c.bf16 %v5350_v50, %v5348_v8  ;;  %v9422_v32 = vld [vmem:[#allocation238_spill] sm:$0xff]  ;;  %v3531_v45 = vmul.f32 1.442695, %v3069_v55  ;;  %v9424_v50 = vld [vmem:[#allocation245_spill] sm:$0xff]  ;;  %v9428_v55 = vld [vmem:[#allocation239_spill] sm:$0xff] }
 0x5de   : > { %4242 = vmatprep.subr.bf16.mxu0 %v3758_v30  ;;  %v5354_v26 = vpop.eup %5353  ;;  %5379 = vpow2.f32 %v3543_v51  ;;  %v3061_v58 = vsub.f32 %v9422_v32, %v7696_v43  ;;  %v9423_v30 = vld [vmem:[#allocation232_spill] sm:$0xff]  ;;  %v3043_v62 = vsub.f32 %v9424_v50, %v7712_v47  ;;  %v3481_v34 = vmul.f32 1.442695, %v3044_v61 }
 0x5df   : > { %v5356_v38 = vpop.eup %5355  ;;  %5381 = vpow2.f32 %v3559_v5  ;;  %v3497_v5 = vmul.f32 1.442695, %v3052_v53  ;;  %v3046_v1 = vsub.f32 %v9423_v30, %v7712_v47  ;;  %v9434_v30 = vld [vmem:[#allocation226_spill] sm:$0xff] }
 0x5e0   : > { %v5358_v33 = vpop.eup %5357  ;;  %5383 = vpow2.f32 %v3563_v13  ;;  %v3748_v12 = vpack.c.bf16 %v5354_v26, %v5356_v38  ;;  %v3515_v27 = vmul.f32 1.442695, %v3061_v58  ;;  %v9426_v26 = vld [vmem:[#allocation234_spill] sm:$0xff]  ;;  %v9433_v58 = vld [vmem:[#allocation241_spill] sm:$0xff] }
 0x5e1   : > { %v5360_v22 = vpop.eup %5359  ;;  %5385 = vpow2.f32 %v3529_v4  ;;  %v3501_v4 = vmul.f32 1.442695, %v3054_v21  ;;  %v3053_v29 = vsub.f32 %v9426_v26, %v7724_v24  ;;  %v3485_v16 = vmul.f32 1.442695, %v3046_v1 }
 0x5e2   : > { %v5362_v15 = vpop.eup %5361  ;;  %v3757_v11 = vpack.c.bf16 %v5352_v3, %v5360_v22  ;;  %5387 = vpow2.f32 %v3513_v28  ;;  %v9425_v3 = vld [vmem:[#allocation249_spill] sm:$0xff]  ;;  %v3027_v21 = vsub.f32 %v9432_v2, %v7730_v63  ;;  %v3037_v1 = vsub.f32 %v9434_v30, %v7740_v18  ;;  %v9442_v2 = vld [vmem:[#allocation219_spill] sm:$0xff] }
 0x5e3   : > { %4162 = vmatpush2.bf16.xpose.msra.mxu1 %v3755_v35  ;;  %v5364_v60 = vpop.eup %5363  ;;  %v3750_v40 = vpack.c.bf16 %v5358_v33, %v5362_v15  ;;  %5389 = vpow2.f32 %v3533_v48  ;;  %v3051_v43 = vsub.f32 %v9425_v3, %v7724_v24  ;;  %v3036_v48 = vsub.f32 %v9427_v46, %v7740_v18  ;;  %v9430_v15 = vld [vmem:[#allocation230_spill] sm:$0xff] }
 0x5e4   : > { %4163 = vmatprep.subr.bf16.mxu1 %v3748_v12  ;;  %v5366_v51 = vpop.eup %5365  ;;  %5391 = vpow2.f32 %v3547_v42  ;;  %v3479_v42 = vmul.f32 1.442695, %v3043_v62  ;;  %v3028_v35 = vsub.f32 %v9428_v55, %v7730_v63  ;;  %v9438_v46 = vld [vmem:[#allocation222_spill] sm:$0xff]  ;;  %v9439_v55 = vld [vmem:[#allocation217_spill] sm:$0xff] }
 0x5e5   : > { %4243 = vmatpush2.bf16.xpose.msra.mxu0 %v3757_v11  ;;  %v5368_v8 = vpop.eup %5367  ;;  %5393 = vpow2.f32 %v3517_v41  ;;  %v3747_v49 = vpack.c.bf16 %v5366_v51, %v5364_v60  ;;  %v3495_v12 = vmul.f32 1.442695, %v3051_v43  ;;  %v9429_v41 = vld [vmem:[#allocation228_spill] sm:$0xff]  ;;  %v3499_v11 = vmul.f32 1.442695, %v3053_v29 }
 0x5e6   : > { %4244 = vmatprep.subr.bf16.mxu0 %v3750_v40  ;;  %v5370_v25 = vpop.eup %5369  ;;  %5395 = vpow2.f32 %v3511_v20  ;;  %v3038_v23 = vsub.f32 %v9429_v41, %v7740_v18  ;;  %v3045_v20 = vsub.f32 %v9430_v15, %v7712_v47  ;;  %v3465_v61 = vmul.f32 1.442695, %v3036_v48  ;;  %v9431_v60 = vld [vmem:[#allocation224_spill] sm:$0xff] }
 0x5e7   : > { %v5372_v13 = vpop.eup %5371  ;;  %5397 = vpow2.f32 %v3527_v54  ;;  %v3030_v54 = vsub.f32 %v9431_v60, %v7730_v63  ;;  %v3449_v51 = vmul.f32 1.442695, %v3028_v35  ;;  %v3035_v47 = vsub.f32 %v9433_v58, %v7740_v18 }
 0x5e8   : > { %v5374_v0 = vpop.eup %5373  ;;  %5399 = vpow2.f32 %v3531_v45  ;;  %v3740_v38 = vpack.c.bf16 %v5370_v25, %v5372_v13  ;;  %v3469_v45 = vmul.f32 1.442695, %v3038_v23  ;;  %v9435_v13 = vld [vmem:[#allocation235_spill] sm:$0xff]  ;;  %v3029_v48 = vsub.f32 %v9438_v46, %v7730_v63  ;;  %v9440_v63 = vld [vmem:[#allocation233_spill] sm:$0xff] }
 0x5e9   : > { %v5376_v28 = vpop.eup %5375  ;;  %5401 = vpow2.f32 %v3497_v5  ;;  %v3483_v5 = vmul.f32 1.442695, %v3045_v20  ;;  %v3020_v3 = vsub.f32 %v9435_v13, %v7756_v57  ;;  %v3014_v35 = vsub.f32 %v9439_v55, %v7746_v10 }
 0x5ea   : > { %v5378_v33 = vpop.eup %5377  ;;  %v3749_v36 = vpack.c.bf16 %v5368_v8, %v5376_v28  ;;  %5403 = vpow2.f32 %v3481_v34  ;;  %v3453_v34 = vmul.f32 1.442695, %v3030_v54  ;;  %v9437_v28 = vld [vmem:[#allocation221_spill] sm:$0xff]  ;;  %v3019_v15 = vsub.f32 %v9440_v63, %v7756_v57 }
 0x5eb   : > { %4164 = vmatpush2.bf16.xpose.msra.mxu1 %v3747_v49  ;;  %v5380_v22 = vpop.eup %5379  ;;  %v3742_v24 = vpack.c.bf16 %v5374_v0, %v5378_v33  ;;  %5405 = vpow2.f32 %v3501_v4  ;;  %v3447_v4 = vmul.f32 1.442695, %v3027_v21  ;;  %v3463_v49 = vmul.f32 1.442695, %v3035_v47  ;;  %v4922_v63 = vld [vmem:[#allocation3 + $0xbc] ss:$-120 sps:$4 sm:$0xff]  }
 0x5ec   : > { %4165 = vmatprep.subr.bf16.mxu1 %v3740_v38  ;;  %v5382_v53 = vpop.eup %5381  ;;  %5407 = vpow2.f32 %v3515_v27  ;;  %v9436_v27 = vld [vmem:[#allocation231_spill] sm:$0xff]  ;;  %v3022_v38 = vsub.f32 %v9437_v28, %v7756_v57  ;;  %v3467_v33 = vmul.f32 1.442695, %v3037_v1  ;;  %v3421_v54 = vmul.f32 1.442695, %v3014_v35 }
 0x5ed   : > { %4245 = vmatpush2.bf16.xpose.msra.mxu0 %v3749_v36  ;;  %v5384_v52 = vpop.eup %5383  ;;  %5409 = vpow2.f32 %v3485_v16  ;;  %v3739_v25 = vpack.c.bf16 %v5382_v53, %v5380_v22  ;;  %v3012_v26 = vsub.f32 %v9436_v27, %v7746_v10  ;;  %v3433_v36 = vmul.f32 1.442695, %v3020_v3 }
 0x5ee   : > { %4246 = vmatprep.subr.bf16.mxu0 %v3742_v24  ;;  %v5386_v40 = vpop.eup %5385  ;;  %5411 = vpow2.f32 %v3479_v42  ;;  %v3437_v41 = vmul.f32 1.442695, %v3022_v38  ;;  %v3451_v53 = vmul.f32 1.442695, %v3029_v48  ;;  %v3021_v21 = vsub.f32 %v9442_v2, %v7756_v57 }
 0x5ef   : > { %v5388_v32 = vpop.eup %5387  ;;  %5413 = vpow2.f32 %v3495_v12  ;;  %v3417_v12 = vmul.f32 1.442695, %v3012_v26 }
 0x5f0   : > { %v5390_v8 = vpop.eup %5389  ;;  %5415 = vpow2.f32 %v3499_v11  ;;  %v3732_v62 = vpack.c.bf16 %v5386_v40, %v5388_v32  ;;  %v3435_v57 = vmul.f32 1.442695, %v3021_v21 }
 0x5f1   : > { %v5392_v50 = vpop.eup %5391  ;;  %5417 = vpow2.f32 %v3465_v61 }
 0x5f2   : > { %v5394_v43 = vpop.eup %5393  ;;  %v3741_v0 = vpack.c.bf16 %v5384_v52, %v5392_v50  ;;  %5419 = vpow2.f32 %v3449_v51  ;;  %v9441_v52 = vld [vmem:[#allocation229_spill] sm:$0xff] }
 0x5f3   : > { %4166 = vmatpush2.bf16.xpose.msra.mxu1 %v3739_v25  ;;  %v5396_v29 = vpop.eup %5395  ;;  %v3734_v18 = vpack.c.bf16 %v5390_v8, %v5394_v43  ;;  %5421 = vpow2.f32 %v3469_v45  ;;  %v3011_v61 = vsub.f32 %v9441_v52, %v7746_v10  ;;  %v9443_v45 = vld [vmem:[#allocation215_spill] sm:$0xff] }
 0x5f4   : > { %4167 = vmatprep.subr.bf16.mxu1 %v3732_v62  ;;  %v5398_v16 = vpop.eup %5397  ;;  %5423 = vpow2.f32 %v3483_v5  ;;  %v3013_v8 = vsub.f32 %v9443_v45, %v7746_v10  ;;  %v3431_v5 = vmul.f32 1.442695, %v3019_v15  ;;  %v4932_v15 = vld [vmem:[#allocation3 + $0xa0] ss:$-72 sps:$4 sm:$0xff]  }
 0x5f5   : > { %4247 = vmatpush2.bf16.xpose.msra.mxu0 %v3741_v0  ;;  %v5400_v42 = vpop.eup %5399  ;;  %5425 = vpow2.f32 %v3453_v34  ;;  %v3731_v20 = vpack.c.bf16 %v5398_v16, %v5396_v29  ;;  %v3415_v1 = vmul.f32 1.442695, %v3011_v61 }
 0x5f6   : > { %4248 = vmatprep.subr.bf16.mxu0 %v3734_v18  ;;  %v5402_v22 = vpop.eup %5401  ;;  %5427 = vpow2.f32 %v3447_v4  ;;  %v3419_v34 = vmul.f32 1.442695, %v3013_v8 }
 0x5f7   : > { %v5404_v24 = vpop.eup %5403  ;;  %5429 = vpow2.f32 %v3463_v49 }
 0x5f8   : > { %v5406_v23 = vpop.eup %5405  ;;  %5431 = vpow2.f32 %v3467_v33  ;;  %v3724_v60 = vpack.c.bf16 %v5402_v22, %v5404_v24 }
 0x5f9   : > { %v5408_v11 = vpop.eup %5407  ;;  %5433 = vpow2.f32 %v3433_v36 }
 0x5fa   : > { %v5410_v40 = vpop.eup %5409  ;;  %v3733_v51 = vpack.c.bf16 %v5400_v42, %v5408_v11  ;;  %5435 = vpow2.f32 %v3417_v12 }
 0x5fb   : > { %4168 = vmatpush2.bf16.xpose.msra.mxu1 %v3731_v20  ;;  %v5412_v32 = vpop.eup %5411  ;;  %v3726_v58 = vpack.c.bf16 %v5406_v23, %v5410_v40  ;;  %5437 = vpow2.f32 %v3437_v41  ;;  %v4911_v41 = vld [vmem:[#allocation3 + $0x110] ss:$-24 sps:$4 sm:$0xff]   ;;  %v4919_v23 = vld [vmem:[#allocation3 + $0x34] ss:$232 sps:$4 sm:$0xff]  }
 0x5fc   : > { %4169 = vmatprep.subr.bf16.mxu1 %v3724_v60  ;;  %v5414_v47 = vpop.eup %5413  ;;  %5439 = vpow2.f32 %v3451_v53  ;;  %v4914_v53 = vld [vmem:[#allocation3 + $0x28] ss:$80 sps:$4 sm:$0xff]  }
 0x5fd   : > { %4249 = vmatpush2.bf16.xpose.msra.mxu0 %v3733_v51  ;;  %v5416_v30 = vpop.eup %5415  ;;  %5441 = vpow2.f32 %v3421_v54  ;;  %v3723_v13 = vpack.c.bf16 %v5414_v47, %v5412_v32 }
 0x5fe   : > { %4250 = vmatprep.subr.bf16.mxu0 %v3726_v58  ;;  %v5418_v25 = vpop.eup %5417  ;;  %5443 = vpow2.f32 %v3431_v5 }
 0x5ff   : > { %v5420_v50 = vpop.eup %5419  ;;  %5445 = vpow2.f32 %v3415_v1 }
 0x600   : > { %v5422_v62 = vpop.eup %5421  ;;  %v3716_v43 = vpack.c.bf16 %v5418_v25, %v5420_v50  ;;  %5447 = vpow2.f32 %v3435_v57 }
 0x601   : > { %v5424_v3 = vpop.eup %5423  ;;  %5449 = vpow2.f32 %v3419_v34 }
 0x602   : > { %v5426_v4 = vpop.eup %5425  ;;  %v3725_v10 = vpack.c.bf16 %v5416_v30, %v5424_v3 }
 0x603   : > { %4170 = vmatpush2.bf16.xpose.msra.mxu1 %v3723_v13  ;;  %v5428_v0 = vpop.eup %5427  ;;  %v3718_v27 = vpack.c.bf16 %v5422_v62, %v5426_v4 }
 0x604   : > { %4171 = vmatprep.subr.bf16.mxu1 %v3716_v43  ;;  %v5430_v26 = vpop.eup %5429 }
 0x605   : > { %4251 = vmatpush2.bf16.xpose.msra.mxu0 %v3725_v10  ;;  %v5432_v29 = vpop.eup %5431  ;;  %v3715_v38 = vpack.c.bf16 %v5430_v26, %v5428_v0 }
 0x606   : > { %4252 = vmatprep.subr.bf16.mxu0 %v3718_v27  ;;  %v5434_v49 = vpop.eup %5433 }
 0x607   : > { %v5436_v18 = vpop.eup %5435 }
 0x608   : > { %v5438_v28 = vpop.eup %5437  ;;  %v3708_v46 = vpack.c.bf16 %v5434_v49, %v5436_v18 }
 0x609   : > { %v5440_v16 = vpop.eup %5439 }
 0x60a   : > { %v5442_v48 = vpop.eup %5441  ;;  %v3717_v33 = vpack.c.bf16 %v5432_v29, %v5440_v16 }
 0x60b   : > { %4172 = vmatpush2.bf16.xpose.msra.mxu1 %v3715_v38  ;;  %v3710_v42 = vpack.c.bf16 %v5438_v28, %v5442_v48  ;;  %v5444_v36 = vpop.eup %5443 }
 0x60c   : > { %4173 = vmatprep.subr.bf16.mxu1 %v3708_v46  ;;  %v5446_v55 = vpop.eup %5445 }
 0x60d   : > { %4253 = vmatpush2.bf16.xpose.msra.mxu0 %v3717_v33  ;;  %v5448_v35 = vpop.eup %5447  ;;  %v3707_v22 = vpack.c.bf16 %v5444_v36, %v5446_v55 }
 0x60e   : > { %4254 = vmatprep.subr.bf16.mxu0 %v3710_v42  ;;  %v5450_v12 = vpop.eup %5449 }
 0x60f   : > { %v3709_v24 = vpack.c.bf16 %v5448_v35, %v5450_v12 }
 0x613   : > { %4174 = vmatpush2.bf16.xpose.msra.mxu1 %v3707_v22 }
 0x614   : > { %4175 = vmatprep.subr.bf16.mxu1 %v3700_v6  ;;  %v3793_v6 = vld [vmem:[#allocation3 + $0x108] sm:$0xff] }
 0x615   : > { %4255 = vmatpush2.bf16.xpose.msra.mxu0 %v3709_v24  ;;  %v4713_v11 = vcombine.low %v3793_v6, %v3793_v6 }
 0x616   : > { %4256 = vmatprep.subr.bf16.mxu0 %v3702_v19  ;;  %v4929_v19 = vld [vmem:[#allocation3 + $0xd8] ss:$-136 sps:$4 sm:$0xff]  }
 0x61b   : > { %4176 = vmatpush2.bf16.xpose.msra.mxu1 %v3699_v44  ;;  %v3794_v44 = vld [vmem:[#allocation3 + $0xa8] sm:$0xff] }
 0x61c   : > { %v4716_v20 = vcombine.high %v3794_v44, %v3794_v44  ;;  %v4715_v52 = vcombine.low %v3794_v44, %v3794_v44 }
 0x61d   : > { %4257 = vmatpush2.bf16.xpose.msra.mxu0 %v3701_v31  ;;  %v4714_v31 = vcombine.high %v3793_v6, %v3793_v6 }
 0x622   : > { %4178 = vmatmul.mubr.bf16.vlgmr.msra.gmra.mxu1 %v4911_v41 }
 0x623   : > { %4187 = vmatprep.mubr.bf16.mxu1 %v4919_v23 }
 0x624   : > { %4259 = vmatmul.mubr.bf16.vlgmr.msra.gmra.mxu0 %v4914_v53 }
 0x625   : > { %4268 = vmatprep.mubr.bf16.mxu0 %v4922_v63 }
 0x62a   : > { %4188 = vmatmul.mubr.bf16.gmra.mxu1 %v4917_v39 }
 0x62b   : > { %4197 = vmatprep.mubr.bf16.mxu1 %v4925_v59 }
 0x62c   : > { %4269 = vmatmul.mubr.bf16.gmra.mxu0 %v4920_v7 }
 0x62d   : > { %4278 = vmatprep.mubr.bf16.mxu0 %v4928_v37 }
 0x632   : > { %4198 = vmatmul.mubr.bf16.gmra.mxu1 %v4923_v9 }
 0x633   : > { %4207 = vmatprep.mubr.bf16.mxu1 %v4931_v56 }
 0x634   : > { %4279 = vmatmul.mubr.bf16.gmra.mxu0 %v4926_v14 }
 0x635   : > { %4288 = vmatprep.mubr.bf16.mxu0 %v4934_v17 }
 0x63a   : > { %4208 = vmatmul.mubr.bf16.gmra.mxu1 %v4929_v19 }
 0x63b   : > { %4217 = vmatprep.mubr.bf16.mxu1 %v4714_v31 }
 0x63c   : > { %4289 = vmatmul.mubr.bf16.gmra.mxu0 %v4932_v15 }
 0x63d   : > { %4298 = vmatprep.mubr.bf16.mxu0 %v4716_v20 }
 0x642   : > { %4218 = vmatmul.mubr.bf16.gmra.mxu1 %v4713_v11 }
 0x644   : > { %4299 = vmatmul.mubr.bf16.gmra.mxu0 %v4715_v52 }
 0x662   : > { %v4017_v61 = vpop.f32.mrf.mxu1 }
 0x664   : > { %v4098_v60 = vpop.f32.mrf.mxu0  ;;  %v4019_v54 = vpop.f32.mrf.mxu1 }
 0x665   : > { %v8205_v40 = vadd.f32 %v4098_v60, %v4017_v61 }
 0x666   : > { %v4100_v2 = vpop.f32.mrf.mxu0  ;;  %v4021_v21 = vpop.f32.mrf.mxu1 }
 0x667   : > { %v8207_v51 = vadd.f32 %v4100_v2, %v4019_v54 }
 0x668   : > { %v4102_v32 = vpop.f32.mrf.mxu0  ;;  %v4023_v58 = vpop.f32.mrf.mxu1 }
 0x669   : > { %v8209_v47 = vadd.f32 %v4102_v32, %v4021_v21 }
 0x66a   : > { %v4104_v45 = vpop.f32.mrf.mxu0  ;;  %v4027_v8 = vpop.f32.mrf.mxu1 }
 0x66b   : > { %v8211_v5 = vadd.f32 %v4104_v45, %v4023_v58 }
 0x66c   : > { %v4108_v30 = vpop.f32.mrf.mxu0  ;;  %v4029_v1 = vpop.f32.mrf.mxu1 }
 0x66d   : > { %v8213_v25 = vadd.f32 %v4108_v30, %v4027_v8 }
 0x66e   : > { %v4110_v57 = vpop.f32.mrf.mxu0  ;;  %v4031_v50 = vpop.f32.mrf.mxu1 }
 0x66f   : > { %v8215_v62 = vadd.f32 %v4110_v57, %v4029_v1 }
 0x670   : > { %v4112_v34 = vpop.f32.mrf.mxu0  ;;  %v4033_v13 = vpop.f32.mrf.mxu1 }
 0x671   : > { %v8217_v3 = vadd.f32 %v4112_v34, %v4031_v50 }
 0x672   : > { %v4114_v43 = vpop.f32.mrf.mxu0  ;;  %v4037_v4 = vpop.f32.mrf.mxu1 }
 0x673   : > { %v8219_v10 = vadd.f32 %v4114_v43, %v4033_v13 }
 0x674   : > { %v4118_v0 = vpop.f32.mrf.mxu0  ;;  %v4039_v27 = vpop.f32.mrf.mxu1 }
 0x675   : > { %v8221_v26 = vadd.f32 %v4118_v0, %v4037_v4 }
 0x676   : > { %v4120_v29 = vpop.f32.mrf.mxu0  ;;  %v4041_v49 = vpop.f32.mrf.mxu1 }
 0x677   : > { %v8223_v18 = vadd.f32 %v4120_v29, %v4039_v27 }
 0x678   : > { %v4122_v28 = vpop.f32.mrf.mxu0  ;;  %v4043_v38 = vpop.f32.mrf.mxu1 }
 0x679   : > { %v8225_v16 = vadd.f32 %v4122_v28, %v4041_v49 }
 0x67a   : > { %v4124_v46 = vpop.f32.mrf.mxu0  ;;  %v4047_v48 = vpop.f32.mrf.mxu1 }
 0x67b   : > { %v8227_v33 = vadd.f32 %v4124_v46, %v4043_v38 }
 0x67c   : > { %v4128_v42 = vpop.f32.mrf.mxu0  ;;  %v4049_v36 = vpop.f32.mrf.mxu1 }
 0x67d   : > { %v8229_v55 = vadd.f32 %v4128_v42, %v4047_v48 }
 0x67e   : > { %v4130_v35 = vpop.f32.mrf.mxu0  ;;  %v4051_v22 = vpop.f32.mrf.mxu1 }
 0x67f   : > { %v8231_v12 = vadd.f32 %v4130_v35, %v4049_v36 }
 0x680   : > { %v4132_v24 = vpop.f32.mrf.mxu0  ;;  %v4053_v41 = vpop.f32.mrf.mxu1 }
 0x681   : > { %v8233_v23 = vadd.f32 %v4132_v24, %v4051_v22 }
 0x682   : > { %v4134_v53 = vpop.f32.mrf.mxu0  ;;  %v4057_v63 = vpop.f32.mrf.mxu1 }
 0x683   : > { %v8235_v39 = vadd.f32 %v4134_v53, %v4053_v41 }
 0x684   : > { %v4059_v59 = vpop.f32.mrf.mxu1  ;;  %v4138_v7 = vpop.f32.mrf.mxu0 }
 0x685   : > { %v4139_v37 = vadd.f32 %v4138_v7, %v4057_v63 }
 0x686   : > { %v4061_v9 = vpop.f32.mrf.mxu1  ;;  %v4140_v56 = vpop.f32.mrf.mxu0 }
 0x687   : > { %v4141_v14 = vadd.f32 %v4140_v56, %v4059_v59  ;;  %v4309_v56 = vlaneseq }
 0x688   : > { %v4062_v17 = vpop.f32.mrf.mxu1  ;;  %v4142_v6 = vpop.f32.mrf.mxu0 }
 0x68a   : > { %v4143_v19 = vpop.f32.mrf.mxu0 }
 0x68b   : > { %v8251_v19 = vshrl.u32 %v4309_v56, 7 }
 0x6e2   : > { %v4179_v44 = vpop.f32.mrf.mxu1 }
 0x6e4   : > { %v4260_v31 = vpop.f32.mrf.mxu0  ;;  %v4181_v15 = vpop.f32.mrf.mxu1 }
 0x6e6   : > { %v4262_v20 = vpop.f32.mrf.mxu0  ;;  %v4183_v11 = vpop.f32.mrf.mxu1 }
 0x6e8   : > { %v4264_v52 = vpop.f32.mrf.mxu0  ;;  %v4185_v61 = vpop.f32.mrf.mxu1 }
 0x6ea   : > { %v8237_v60 = vpop.f32.mrf.mxu0  ;;  %v4189_v54 = vpop.f32.mrf.mxu1 }
 0x6ec   : > { %v4270_v2 = vpop.f32.mrf.mxu0  ;;  %v4191_v21 = vpop.f32.mrf.mxu1 }
 0x6ee   : > { %v8239_v32 = vpop.f32.mrf.mxu0  ;;  %v4193_v58 = vpop.f32.mrf.mxu1 }
 0x6f0   : > { %v4274_v45 = vpop.f32.mrf.mxu0  ;;  %v4195_v8 = vpop.f32.mrf.mxu1 }
 0x6f2   : > { %v8241_v30 = vpop.f32.mrf.mxu0  ;;  %v4199_v1 = vpop.f32.mrf.mxu1 }
 0x6f4   : > { %v4280_v57 = vpop.f32.mrf.mxu0  ;;  %v4201_v50 = vpop.f32.mrf.mxu1 }
 0x6f6   : > { %v8243_v34 = vpop.f32.mrf.mxu0  ;;  %v4203_v13 = vpop.f32.mrf.mxu1 }
 0x6f8   : > { %v4284_v43 = vpop.f32.mrf.mxu0  ;;  %v4205_v4 = vpop.f32.mrf.mxu1 }
 0x6fa   : > { %v8245_v0 = vpop.f32.mrf.mxu0  ;;  %v4209_v27 = vpop.f32.mrf.mxu1 }
 0x6fc   : > { %v4290_v29 = vpop.f32.mrf.mxu0  ;;  %v4211_v49 = vpop.f32.mrf.mxu1 }
 0x6fe   : > { %v8247_v28 = vpop.f32.mrf.mxu0  ;;  %v4213_v38 = vpop.f32.mrf.mxu1 }
 0x700   : > { %v4294_v46 = vpop.f32.mrf.mxu0  ;;  %v4215_v48 = vpop.f32.mrf.mxu1 }
 0x702   : > { %v8249_v42 = vpop.f32.mrf.mxu0  ;;  %v4219_v36 = vpop.f32.mrf.mxu1 }
 0x703   : > { %9444 = vst [vmem:[#allocation209_spill] sm:$0xff] %v8249_v42  ;;  %v4220_v35 = vadd.f32 %v4219_v36, %v4139_v37  ;;  %v4180_v42 = vadd.f32 %v4179_v44, %v8205_v40  ;;  %v4182_v37 = vadd.f32 %v4181_v15, %v8207_v51  ;;  %v4184_v36 = vadd.f32 %v4183_v11, %v8209_v47 }
 0x704   : > { %v4300_v22 = vpop.f32.mrf.mxu0  ;;  %v4221_v24 = vpop.f32.mrf.mxu1  ;;  %v8263_v40 = vstv %s4333_s4 }
 0x705   : > { %v4301_v41 = vadd.f32 %v4300_v22, %v4220_v35  ;;  %v4222_v53 = vadd.f32 %v4221_v24, %v4141_v14  ;;  %v4190_v14 = vadd.f32 %v4189_v54, %v8213_v25  ;;  %v4194_v35 = vadd.f32 %v4193_v58, %v8217_v3 }
 0x706   : > { %v4302_v63 = vpop.f32.mrf.mxu0  ;;  %v4223_v59 = vpop.f32.mrf.mxu1  ;;  %v4200_v22 = vadd.f32 %v4199_v1, %v8221_v26  ;;  %v4204_v24 = vadd.f32 %v4203_v13, %v8225_v16  ;;  %v8265_v51 = vadd.f32 %v4262_v20, %v4182_v37  ;;  %v4265_v47 = vadd.f32 %v4264_v52, %v4184_v36  ;;  %v5461_v37 = vld [vmem:[%s5902_s0 + $0x60] sm:$0xff] }
 0x707   : > { %5451 = vrcp.f32 %v4301_v41  ;;  %v4303_v17 = vadd.f32 %v4302_v63, %v4222_v53  ;;  %v4311_v41 = vsub.s32 0, %v8251_v19  ;;  %v4261_v53 = vadd.f32 %v4260_v31, %v4180_v42  ;;  %v5458_v42 = vld [vmem:[%s5902_s0 + $0x30] sm:$0xff] }
 0x708   : > { %v4304_v7 = vpop.f32.mrf.mxu0  ;;  %v4224_v9 = vpop.f32.mrf.mxu1  ;;  %v4210_v63 = vadd.f32 %v4209_v27, %v8229_v55  ;;  %v4214_v59 = vadd.f32 %v4213_v38, %v8233_v23  ;;  %v4186_v25 = vadd.f32 %v4185_v61, %v8211_v5  ;;  %v4271_v44 = vadd.f32 %v4270_v2, %v4190_v14  ;;  %v5455_v27 = vld [vmem:[%s5902_s0] sm:$0xff]  ;;  %v5462_v14 = vld [vmem:[%s5902_s0 + $0x70] sm:$0xff] }
 0x709   : > { %5453 = vrcp.f32 %v4303_v17  ;;  %v4192_v26 = vadd.f32 %v4191_v21, %v8215_v62  ;;  %v4275_v15 = vadd.f32 %v4274_v45, %v4194_v35  ;;  %v4196_v16 = vadd.f32 %v4195_v8, %v8219_v10  ;;  %v5459_v9 = vld [vmem:[%s5902_s0 + $0x40] sm:$0xff]  ;;  %v5460_v17 = vld [vmem:[%s5902_s0 + $0x50] sm:$0xff] }
 0x70a   : > { %v4305_v6 = vpop.f32.mrf.mxu0  ;;  %v4281_v11 = vadd.f32 %v4280_v57, %v4200_v22  ;;  %v4202_v31 = vadd.f32 %v4201_v50, %v8223_v18  ;;  %v4285_v55 = vadd.f32 %v4284_v43, %v4204_v24  ;;  %v4206_v23 = vadd.f32 %v4205_v4, %v8227_v33 }
 0x70b   : > { %v4291_v54 = vadd.f32 %v4290_v29, %v4210_v63  ;;  %v4212_v52 = vadd.f32 %v4211_v49, %v8231_v12  ;;  %v4295_v5 = vadd.f32 %v4294_v46, %v4214_v59  ;;  %v4216_v61 = vadd.f32 %v4215_v48, %v8235_v39  ;;  %v5456_v49 = vld [vmem:[%s5902_s0 + $0x10] sm:$0xff]  ;;  %v5457_v46 = vld [vmem:[%s5902_s0 + $0x20] sm:$0xff] }
 0x70c   : > { %v4267_v22 = vadd.f32 %v8237_v60, %v4186_v25  ;;  %v4273_v24 = vadd.f32 %v8239_v32, %v4192_v26  ;;  %v4283_v59 = vadd.f32 %v8243_v34, %v4202_v31  ;;  %v9446_v32 = vld [vmem:[#allocation209_spill] sm:$0xff] }
 0x70d   : > { %v4293_v60 = vadd.f32 %v8247_v28, %v4212_v52  ;;  %v4297_v25 = vadd.f32 %v9446_v32, %v4216_v61  ;;  %v5464_v52 = vld [vmem:[%s5902_s0 + $0x18] sm:$0xff]  ;;  %v5465_v61 = vld [vmem:[%s5902_s0 + $0x28] sm:$0xff] }
 0x714   : > { %v5452_v3 = vpop.eup %5451 }
 0x715   : > { %v4312_v20 = vrot.slane %v5452_v3, %v4311_v41 }
 0x716   : > { %v5454_v57 = vpop.eup %5453 }
 0x717   : > { %v4317_v2 = vmul.f32 %v4312_v20, %v4261_v53  ;;  %v4319_v62 = vmul.f32 %v4312_v20, %v4265_v47  ;;  %v4321_v21 = vmul.f32 %v4312_v20, %v4271_v44  ;;  %v4323_v10 = vmul.f32 %v4312_v20, %v4275_v15 }
 0x718   : > { %v4325_v18 = vmul.f32 %v4312_v20, %v4281_v11  ;;  %v4327_v58 = vmul.f32 %v4312_v20, %v4285_v55  ;;  %v4329_v33 = vmul.f32 %v4312_v20, %v4291_v54  ;;  %v4331_v45 = vmul.f32 %v4312_v20, %v4295_v5  ;;  %v5463_v20 = vld [vmem:[%s5902_s0 + $0x8] sm:$0xff] }
 0x719   : > { %v4335_v8 = vmul.f32 %v8263_v40, %v4317_v2  ;;  %v4337_v12 = vmul.f32 %v8263_v40, %v4319_v62  ;;  %v4339_v39 = vmul.f32 %v8263_v40, %v4321_v21  ;;  %v4341_v1 = vmul.f32 %v8263_v40, %v4323_v10  ;;  %v5466_v62 = vld [vmem:[%s5902_s0 + $0x38] sm:$0xff] }
 0x71a   : > { %v4343_v50 = vmul.f32 %v8263_v40, %v4325_v18  ;;  %v4345_v13 = vmul.f32 %v8263_v40, %v4327_v58  ;;  %v4347_v43 = vmul.f32 %v8263_v40, %v4329_v33  ;;  %v4349_v4 = vmul.f32 %v8263_v40, %v4331_v45  ;;  %v5468_v18 = vld [vmem:[%s5902_s0 + $0x58] sm:$0xff]  ;;  %v5469_v33 = vld [vmem:[%s5902_s0 + $0x68] sm:$0xff] }
 0x71b   : > { %v4351_v29 = vadd.f32 %v5455_v27, %v4335_v8  ;;  %v4353_v38 = vadd.f32 %v5456_v49, %v4337_v12  ;;  %v4355_v48 = vadd.f32 %v5457_v46, %v4339_v39  ;;  %v4357_v7 = vadd.f32 %v5458_v42, %v4341_v1  ;;  %v5470_v8 = vld [vmem:[%s5902_s0 + $0x78] sm:$0xff] }
 0x71c   : > { %v4359_v56 = vadd.f32 %v5459_v9, %v4343_v50  ;;  %v4361_v6 = vadd.f32 %v5460_v17, %v4345_v13  ;;  %v4363_v36 = vadd.f32 %v5461_v37, %v4347_v43  ;;  %v4365_v35 = vadd.f32 %v5462_v14, %v4349_v4 }
 0x71d   : > { %v4277_v53 = vadd.f32 %v8241_v30, %v4196_v16  ;;  %4367 = vst [vmem:[%s5908_s29] sm:$0xff] %v4351_v29  ;;  %4369 = vst [vmem:[%s5908_s29 + $0x10] sm:$0xff] %v4353_v38  ;;  %v4316_v63 = vrot.slane %v5454_v57, %v4311_v41  ;;  %v4287_v47 = vadd.f32 %v8245_v0, %v4206_v23 }
 0x71e   : > { %4371 = vst [vmem:[%s5908_s29 + $0x20] sm:$0xff] %v4355_v48  ;;  %4373 = vst [vmem:[%s5908_s29 + $0x30] sm:$0xff] %v4357_v7 }
 0x71f   : > { %4375 = vst [vmem:[%s5908_s29 + $0x40] sm:$0xff] %v4359_v56  ;;  %4377 = vst [vmem:[%s5908_s29 + $0x50] sm:$0xff] %v4361_v6  ;;  %v4318_v30 = vmul.f32 %v4316_v63, %v8265_v51  ;;  %v4320_v44 = vmul.f32 %v4316_v63, %v4267_v22  ;;  %v4322_v19 = vmul.f32 %v4316_v63, %v4273_v24 }
 0x720   : > { %4379 = vst [vmem:[%s5908_s29 + $0x60] sm:$0xff] %v4363_v36  ;;  %4381 = vst [vmem:[%s5908_s29 + $0x70] sm:$0xff] %v4365_v35  ;;  %v4324_v41 = vmul.f32 %v4316_v63, %v4277_v53  ;;  %v4326_v3 = vmul.f32 %v4316_v63, %v4283_v59  ;;  %v4328_v34 = vmul.f32 %v4316_v63, %v4287_v47 }
 0x721   : > { %v4330_v0 = vmul.f32 %v4316_v63, %v4293_v60  ;;  %v4332_v26 = vmul.f32 %v4316_v63, %v4297_v25  ;;  %v4336_v28 = vmul.f32 %v8263_v40, %v4318_v30  ;;  %v4338_v15 = vmul.f32 %v8263_v40, %v4320_v44 }
 0x722   : > { %v4340_v16 = vmul.f32 %v8263_v40, %v4322_v19  ;;  %v4342_v51 = vmul.f32 %v8263_v40, %v4324_v41  ;;  %v4344_v11 = vmul.f32 %v8263_v40, %v4326_v3  ;;  %v4346_v31 = vmul.f32 %v8263_v40, %v4328_v34 }
 0x723   : > { %v4348_v55 = vmul.f32 %v8263_v40, %v4330_v0  ;;  %v4350_v23 = vmul.f32 %v8263_v40, %v4332_v26  ;;  %v4352_v54 = vadd.f32 %v5463_v20, %v4336_v28  ;;  %v4354_v5 = vadd.f32 %v5464_v52, %v4338_v15  ;;  %v5467_v40 = vld [vmem:[%s5902_s0 + $0x48] sm:$0xff]  ;;  %s5533_s0 = scalar_lea.vmem %s5532_s3, 4096 }
 0x724   : > { %v4356_v2 = vadd.f32 %v5465_v61, %v4340_v16  ;;  %v4358_v21 = vadd.f32 %v5466_v62, %v4342_v51  ;;  %v4360_v10 = vadd.f32 %v5467_v40, %v4344_v11  ;;  %v4362_v58 = vadd.f32 %v5468_v18, %v4346_v31  ;;  %p5535_p1 = scmp.lt.s32.totalorder %s5533_s0, %s5527_s27 }
 0x725   : > { %v4364_v45 = vadd.f32 %v5469_v33, %v4348_v55  ;;  %v4366_v12 = vadd.f32 %v5470_v8, %v4350_v23  ;;  %4368 = vst [vmem:[%s5908_s29 + $0x8] sm:$0xff] %v4352_v54  ;;  %4370 = vst [vmem:[%s5908_s29 + $0x18] sm:$0xff] %v4354_v5 }
 0x726   : > { %4372 = vst [vmem:[%s5908_s29 + $0x28] sm:$0xff] %v4356_v2  ;;  %4374 = vst [vmem:[%s5908_s29 + $0x38] sm:$0xff] %v4358_v21  ;;  %p5536_p12 = por %p5535_p1, %p5534_p9 }
 0x727   : > { %4376 = vst [vmem:[%s5908_s29 + $0x48] sm:$0xff] %v4360_v10  ;;  %4378 = vst [vmem:[%s5908_s29 + $0x58] sm:$0xff] %v4362_v58 }
 0x728   : > { %4380 = vst [vmem:[%s5908_s29 + $0x68] sm:$0xff] %v4364_v45  ;;  %4382 = vst [vmem:[%s5908_s29 + $0x78] sm:$0xff] %v4366_v12  ;;  %p5537_p13 = pnand %p5536_p12, %p5530_p0 }
 0x72a   : > { %5540 = shalt.err (!%p5537_p13)
}
 0x72b   : > { %s5541_s29 = scalar_lea.hbm %s8333_s11, 2048  ;;  %s5545_s10 = scalar_lea.hbm %s9447_s5, 16384 }
 0x72c   : > { %p5542_p8 = scmp.ne.s32.totalorder %s8333_s11, %s5541_s29  ;;  %p5546_p3 = scmp.lt.s32.totalorder %s8333_s11, %s9447_s5 }
 0x72d   : > { %p5547_p11 = scmp.lt.s32.totalorder %s5545_s10, %s5541_s29 }
 0x72e   : > { %p5543_p2 = pnand %p5542_p8, %p9449_p10 }
 0x72f   : > { %p5548_p5 = por %p5547_p11, %p5546_p3 }
 0x730   : > { %p5544_p4 = pneg %p5543_p2 }
 0x732   : > { %p5549_p6 = pnand %p5548_p5, %p5544_p4 }
 0x734   : > { %5552 = shalt.err (!%p5549_p6)
}
 0x735   : > { %s5665_s22 = smov 256   ;;  %s5666_s2 = smov 1024  }
 0x736   : > { %s5667_s6 = smov 16  }
 0x737   : > { %4766 = dma.vmem_to_hbm [thread:$0]  (%p9449_p10), %s8324_s14, 2048, %s8333_s11, %s4384_s23, %s5665_s22, %s5666_s2, %s5667_s6  }
 0x738 PF: > { %s9450_s27 = sld [smem:[#allocation14_spill]]  ;;  %p4780_p7 = scmp.ge.s32.totalorder %s5651_s20, 2 }
 0x739   : > { %s9451_s9 = sld [smem:[#allocation19_spill]] }
 0x73e   : > { %s4414_s3 = sand.u32 1, %s9450_s27  }
 0x73f   : > { %p9452_p0 = scmp.ne.s32.totalorder %s9451_s9, 0  ;;  %s4415_s0 = scalar_lea.sflag [#allocation7], %s4414_s3 }
 0x741   : > { %p4776_p9 = pnand %p4780_p7, %p9452_p0 }
 0x743   : > { %p4777_p1 = pneg %p4776_p9 }
 0x745   : > { %5606 = dma.done.wait (%p4777_p1), %s4415_s0, 2048  }
 0x746   : > { %5608 = vsyncadd (%p4777_p1), %s4415_s0, 4294965248  ;;  %s29_s20 = sadd.s32 1, %s5651_s20   ;;  %s9453_s24 = sld [smem:[#allocation16_spill]] }
 0x747   : > { %p26_p12 = scmp.ge.s32.totalorder %s29_s20, 10   ;;  %s9454_s21 = sld [smem:[#allocation17_spill]] }
 0x748   : > { %s9455_s11 = smov %s5615_s12  ;;  %s9456_s12 = smov %s5619_s13 }
 0x749   : > { %s9457_s13 = smov %s5868_s30  ;;  %s9458_s14 = smov %s5627_s15 }
 0x74a   : > { %s9459_s15 = smov %s5631_s16  ;;  %s9460_s16 = smov %s5865_s26 }
 0x74b   : > { %s9461_s17 = smov %s5643_s18  ;;  %s9462_s0 = smov %s5647_s19 }
 0x74c   : > { %s9463_s18 = smov %s9453_s24  ;;  %28 = sbr.rel (!%p26_p12) target bundleno = 21 (0x15), region = 118 }
 0x74d   : > { %s9464_s19 = smov %s9454_s21 }
 0x751   :  { %4420 = vsyncpa [#allocation6], 1 }
 0x752   :  { %4422 = vsyncpa [#allocation6 + $0x1], 1 }
 0x753   :  { %4423 = vsyncpa [#allocation9], 1 }
 0x754   :  { %4425 = vsyncpa [#allocation9 + $0x1], 1 }
 0x755   :  { %4426 = vsyncpa [#allocation7], 1 }
 0x756   :  { %4428 = vsyncpa [#allocation7 + $0x1], 1 }

</bundles_post_ra>
